<compile_context>
chip_gen: v6e
topology: v6e:2x2x1
jax: 0.10.0
libtpu: 0.0.40
codegen_flags: <defaults>
</compile_context>

<pallas_src>
import functools

import jax
import jax.numpy as jnp
from jax import lax
from jax.experimental import pallas as pl
from jax.experimental.pallas import tpu as pltpu


def _pick_batch_block(n, hp, wp, fs, c, budget_bytes=20 << 20):
    """Largest divisor of n whose per-block scratch (patch + shift-buffer + s1)
    stays under budget.  Single-TC parts (v5e/v6e) want the whole batch in one
    grid step; larger problems naturally split into several blocks."""
    per_img_cols = hp * wp
    bytes_per_img = 4 * per_img_cols * (fs * fs * c + 2 * c + 2)
    max_imgs = max(1, int(budget_bytes // max(1, bytes_per_img)))
    nb = 1
    for d in range(1, n + 1):
        if n % d == 0 and d <= max_imgs:
            nb = d
    return nb


def _deriv_kernel(yp_ref, mask_ref, w1_ref, b1_ref, w2_ref, b2_ref, w3_ref,
                  w2t_ref, w1t_ref, out_ref,
                  padbuf_ref, patch_ref, s1_ref,
                  *, fs, Wp, Mp, lpad, rpad):
    # yp_ref   : (1, fs*fs, Mp)    im2col'd zero-padded input, pixels on lanes
    # mask_ref : (1, 1, Mp)        1.0 at real pixels, 0.0 at SAME-padding halo
    # w1_ref   : (C, fs*fs)        conv1 weights
    # b1_ref   : (C, 1)
    # w2_ref   : (C, fs*fs*C)      conv2 weights, column = tap*C + cin
    # b2_ref   : (C, 1)
    # w3_ref   : (C, 1)            1x1 conv3 weights
    # w2t_ref  : (C, fs*fs*C)      flipped, channel-transposed conv2 (conv2^T)
    # w1t_ref  : (fs*fs, C)        conv1 weights, taps on rows (for conv1^T)
    # out_ref  : (1, 1, Mp)        dE/dy on padded coords (halo cols = junk)
    # padbuf   : (C, lpad+Mp+rpad) zero-slack shift buffer (interior reused)
    # patch    : (fs*fs*C, Mp)     im2col matrix, pixels on lanes (reused 2x)
    # s1       : (C, Mp)           masked sigmoid(z1) stash
    f32 = jnp.float32
    C = w1_ref.shape[0]
    off = fs // 2
    mask = mask_ref[0]                                    # (1, Mp)

    # Zero only the slack columns; the interior is fully overwritten before
    # every read.  (Re-done every step so it stays correct when the grid is
    # sharded across TensorCores with private scratch.)
    if lpad > 0:
        padbuf_ref[:, 0:lpad] = jnp.zeros((C, lpad), f32)
    if rpad > 0:
        padbuf_ref[:, lpad + Mp:lpad + Mp + rpad] = jnp.zeros((C, rpad), f32)

    def build_patch(x):
        """x: (C, Mp), already masked.  Fill the (fs*fs*C, Mp) im2col matrix:
        each tap is a contiguous lane-shifted slice of the slack buffer."""
        padbuf_ref[:, lpad:lpad + Mp] = x
        for p in range(fs):
            for q in range(fs):
                tap = p * fs + q
                start = lpad + (p - off) * Wp + (q - off)
                patch_ref[tap * C:(tap + 1) * C, :] = \
                    padbuf_ref[:, start:start + Mp]

    # ---- conv1 (1 -> C) on the MXU: (C, 9) @ (9, Mp), pixels on lanes -------
    z1 = jnp.dot(w1_ref[...], yp_ref[0], preferred_element_type=f32) + b1_ref[...]
    # sigmoid + softplus from one shared exp
    t1 = jnp.exp(-jnp.abs(z1))
    r1 = 1.0 / (1.0 + t1)
    s1_ref[...] = jnp.where(z1 >= 0.0, r1, 1.0 - r1) * mask      # masked sigmoid
    a1 = (jnp.maximum(z1, 0.0) + jnp.log1p(t1)) * mask           # masked softplus

    # ---- conv2 (C -> C): fused K = fs*fs*C matmul -> (C, Mp) ----------------
    build_patch(a1)
    z2 = jnp.dot(w2_ref[...], patch_ref[...], preferred_element_type=f32) + b2_ref[...]

    # ---- backward: dE/dz2 = sigmoid(z2) * w3, masked ------------------------
    g2 = jax.nn.sigmoid(z2) * w3_ref[...] * mask

    # ---- dE/dz1 = conv2^T(g2) * sigmoid(z1)  (mask folded into s1) ----------
    build_patch(g2)
    g1 = jnp.dot(w2t_ref[...], patch_ref[...], preferred_element_type=f32) * s1_ref[...]

    # ---- dE/dy = conv1^T(g1): tiny (fs*fs, C) @ (C, Mp) matmul + col2im -----
    hcol = jnp.dot(w1t_ref[...], g1, preferred_element_type=f32)  # (fs*fs, Mp)
    padbuf_ref[0:fs * fs, lpad:lpad + Mp] = hcol                  # slack cols stay 0
    dy = jnp.zeros((1, Mp), f32)
    for p in range(fs):
        for q in range(fs):
            tap = p * fs + q
            start = lpad + (off - p) * Wp + (off - q)
            dy = dy + padbuf_ref[tap:tap + 1, start:start + Mp]
    out_ref[...] = dy.reshape(1, 1, Mp).astype(out_ref.dtype)     # lane-dense store


def derivative_global_e_wrt_y(y, params, *, filter_size):
    """y: (N, 1, H, W) float32 (torch NCHW). Returns dE_global/dy, same shape."""
    f1, b1 = params['filter1'], params['bias1']
    f2, b2 = params['filter2'], params['bias2']
    f3 = params['filter3']                 # bias3: constant in E -> zero deriv
    N, Cin, H, W = y.shape
    assert Cin == 1
    fs = filter_size
    assert fs % 2 == 1, "SAME-padding math assumes an odd filter size"
    off = fs // 2
    Hp, Wp = H + 2 * off, W + 2 * off
    C = f1.shape[0]                        # 32
    assert fs * fs <= C                    # col2im reuses padbuf rows 0..fs*fs-1

    Nb = _pick_batch_block(N, Hp, Wp, fs, C)
    G = N // Nb
    Mp = Nb * Hp * Wp                      # padded pixels (lane axis) per block
    slack = off * Wp + off                 # max |flat pixel shift| of one tap
    lpad = ((slack + 127) // 128) * 128    # lane-aligned interior start
    rpad = slack

    # ---- wrapper-side layout plumbing (no FLOPs): pad + flat im2col of y ----
    yf = y[:, 0, :, :].astype(jnp.float32)                        # (N, H, W)
    ypad = jnp.pad(yf, ((0, 0), (off, off), (off, off)))          # (N, Hp, Wp)
    yflat = jnp.pad(ypad.reshape(G, Nb * Hp * Wp), ((0, 0), (slack, slack)))
    y_p = jnp.stack(
        [yflat[:, p * Wp + q: p * Wp + q + Mp]
         for p in range(fs) for q in range(fs)], axis=1)          # (G, 9, Mp)

    m2d = jnp.zeros((Hp, Wp), jnp.float32).at[off:off + H, off:off + W].set(1.0)
    mask = jnp.tile(m2d.reshape(1, Hp * Wp), (Nb, 1)).reshape(1, 1, Mp)

    w1 = f1.reshape(C, fs * fs).astype(jnp.float32)               # (C, 9)
    w1t = w1.T                                                    # (9, C)
    w2 = jnp.transpose(f2, (0, 2, 3, 1)).reshape(C, fs * fs * C).astype(jnp.float32)
    w2t = jnp.transpose(jnp.flip(f2, (2, 3)),
                        (1, 2, 3, 0)).reshape(C, fs * fs * C).astype(jnp.float32)
    w3 = f3[0, :, 0, 0].reshape(C, 1).astype(jnp.float32)
    b1r = b1.reshape(C, 1).astype(jnp.float32)
    b2r = b2.reshape(C, 1).astype(jnp.float32)

    scratch_bytes = 4 * (C * (lpad + Mp + rpad) + fs * fs * C * Mp + C * Mp)
    vmem_limit = int(min(60 << 20, max(32 << 20, 2 * scratch_bytes)))

    out = pl.pallas_call(
        functools.partial(_deriv_kernel, fs=fs, Wp=Wp, Mp=Mp, lpad=lpad, rpad=rpad),
        out_shape=jax.ShapeDtypeStruct((G, 1, Mp), jnp.float32),
        grid=(G,),
        in_specs=[
            pl.BlockSpec((1, fs * fs, Mp), lambda n: (n, 0, 0)),
            pl.BlockSpec((1, 1, Mp), lambda n: (0, 0, 0)),
            pl.BlockSpec((C, fs * fs), lambda n: (0, 0)),
            pl.BlockSpec((C, 1), lambda n: (0, 0)),
            pl.BlockSpec((C, fs * fs * C), lambda n: (0, 0)),
            pl.BlockSpec((C, 1), lambda n: (0, 0)),
            pl.BlockSpec((C, 1), lambda n: (0, 0)),
            pl.BlockSpec((C, fs * fs * C), lambda n: (0, 0)),
            pl.BlockSpec((fs * fs, C), lambda n: (0, 0)),
        ],
        out_specs=pl.BlockSpec((1, 1, Mp), lambda n: (n, 0, 0)),
        scratch_shapes=[
            pltpu.VMEM((C, lpad + Mp + rpad), jnp.float32),
            pltpu.VMEM((fs * fs * C, Mp), jnp.float32),
            pltpu.VMEM((C, Mp), jnp.float32),
        ],
        compiler_params=pltpu.CompilerParams(
            dimension_semantics=("parallel",),
            vmem_limit_bytes=vmem_limit),
    )(y_p, mask, w1, b1r, w2, b2r, w3, w2t, w1t)

    # discard the SAME-padding halo columns and return NCHW
    dy = out.reshape(N, Hp, Wp)[:, off:off + H, off:off + W]
    return dy[:, None, :, :]


def _reference(y, params, *, filter_size):
    """Pure-JAX reference: dE/dy via autodiff through the energy network."""
    del filter_size
    dn = ('NHWC', 'HWIO', 'NHWC')
    W1 = jnp.transpose(params['filter1'], (2, 3, 1, 0))
    W2 = jnp.transpose(params['filter2'], (2, 3, 1, 0))
    W3 = jnp.transpose(params['filter3'], (2, 3, 1, 0))
    b1, b2, b3 = params['bias1'], params['bias2'], params['bias3']

    def energy(y_nchw):
        x = jnp.transpose(y_nchw, (0, 2, 3, 1))
        z1 = lax.conv_general_dilated(x, W1, (1, 1), 'SAME',
                                      dimension_numbers=dn) + b1
        a1 = jax.nn.softplus(z1)
        z2 = lax.conv_general_dilated(a1, W2, (1, 1), 'SAME',
                                      dimension_numbers=dn) + b2
        a2 = jax.nn.softplus(z2)
        z3 = lax.conv_general_dilated(a2, W3, (1, 1), 'SAME',
                                      dimension_numbers=dn) + b3
        return jnp.sum(z3)

    return jax.grad(energy)(y)


if __name__ == "__main__":
    hyper = {'filter_size': 3}
    fs = hyper['filter_size']

    key = jax.random.PRNGKey(0)
    k1, k2, k3, k4, k5, k6, ky = jax.random.split(key, 7)

    def xavier_uniform(k, shape):
        fan_in = shape[1] * shape[2] * shape[3]
        fan_out = shape[0] * shape[2] * shape[3]
        bound = (6.0 / (fan_in + fan_out)) ** 0.5
        return jax.random.uniform(k, shape, jnp.float32, -bound, bound)

    params = {
        'filter1': xavier_uniform(k1, (32, 1, fs, fs)),
        'bias1': 0.05 * jax.random.normal(k2, (32,), jnp.float32),
        'filter2': xavier_uniform(k3, (32, 32, fs, fs)),
        'bias2': 0.05 * jax.random.normal(k4, (32,), jnp.float32),
        'filter3': xavier_uniform(k5, (1, 32, 1, 1)),
        'bias3': 0.05 * jax.random.normal(k6, (1,), jnp.float32),
    }
    y = jax.random.normal(ky, (2, 1, 16, 16), jnp.float32)   # NCHW, like torch

    out = jax.block_until_ready(
        derivative_global_e_wrt_y(y, params, filter_size=fs))
    ref = jax.block_until_ready(_reference(y, params, filter_size=fs))

    assert out.shape == y.shape, (out.shape, y.shape)
    err = jnp.max(jnp.abs(out - ref))
    if not jnp.allclose(out, ref, rtol=1e-4, atol=1e-4):
        raise AssertionError(f"kernel/reference mismatch, max abs err = {err}")
    print("KERNEL_OK")
</pallas_src>

<mosaic_0001>
module attributes {stable_mosaic.version = 11 : i64} {
  func.func @_deriv_kernel(%arg0: i32, %arg1: memref<1x9x648xf32, #tpu.memory_space<vmem>>, %arg2: memref<1x1x648xf32, #tpu.memory_space<vmem>>, %arg3: memref<32x9xf32, #tpu.memory_space<vmem>>, %arg4: memref<32x1xf32, #tpu.memory_space<vmem>>, %arg5: memref<32x288xf32, #tpu.memory_space<vmem>>, %arg6: memref<32x1xf32, #tpu.memory_space<vmem>>, %arg7: memref<32x1xf32, #tpu.memory_space<vmem>>, %arg8: memref<32x288xf32, #tpu.memory_space<vmem>>, %arg9: memref<9x32xf32, #tpu.memory_space<vmem>>, %arg10: memref<1x1x648xf32, #tpu.memory_space<vmem>>, %arg11: memref<32x795xf32, #tpu.memory_space<vmem>>, %arg12: memref<288x648xf32, #tpu.memory_space<vmem>>, %arg13: memref<32x648xf32, #tpu.memory_space<vmem>>) attributes {dimension_semantics = [#tpu.dimension_semantics<parallel>], iteration_bounds = array<i64: 1>, scalar_prefetch = 0 : i64, scratch_operands = 3 : i64, tpu.core_type = #tpu.core_type<tc>, window_params = [{transform_indices = @transform_0, window_bounds = array<i64: 1, 9, 648>}, {pipeline_mode = #tpu.pipeline_mode<synchronous>, transform_indices = @transform_1, window_bounds = array<i64: 1, 1, 648>}, {pipeline_mode = #tpu.pipeline_mode<synchronous>, transform_indices = @transform_2, window_bounds = array<i64: 32, 9>}, {pipeline_mode = #tpu.pipeline_mode<synchronous>, transform_indices = @transform_3, window_bounds = array<i64: 32, 1>}, {pipeline_mode = #tpu.pipeline_mode<synchronous>, transform_indices = @transform_4, window_bounds = array<i64: 32, 288>}, {pipeline_mode = #tpu.pipeline_mode<synchronous>, transform_indices = @transform_5, window_bounds = array<i64: 32, 1>}, {pipeline_mode = #tpu.pipeline_mode<synchronous>, transform_indices = @transform_6, window_bounds = array<i64: 32, 1>}, {pipeline_mode = #tpu.pipeline_mode<synchronous>, transform_indices = @transform_7, window_bounds = array<i64: 32, 288>}, {pipeline_mode = #tpu.pipeline_mode<synchronous>, transform_indices = @transform_8, window_bounds = array<i64: 9, 32>}, {transform_indices = @transform_9, window_bounds = array<i64: 1, 1, 648>}]} {
    %c0 = arith.constant 0 : index
    %c0_0 = arith.constant 0 : index
    %c0_1 = arith.constant 0 : index
    %0 = vector.load %arg2[%c0, %c0_0, %c0_1] : memref<1x1x648xf32, #tpu.memory_space<vmem>>, vector<1x1x648xf32>
    %1 = vector.shape_cast %0 : vector<1x1x648xf32> to vector<1x648xf32>
    %cst = arith.constant 0.000000e+00 : f32
    %2 = vector.broadcast %cst : f32 to vector<32x128xf32>
    %c0_2 = arith.constant 0 : index
    %c0_3 = arith.constant 0 : index
    %3 = vector.load %arg11[%c0_2, %c0_3] : memref<32x795xf32, #tpu.memory_space<vmem>>, vector<32x128xf32>
    tpu.vector_store %arg11[%c0_2, %c0_3], %2 {strides = array<i32>} : memref<32x795xf32, #tpu.memory_space<vmem>>, vector<32x128xf32>,
    %cst_4 = arith.constant 0.000000e+00 : f32
    %4 = vector.broadcast %cst_4 : f32 to vector<32x19xf32>
    %c0_5 = arith.constant 0 : index
    %c776 = arith.constant 776 : index
    %5 = vector.load %arg11[%c0_5, %c776] : memref<32x795xf32, #tpu.memory_space<vmem>>, vector<32x19xf32>
    tpu.vector_store %arg11[%c0_5, %c776], %4 {strides = array<i32>} : memref<32x795xf32, #tpu.memory_space<vmem>>, vector<32x19xf32>,
    %c0_6 = arith.constant 0 : index
    %c0_7 = arith.constant 0 : index
    %6 = vector.load %arg3[%c0_6, %c0_7] : memref<32x9xf32, #tpu.memory_space<vmem>>, vector<32x9xf32>
    %c0_8 = arith.constant 0 : index
    %c0_9 = arith.constant 0 : index
    %c0_10 = arith.constant 0 : index
    %7 = vector.load %arg1[%c0_8, %c0_9, %c0_10] : memref<1x9x648xf32, #tpu.memory_space<vmem>>, vector<1x9x648xf32>
    %8 = vector.shape_cast %7 : vector<1x9x648xf32> to vector<9x648xf32>
    %cst_11 = arith.constant dense<0.000000e+00> : vector<32x648xf32>
    %9 = tpu.matmul %6, %8, %cst_11 {dimension_numbers = #tpu.dot_dimension_numbers<[1], [0], [0], [1], [0, 0, 1, 1], [], []>} : vector<32x9xf32>, vector<9x648xf32>, vector<32x648xf32> -> vector<32x648xf32>
    %c0_12 = arith.constant 0 : index
    %c0_13 = arith.constant 0 : index
    %10 = vector.load %arg4[%c0_12, %c0_13] : memref<32x1xf32, #tpu.memory_space<vmem>>, vector<32x1xf32>
    %11 = vector.broadcast %10 : vector<32x1xf32> to vector<32x648xf32>
    %12 = arith.addf %9, %11 : vector<32x648xf32>
    %13 = math.absf %12 : vector<32x648xf32>
    %cst_14 = arith.constant 0.000000e+00 : f32
    %14 = vector.broadcast %cst_14 : f32 to vector<32x648xf32>
    %15 = arith.subf %14, %13 : vector<32x648xf32>
    %16 = math.exp %15 : vector<32x648xf32>
    %cst_15 = arith.constant 1.000000e+00 : f32
    %17 = vector.broadcast %cst_15 : f32 to vector<32x648xf32>
    %18 = arith.addf %17, %16 : vector<32x648xf32>
    %cst_16 = arith.constant 1.000000e+00 : f32
    %19 = vector.broadcast %cst_16 : f32 to vector<32x648xf32>
    %20 = arith.divf %19, %18 : vector<32x648xf32>
    %cst_17 = arith.constant 0.000000e+00 : f32
    %21 = vector.broadcast %cst_17 : f32 to vector<32x648xf32>
    %22 = arith.cmpf oge, %12, %21 : vector<32x648xf32>
    %cst_18 = arith.constant 1.000000e+00 : f32
    %23 = vector.broadcast %cst_18 : f32 to vector<32x648xf32>
    %24 = arith.subf %23, %20 : vector<32x648xf32>
    %25 = arith.select %22, %20, %24 : vector<32x648xi1>, vector<32x648xf32>
    %26 = vector.broadcast %1 : vector<1x648xf32> to vector<32x648xf32>
    %27 = arith.mulf %25, %26 : vector<32x648xf32>
    %c0_19 = arith.constant 0 : index
    %c0_20 = arith.constant 0 : index
    %28 = vector.load %arg13[%c0_19, %c0_20] : memref<32x648xf32, #tpu.memory_space<vmem>>, vector<32x648xf32>
    tpu.vector_store %arg13[%c0_19, %c0_20], %27 {strides = array<i32>} : memref<32x648xf32, #tpu.memory_space<vmem>>, vector<32x648xf32>,
    %cst_21 = arith.constant 0.000000e+00 : f32
    %29 = vector.broadcast %cst_21 : f32 to vector<32x648xf32>
    %30 = arith.maximumf %12, %29 : vector<32x648xf32>
    %31 = math.log1p %16 : vector<32x648xf32>
    %32 = arith.addf %30, %31 : vector<32x648xf32>
    %33 = vector.broadcast %1 : vector<1x648xf32> to vector<32x648xf32>
    %34 = arith.mulf %32, %33 : vector<32x648xf32>
    %c0_22 = arith.constant 0 : index
    %c128 = arith.constant 128 : index
    %35 = vector.load %arg11[%c0_22, %c128] : memref<32x795xf32, #tpu.memory_space<vmem>>, vector<32x648xf32>
    tpu.vector_store %arg11[%c0_22, %c128], %34 {strides = array<i32>} : memref<32x795xf32, #tpu.memory_space<vmem>>, vector<32x648xf32>,
    %c0_23 = arith.constant 0 : index
    %c109 = arith.constant 109 : index
    %36 = vector.load %arg11[%c0_23, %c109] : memref<32x795xf32, #tpu.memory_space<vmem>>, vector<32x648xf32>
    %c0_24 = arith.constant 0 : index
    %c0_25 = arith.constant 0 : index
    %37 = vector.load %arg12[%c0_24, %c0_25] : memref<288x648xf32, #tpu.memory_space<vmem>>, vector<32x648xf32>
    tpu.vector_store %arg12[%c0_24, %c0_25], %36 {strides = array<i32>} : memref<288x648xf32, #tpu.memory_space<vmem>>, vector<32x648xf32>,
    %c0_26 = arith.constant 0 : index
    %c110 = arith.constant 110 : index
    %38 = vector.load %arg11[%c0_26, %c110] : memref<32x795xf32, #tpu.memory_space<vmem>>, vector<32x648xf32>
    %c32 = arith.constant 32 : index
    %c0_27 = arith.constant 0 : index
    %39 = vector.load %arg12[%c32, %c0_27] : memref<288x648xf32, #tpu.memory_space<vmem>>, vector<32x648xf32>
    tpu.vector_store %arg12[%c32, %c0_27], %38 {strides = array<i32>} : memref<288x648xf32, #tpu.memory_space<vmem>>, vector<32x648xf32>,
    %c0_28 = arith.constant 0 : index
    %c111 = arith.constant 111 : index
    %40 = vector.load %arg11[%c0_28, %c111] : memref<32x795xf32, #tpu.memory_space<vmem>>, vector<32x648xf32>
    %c64 = arith.constant 64 : index
    %c0_29 = arith.constant 0 : index
    %41 = vector.load %arg12[%c64, %c0_29] : memref<288x648xf32, #tpu.memory_space<vmem>>, vector<32x648xf32>
    tpu.vector_store %arg12[%c64, %c0_29], %40 {strides = array<i32>} : memref<288x648xf32, #tpu.memory_space<vmem>>, vector<32x648xf32>,
    %c0_30 = arith.constant 0 : index
    %c127 = arith.constant 127 : index
    %42 = vector.load %arg11[%c0_30, %c127] : memref<32x795xf32, #tpu.memory_space<vmem>>, vector<32x648xf32>
    %c96 = arith.constant 96 : index
    %c0_31 = arith.constant 0 : index
    %43 = vector.load %arg12[%c96, %c0_31] : memref<288x648xf32, #tpu.memory_space<vmem>>, vector<32x648xf32>
    tpu.vector_store %arg12[%c96, %c0_31], %42 {strides = array<i32>} : memref<288x648xf32, #tpu.memory_space<vmem>>, vector<32x648xf32>,
    %c0_32 = arith.constant 0 : index
    %c128_33 = arith.constant 128 : index
    %44 = vector.load %arg11[%c0_32, %c128_33] : memref<32x795xf32, #tpu.memory_space<vmem>>, vector<32x648xf32>
    %c128_34 = arith.constant 128 : index
    %c0_35 = arith.constant 0 : index
    %45 = vector.load %arg12[%c128_34, %c0_35] : memref<288x648xf32, #tpu.memory_space<vmem>>, vector<32x648xf32>
    tpu.vector_store %arg12[%c128_34, %c0_35], %44 {strides = array<i32>} : memref<288x648xf32, #tpu.memory_space<vmem>>, vector<32x648xf32>,
    %c0_36 = arith.constant 0 : index
    %c129 = arith.constant 129 : index
    %46 = vector.load %arg11[%c0_36, %c129] : memref<32x795xf32, #tpu.memory_space<vmem>>, vector<32x648xf32>
    %c160 = arith.constant 160 : index
    %c0_37 = arith.constant 0 : index
    %47 = vector.load %arg12[%c160, %c0_37] : memref<288x648xf32, #tpu.memory_space<vmem>>, vector<32x648xf32>
    tpu.vector_store %arg12[%c160, %c0_37], %46 {strides = array<i32>} : memref<288x648xf32, #tpu.memory_space<vmem>>, vector<32x648xf32>,
    %c0_38 = arith.constant 0 : index
    %c145 = arith.constant 145 : index
    %48 = vector.load %arg11[%c0_38, %c145] : memref<32x795xf32, #tpu.memory_space<vmem>>, vector<32x648xf32>
    %c192 = arith.constant 192 : index
    %c0_39 = arith.constant 0 : index
    %49 = vector.load %arg12[%c192, %c0_39] : memref<288x648xf32, #tpu.memory_space<vmem>>, vector<32x648xf32>
    tpu.vector_store %arg12[%c192, %c0_39], %48 {strides = array<i32>} : memref<288x648xf32, #tpu.memory_space<vmem>>, vector<32x648xf32>,
    %c0_40 = arith.constant 0 : index
    %c146 = arith.constant 146 : index
    %50 = vector.load %arg11[%c0_40, %c146] : memref<32x795xf32, #tpu.memory_space<vmem>>, vector<32x648xf32>
    %c224 = arith.constant 224 : index
    %c0_41 = arith.constant 0 : index
    %51 = vector.load %arg12[%c224, %c0_41] : memref<288x648xf32, #tpu.memory_space<vmem>>, vector<32x648xf32>
    tpu.vector_store %arg12[%c224, %c0_41], %50 {strides = array<i32>} : memref<288x648xf32, #tpu.memory_space<vmem>>, vector<32x648xf32>,
    %c0_42 = arith.constant 0 : index
    %c147 = arith.constant 147 : index
    %52 = vector.load %arg11[%c0_42, %c147] : memref<32x795xf32, #tpu.memory_space<vmem>>, vector<32x648xf32>
    %c256 = arith.constant 256 : index
    %c0_43 = arith.constant 0 : index
    %53 = vector.load %arg12[%c256, %c0_43] : memref<288x648xf32, #tpu.memory_space<vmem>>, vector<32x648xf32>
    tpu.vector_store %arg12[%c256, %c0_43], %52 {strides = array<i32>} : memref<288x648xf32, #tpu.memory_space<vmem>>, vector<32x648xf32>,
    %c0_44 = arith.constant 0 : index
    %c0_45 = arith.constant 0 : index
    %54 = vector.load %arg5[%c0_44, %c0_45] : memref<32x288xf32, #tpu.memory_space<vmem>>, vector<32x288xf32>
    %c0_46 = arith.constant 0 : index
    %c0_47 = arith.constant 0 : index
    %55 = vector.load %arg12[%c0_46, %c0_47] : memref<288x648xf32, #tpu.memory_space<vmem>>, vector<288x648xf32>
    %cst_48 = arith.constant dense<0.000000e+00> : vector<32x648xf32>
    %56 = tpu.matmul %54, %55, %cst_48 {dimension_numbers = #tpu.dot_dimension_numbers<[1], [0], [0], [1], [0, 0, 1, 1], [], []>} : vector<32x288xf32>, vector<288x648xf32>, vector<32x648xf32> -> vector<32x648xf32>
    %c0_49 = arith.constant 0 : index
    %c0_50 = arith.constant 0 : index
    %57 = vector.load %arg6[%c0_49, %c0_50] : memref<32x1xf32, #tpu.memory_space<vmem>>, vector<32x1xf32>
    %58 = vector.broadcast %57 : vector<32x1xf32> to vector<32x648xf32>
    %59 = arith.addf %56, %58 : vector<32x648xf32>
    %60 = arith.negf %59 : vector<32x648xf32>
    %61 = math.exp %60 : vector<32x648xf32>
    %cst_51 = arith.constant 1.000000e+00 : f32
    %62 = vector.broadcast %cst_51 : f32 to vector<32x648xf32>
    %63 = arith.addf %62, %61 : vector<32x648xf32>
    %64 = arith.divf %62, %63 : vector<32x648xf32>
    %c0_52 = arith.constant 0 : index
    %c0_53 = arith.constant 0 : index
    %65 = vector.load %arg7[%c0_52, %c0_53] : memref<32x1xf32, #tpu.memory_space<vmem>>, vector<32x1xf32>
    %66 = vector.broadcast %65 : vector<32x1xf32> to vector<32x648xf32>
    %67 = arith.mulf %64, %66 : vector<32x648xf32>
    %68 = vector.broadcast %1 : vector<1x648xf32> to vector<32x648xf32>
    %69 = arith.mulf %67, %68 : vector<32x648xf32>
    %c0_54 = arith.constant 0 : index
    %c128_55 = arith.constant 128 : index
    %70 = vector.load %arg11[%c0_54, %c128_55] : memref<32x795xf32, #tpu.memory_space<vmem>>, vector<32x648xf32>
    tpu.vector_store %arg11[%c0_54, %c128_55], %69 {strides = array<i32>} : memref<32x795xf32, #tpu.memory_space<vmem>>, vector<32x648xf32>,
    %c0_56 = arith.constant 0 : index
    %c109_57 = arith.constant 109 : index
    %71 = vector.load %arg11[%c0_56, %c109_57] : memref<32x795xf32, #tpu.memory_space<vmem>>, vector<32x648xf32>
    %c0_58 = arith.constant 0 : index
    %c0_59 = arith.constant 0 : index
    %72 = vector.load %arg12[%c0_58, %c0_59] : memref<288x648xf32, #tpu.memory_space<vmem>>, vector<32x648xf32>
    tpu.vector_store %arg12[%c0_58, %c0_59], %71 {strides = array<i32>} : memref<288x648xf32, #tpu.memory_space<vmem>>, vector<32x648xf32>,
    %c0_60 = arith.constant 0 : index
    %c110_61 = arith.constant 110 : index
    %73 = vector.load %arg11[%c0_60, %c110_61] : memref<32x795xf32, #tpu.memory_space<vmem>>, vector<32x648xf32>
    %c32_62 = arith.constant 32 : index
    %c0_63 = arith.constant 0 : index
    %74 = vector.load %arg12[%c32_62, %c0_63] : memref<288x648xf32, #tpu.memory_space<vmem>>, vector<32x648xf32>
    tpu.vector_store %arg12[%c32_62, %c0_63], %73 {strides = array<i32>} : memref<288x648xf32, #tpu.memory_space<vmem>>, vector<32x648xf32>,
    %c0_64 = arith.constant 0 : index
    %c111_65 = arith.constant 111 : index
    %75 = vector.load %arg11[%c0_64, %c111_65] : memref<32x795xf32, #tpu.memory_space<vmem>>, vector<32x648xf32>
    %c64_66 = arith.constant 64 : index
    %c0_67 = arith.constant 0 : index
    %76 = vector.load %arg12[%c64_66, %c0_67] : memref<288x648xf32, #tpu.memory_space<vmem>>, vector<32x648xf32>
    tpu.vector_store %arg12[%c64_66, %c0_67], %75 {strides = array<i32>} : memref<288x648xf32, #tpu.memory_space<vmem>>, vector<32x648xf32>,
    %c0_68 = arith.constant 0 : index
    %c127_69 = arith.constant 127 : index
    %77 = vector.load %arg11[%c0_68, %c127_69] : memref<32x795xf32, #tpu.memory_space<vmem>>, vector<32x648xf32>
    %c96_70 = arith.constant 96 : index
    %c0_71 = arith.constant 0 : index
    %78 = vector.load %arg12[%c96_70, %c0_71] : memref<288x648xf32, #tpu.memory_space<vmem>>, vector<32x648xf32>
    tpu.vector_store %arg12[%c96_70, %c0_71], %77 {strides = array<i32>} : memref<288x648xf32, #tpu.memory_space<vmem>>, vector<32x648xf32>,
    %c0_72 = arith.constant 0 : index
    %c128_73 = arith.constant 128 : index
    %79 = vector.load %arg11[%c0_72, %c128_73] : memref<32x795xf32, #tpu.memory_space<vmem>>, vector<32x648xf32>
    %c128_74 = arith.constant 128 : index
    %c0_75 = arith.constant 0 : index
    %80 = vector.load %arg12[%c128_74, %c0_75] : memref<288x648xf32, #tpu.memory_space<vmem>>, vector<32x648xf32>
    tpu.vector_store %arg12[%c128_74, %c0_75], %79 {strides = array<i32>} : memref<288x648xf32, #tpu.memory_space<vmem>>, vector<32x648xf32>,
    %c0_76 = arith.constant 0 : index
    %c129_77 = arith.constant 129 : index
    %81 = vector.load %arg11[%c0_76, %c129_77] : memref<32x795xf32, #tpu.memory_space<vmem>>, vector<32x648xf32>
    %c160_78 = arith.constant 160 : index
    %c0_79 = arith.constant 0 : index
    %82 = vector.load %arg12[%c160_78, %c0_79] : memref<288x648xf32, #tpu.memory_space<vmem>>, vector<32x648xf32>
    tpu.vector_store %arg12[%c160_78, %c0_79], %81 {strides = array<i32>} : memref<288x648xf32, #tpu.memory_space<vmem>>, vector<32x648xf32>,
    %c0_80 = arith.constant 0 : index
    %c145_81 = arith.constant 145 : index
    %83 = vector.load %arg11[%c0_80, %c145_81] : memref<32x795xf32, #tpu.memory_space<vmem>>, vector<32x648xf32>
    %c192_82 = arith.constant 192 : index
    %c0_83 = arith.constant 0 : index
    %84 = vector.load %arg12[%c192_82, %c0_83] : memref<288x648xf32, #tpu.memory_space<vmem>>, vector<32x648xf32>
    tpu.vector_store %arg12[%c192_82, %c0_83], %83 {strides = array<i32>} : memref<288x648xf32, #tpu.memory_space<vmem>>, vector<32x648xf32>,
    %c0_84 = arith.constant 0 : index
    %c146_85 = arith.constant 146 : index
    %85 = vector.load %arg11[%c0_84, %c146_85] : memref<32x795xf32, #tpu.memory_space<vmem>>, vector<32x648xf32>
    %c224_86 = arith.constant 224 : index
    %c0_87 = arith.constant 0 : index
    %86 = vector.load %arg12[%c224_86, %c0_87] : memref<288x648xf32, #tpu.memory_space<vmem>>, vector<32x648xf32>
    tpu.vector_store %arg12[%c224_86, %c0_87], %85 {strides = array<i32>} : memref<288x648xf32, #tpu.memory_space<vmem>>, vector<32x648xf32>,
    %c0_88 = arith.constant 0 : index
    %c147_89 = arith.constant 147 : index
    %87 = vector.load %arg11[%c0_88, %c147_89] : memref<32x795xf32, #tpu.memory_space<vmem>>, vector<32x648xf32>
    %c256_90 = arith.constant 256 : index
    %c0_91 = arith.constant 0 : index
    %88 = vector.load %arg12[%c256_90, %c0_91] : memref<288x648xf32, #tpu.memory_space<vmem>>, vector<32x648xf32>
    tpu.vector_store %arg12[%c256_90, %c0_91], %87 {strides = array<i32>} : memref<288x648xf32, #tpu.memory_space<vmem>>, vector<32x648xf32>,
    %c0_92 = arith.constant 0 : index
    %c0_93 = arith.constant 0 : index
    %89 = vector.load %arg8[%c0_92, %c0_93] : memref<32x288xf32, #tpu.memory_space<vmem>>, vector<32x288xf32>
    %c0_94 = arith.constant 0 : index
    %c0_95 = arith.constant 0 : index
    %90 = vector.load %arg12[%c0_94, %c0_95] : memref<288x648xf32, #tpu.memory_space<vmem>>, vector<288x648xf32>
    %cst_96 = arith.constant dense<0.000000e+00> : vector<32x648xf32>
    %91 = tpu.matmul %89, %90, %cst_96 {dimension_numbers = #tpu.dot_dimension_numbers<[1], [0], [0], [1], [0, 0, 1, 1], [], []>} : vector<32x288xf32>, vector<288x648xf32>, vector<32x648xf32> -> vector<32x648xf32>
    %c0_97 = arith.constant 0 : index
    %c0_98 = arith.constant 0 : index
    %92 = vector.load %arg13[%c0_97, %c0_98] : memref<32x648xf32, #tpu.memory_space<vmem>>, vector<32x648xf32>
    %93 = arith.mulf %91, %92 : vector<32x648xf32>
    %c0_99 = arith.constant 0 : index
    %c0_100 = arith.constant 0 : index
    %94 = vector.load %arg9[%c0_99, %c0_100] : memref<9x32xf32, #tpu.memory_space<vmem>>, vector<9x32xf32>
    %cst_101 = arith.constant dense<0.000000e+00> : vector<9x648xf32>
    %95 = tpu.matmul %94, %93, %cst_101 {dimension_numbers = #tpu.dot_dimension_numbers<[1], [0], [0], [1], [0, 0, 1, 1], [], []>} : vector<9x32xf32>, vector<32x648xf32>, vector<9x648xf32> -> vector<9x648xf32>
    %c0_102 = arith.constant 0 : index
    %c128_103 = arith.constant 128 : index
    %96 = vector.load %arg11[%c0_102, %c128_103] : memref<32x795xf32, #tpu.memory_space<vmem>>, vector<9x648xf32>
    tpu.vector_store %arg11[%c0_102, %c128_103], %95 {strides = array<i32>} : memref<32x795xf32, #tpu.memory_space<vmem>>, vector<9x648xf32>,
    %cst_104 = arith.constant 0.000000e+00 : f32
    %97 = vector.broadcast %cst_104 : f32 to vector<1x648xf32>
    %c0_105 = arith.constant 0 : index
    %c147_106 = arith.constant 147 : index
    %98 = vector.load %arg11[%c0_105, %c147_106] : memref<32x795xf32, #tpu.memory_space<vmem>>, vector<1x648xf32>
    %99 = arith.addf %97, %98 : vector<1x648xf32>
    %c1 = arith.constant 1 : index
    %c146_107 = arith.constant 146 : index
    %100 = vector.load %arg11[%c1, %c146_107] : memref<32x795xf32, #tpu.memory_space<vmem>>, vector<1x648xf32>
    %101 = arith.addf %99, %100 : vector<1x648xf32>
    %c2 = arith.constant 2 : index
    %c145_108 = arith.constant 145 : index
    %102 = vector.load %arg11[%c2, %c145_108] : memref<32x795xf32, #tpu.memory_space<vmem>>, vector<1x648xf32>
    %103 = arith.addf %101, %102 : vector<1x648xf32>
    %c3 = arith.constant 3 : index
    %c129_109 = arith.constant 129 : index
    %104 = vector.load %arg11[%c3, %c129_109] : memref<32x795xf32, #tpu.memory_space<vmem>>, vector<1x648xf32>
    %105 = arith.addf %103, %104 : vector<1x648xf32>
    %c4 = arith.constant 4 : index
    %c128_110 = arith.constant 128 : index
    %106 = vector.load %arg11[%c4, %c128_110] : memref<32x795xf32, #tpu.memory_space<vmem>>, vector<1x648xf32>
    %107 = arith.addf %105, %106 : vector<1x648xf32>
    %c5 = arith.constant 5 : index
    %c127_111 = arith.constant 127 : index
    %108 = vector.load %arg11[%c5, %c127_111] : memref<32x795xf32, #tpu.memory_space<vmem>>, vector<1x648xf32>
    %109 = arith.addf %107, %108 : vector<1x648xf32>
    %c6 = arith.constant 6 : index
    %c111_112 = arith.constant 111 : index
    %110 = vector.load %arg11[%c6, %c111_112] : memref<32x795xf32, #tpu.memory_space<vmem>>, vector<1x648xf32>
    %111 = arith.addf %109, %110 : vector<1x648xf32>
    %c7 = arith.constant 7 : index
    %c110_113 = arith.constant 110 : index
    %112 = vector.load %arg11[%c7, %c110_113] : memref<32x795xf32, #tpu.memory_space<vmem>>, vector<1x648xf32>
    %113 = arith.addf %111, %112 : vector<1x648xf32>
    %c8 = arith.constant 8 : index
    %c109_114 = arith.constant 109 : index
    %114 = vector.load %arg11[%c8, %c109_114] : memref<32x795xf32, #tpu.memory_space<vmem>>, vector<1x648xf32>
    %115 = arith.addf %113, %114 : vector<1x648xf32>
    %116 = vector.shape_cast %115 : vector<1x648xf32> to vector<1x1x648xf32>
    %c0_115 = arith.constant 0 : index
    %c0_116 = arith.constant 0 : index
    %c0_117 = arith.constant 0 : index
    %117 = vector.load %arg10[%c0_115, %c0_116, %c0_117] : memref<1x1x648xf32, #tpu.memory_space<vmem>>, vector<1x1x648xf32>
    tpu.vector_store %arg10[%c0_115, %c0_116, %c0_117], %116 {strides = array<i32>} : memref<1x1x648xf32, #tpu.memory_space<vmem>>, vector<1x1x648xf32>,
    return
  }
  func.func @transform_0(%arg0: i32) -> (i32, i32, i32) {
    %c0_i32 = arith.constant 0 : i32
    %c0_i32_0 = arith.constant 0 : i32
    %c0_i32_1 = arith.constant 0 : i32
    return %arg0, %c0_i32, %c0_i32_0 : i32, i32, i32
  }
  func.func @transform_1(%arg0: i32) -> (i32, i32, i32) {
    %c0_i32 = arith.constant 0 : i32
    %c0_i32_0 = arith.constant 0 : i32
    %c0_i32_1 = arith.constant 0 : i32
    %c0_i32_2 = arith.constant 0 : i32
    return %c0_i32, %c0_i32_0, %c0_i32_1 : i32, i32, i32
  }
  func.func @transform_2(%arg0: i32) -> (i32, i32) {
    %c0_i32 = arith.constant 0 : i32
    %c0_i32_0 = arith.constant 0 : i32
    %c0_i32_1 = arith.constant 0 : i32
    return %c0_i32, %c0_i32_0 : i32, i32
  }
  func.func @transform_3(%arg0: i32) -> (i32, i32) {
    %c0_i32 = arith.constant 0 : i32
    %c0_i32_0 = arith.constant 0 : i32
    %c0_i32_1 = arith.constant 0 : i32
    return %c0_i32, %c0_i32_0 : i32, i32
  }
  func.func @transform_4(%arg0: i32) -> (i32, i32) {
    %c0_i32 = arith.constant 0 : i32
    %c0_i32_0 = arith.constant 0 : i32
    %c0_i32_1 = arith.constant 0 : i32
    return %c0_i32, %c0_i32_0 : i32, i32
  }
  func.func @transform_5(%arg0: i32) -> (i32, i32) {
    %c0_i32 = arith.constant 0 : i32
    %c0_i32_0 = arith.constant 0 : i32
    %c0_i32_1 = arith.constant 0 : i32
    return %c0_i32, %c0_i32_0 : i32, i32
  }
  func.func @transform_6(%arg0: i32) -> (i32, i32) {
    %c0_i32 = arith.constant 0 : i32
    %c0_i32_0 = arith.constant 0 : i32
    %c0_i32_1 = arith.constant 0 : i32
    return %c0_i32, %c0_i32_0 : i32, i32
  }
  func.func @transform_7(%arg0: i32) -> (i32, i32) {
    %c0_i32 = arith.constant 0 : i32
    %c0_i32_0 = arith.constant 0 : i32
    %c0_i32_1 = arith.constant 0 : i32
    return %c0_i32, %c0_i32_0 : i32, i32
  }
  func.func @transform_8(%arg0: i32) -> (i32, i32) {
    %c0_i32 = arith.constant 0 : i32
    %c0_i32_0 = arith.constant 0 : i32
    %c0_i32_1 = arith.constant 0 : i32
    return %c0_i32, %c0_i32_0 : i32, i32
  }
  func.func @transform_9(%arg0: i32) -> (i32, i32, i32) {
    %c0_i32 = arith.constant 0 : i32
    %c0_i32_0 = arith.constant 0 : i32
    %c0_i32_1 = arith.constant 0 : i32
    return %arg0, %c0_i32, %c0_i32_0 : i32, i32, i32
  }
}

</mosaic_0001>

<bundles_post_ra>
// kernel: tpu_custom_call.1
= control target key start
LH: loop header
LB: loop body
LE: loop exit
PB: predicated region body
PF: predicated region fallthrough
CT: control target
= control target key end

     0   :  { %vm96_vm0 = vcmask 1040384   ;;  %v6480_v4 = vmov 0.0   ;;  %vm83_vm1 = vcmask 72704   ;;  %s10032_s0 = inlined_call_operand.vmem [shape: f32[1,9,648], index: 0, kind: input, shape index: {}]   ;;  %s10033_s1 = inlined_call_operand.vmem [shape: f32[1,1,648], index: 1, kind: input, shape index: {}]   ;;  %s10034_s2 = inlined_call_operand.vmem [shape: f32[32,9], index: 2, kind: input, shape index: {}]   ;;  %s10035_s3 = inlined_call_operand.vmem [shape: f32[32,1], index: 3, kind: input, shape index: {}]   ;;  %s10036_s4 = inlined_call_operand.vmem [shape: f32[32,288], index: 4, kind: input, shape index: {}]   ;;  %s10037_s5 = inlined_call_operand.vmem [shape: f32[32,1], index: 5, kind: input, shape index: {}]   ;;  %s10038_s6 = inlined_call_operand.vmem [shape: f32[32,1], index: 6, kind: input, shape index: {}]   ;;  %s10039_s7 = inlined_call_operand.vmem [shape: f32[32,288], index: 7, kind: input, shape index: {}]   ;;  %s10040_s8 = inlined_call_operand.vmem [shape: f32[9,32], index: 8, kind: input, shape index: {}]   ;;  %s10041_s9 = inlined_call_operand.hbm [shape: f32[1,1,648], index: 9, kind: output, shape index: {}]  }
   0x1   :  { %v54_v0 = vld [vmem:[%s10032_s0 + $0x38] sm:$0x1]  ;;  %v53_v1 = vld [vmem:[%s10032_s0 + $0x30] sm:$0x1]  ;;  %v48_v2 = vld [vmem:[%s10032_s0 + $0x8] sm:$0xff]  ;;  %34 = vst [vmem:[#allocation2] sm:$0xff] %v6480_v4  ;;  %179 = vmatprep.mubr.f32.mxu0 %v6480_v4  ;;  %197 = vmatprep.mubr.f32.mxu1 %v6480_v4 }
   0x2   :  { %6018 = vmatprep.subr.msk.mxu0 %vm96_vm0, %v54_v0  ;;  %6090 = vmatprep.subr.msk.mxu1 %vm96_vm0, %v54_v0  ;;  %v47_v3 = vld [vmem:[%s10032_s0] sm:$0xff]  ;;  %35 = vst [vmem:[#allocation2 + $0x38] sm:$0xff] %v6480_v4  ;;  %v46_v6 = vld [vmem:[%s10034_s2 + $0x18] sm:$0xff]  ;;  %v56_v7 = vld [vmem:[%s10032_s0 + $0x48] sm:$0x1] }
   0x3   :  { %6019 = vmatpush1.msk.msra.mxu0 %vm96_vm0, %v53_v1  ;;  %6092 = vmatpush1.msk.msra.mxu1 %vm96_vm0, %v53_v1  ;;  %v43_v5 = vld [vmem:[%s10034_s2] sm:$0xff]  ;;  %v50_v9 = vld [vmem:[%s10032_s0 + $0x18] sm:$0xff] }
   0x4   :  { %145 = vmatprep.subr.mxu0 %v48_v2  ;;  %6091 = vmatprep.subr.mxu1 %v48_v2  ;;  %v55_v8 = vld [vmem:[%s10032_s0 + $0x40] sm:$0x1]  ;;  %v58_v10 = vld [vmem:[%s10032_s0 + $0x58] sm:$0x1] }
   0x5   :  { %146 = vmatpush1.msra.mxu0 %v47_v3  ;;  %6093 = vmatpush1.msra.mxu1 %v47_v3 }
   0x6   :  { %6020 = vmatmul.mubr.msk.f32.vlgmr.msra.gmra.mxu0 %vm83_vm1, %v43_v5  ;;  %6023 = vmatmul.mubr.msk.f32.vlgmr.msra.gmra.mxu1 %vm83_vm1, %v46_v6 }
   0x7   :  { %14 = vsyncpa [#allocation6], 0  ;;  %6024 = vmatprep.subr.msk.mxu1 %vm96_vm0, %v56_v7  ;;  %185 = vmatprep.mubr.f32.mxu0 %v6480_v4  ;;  %v49_v11 = vld [vmem:[%s10032_s0 + $0x10] sm:$0xff]  ;;  %v44_v12 = vld [vmem:[%s10034_s2 + $0x8] sm:$0xff]  ;;  %v6481_v17 = vmov 0   ;;  %vm38_vm2 = vcmask 220224   ;;  %v10042_v46 = vlaneseq }
   0x8   :  { %6025 = vmatpush1.msk.msra.mxu1 %vm96_vm0, %v55_v8  ;;  %268 = vmatprep.mubr.f32.mxu1 %v6480_v4  ;;  %v57_v13 = vld [vmem:[%s10032_s0 + $0x50] sm:$0x1]  ;;  %v52_v14 = vld [vmem:[%s10032_s0 + $0x28] sm:$0xff]  ;;  %v51_v16 = vld [vmem:[%s10032_s0 + $0x20] sm:$0xff]  ;;  %39 = vst.msk [vmem:[#allocation2 + $0x30] sm:$0xff] %vm38_vm2, %v6480_v4  ;;  %s6483_s26 = smov 17  }
   0x9   :  { %234 = vmatprep.subr.mxu1 %v50_v9  ;;  %6030 = vmatprep.subr.msk.mxu0 %vm96_vm0, %v58_v10  ;;  %v45_v15 = vld [vmem:[%s10034_s2 + $0x10] sm:$0xff]  ;;  %v62_v18 = vld [vmem:[%s10035_s3 + $0x18] sm:$0xff]  ;;  %v60_v19 = vld [vmem:[%s10035_s3 + $0x8] sm:$0xff]  ;;  %40 = vst.msk [vmem:[#allocation2 + $0x68] sm:$0xff] %vm38_vm2, %v6480_v4  ;;  %s6484_s27 = smov 18   ;;  %s6485_s28 = smov 19  }
   0xa   :  { %235 = vmatpush1.msra.mxu1 %v49_v11  ;;  %6021 = vmatmul.mubr.msk.f32.gmra.mxu0 %vm83_vm1, %v44_v12  ;;  %v61_v20 = vld [vmem:[%s10035_s3 + $0x10] sm:$0xff]  ;;  %v59_v21 = vld [vmem:[%s10035_s3] sm:$0xff]  ;;  %41 = vst.msk [vmem:[#allocation2 + $0xa0] sm:$0xff] %vm38_vm2, %v6480_v4  ;;  %42 = vst.msk [vmem:[#allocation2 + $0xd8] sm:$0xff] %vm38_vm2, %v6480_v4  ;;  %s6482_s3 = smov 1   ;;  %v6696_v59 = vshrl.u32 %v10042_v46, 7 }
   0xb   :  { %6026 = vmatmul.mubr.msk.f32.vlgmr.msra.gmra.mxu1 %vm83_vm1, %v43_v5  ;;  %191 = vmatprep.mubr.f32.mxu0 %v6480_v4  ;;  %s6487_s10 = smov 111   ;;  %s6488_s11 = smov 127  }
   0xc   :  { %274 = vmatprep.mubr.f32.mxu1 %v6480_v4  ;;  %6031 = vmatpush1.msk.msra.mxu0 %vm96_vm0, %v57_v13  ;;  %v625_v7 = vsub.s32 0, %v6696_v59  ;;  %v629_v8 = vsub.s32 1, %v6696_v59  ;;  %v633_v9 = vsub.s32 2, %v6696_v59  ;;  %s6489_s12 = smov 110   ;;  %s6492_s20 = smov 20  }
   0xd   :  { %323 = vmatprep.subr.mxu0 %v52_v14  ;;  %6111 = vset.pattern.permute.xlu1 %v6481_v17  ;;  %v637_v14 = vsub.s32 3, %v6696_v59  ;;  %s6494_s21 = smov 38  }
   0xe   :  { %6022 = vmatmul.mubr.msk.f32.gmra.mxu0 %vm83_vm1, %v45_v15  ;;  %6110 = vset.pattern.permute.xlu0 %v6481_v17 }
   0xf   :  { %6027 = vmatmul.mubr.msk.f32.gmra.mxu1 %vm83_vm1, %v44_v12  ;;  %324 = vmatpush1.msra.mxu0 %v51_v16 }
  0x10   :  { %280 = vmatprep.mubr.f32.mxu1 %v6480_v4  ;;  %357 = vmatprep.mubr.f32.mxu0 %v6480_v4 }
  0x11   :  { %80 = vperm.xlu0 %6110, %v62_v18   ;;  %70 = vperm.xlu1 %6111, %v60_v19  }
  0x12   :  { %6032 = vmatmul.mubr.msk.f32.vlgmr.msra.gmra.mxu0 %vm83_vm1, %v43_v5 }
  0x13   :  { %6028 = vmatmul.mubr.msk.f32.gmra.mxu1 %vm83_vm1, %v45_v15  ;;  %363 = vmatprep.mubr.f32.mxu0 %v6480_v4 }
  0x14   :  { %286 = vmatprep.mubr.f32.mxu1 %v6480_v4 }
  0x15   :  { %75 = vperm.xlu0 %6110, %v61_v20   ;;  %65 = vperm.xlu1 %6111, %v59_v21  }
  0x16   :  { %6033 = vmatmul.mubr.msk.f32.gmra.mxu0 %vm83_vm1, %v44_v12  ;;  %v6717_v12 = vld [vmem:[%s10033_s1] sm:$0x3f]  ;;  %s6486_s1 = smov 109  }
  0x17   :  { %6029 = vmatmul.mubr.msk.f32.gmra.mxu1 %vm83_vm1, %v46_v6  ;;  %369 = vmatprep.mubr.f32.mxu0 %v6480_v4  ;;  %v6728_v21 = vrot.slane %v6717_v12, %v625_v7 }
  0x19   :  { %6113 = vrot.lane.b32.xlu0 %v6480_v4, %s6482_s3  ;;  %6118 = vrot.lane.b32.xlu1 %v6480_v4, %s6482_s3  ;;  %10131 = vst [vmem:[#allocation8_spill] sm:$0xff] %v6728_v21 }
  0x1a   :  { %6034 = vmatmul.mubr.msk.f32.gmra.mxu0 %vm83_vm1, %v45_v15 }
  0x1b   :  { %375 = vmatprep.mubr.f32.mxu0 %v6480_v4 }
  0x1d   :  { %6123 = vrot.lane.b32.xlu0 %v6480_v4, %s6483_s26  ;;  %6128 = vrot.lane.b32.xlu1 %v6480_v4, %s6483_s26 }
  0x1e   :  { %6035 = vmatmul.mubr.msk.f32.gmra.mxu0 %vm83_vm1, %v46_v6 }
  0x1f   :  { %2820 = vmatprep.mubr.f32.mxu0 %v6480_v4 }
  0x21   :  { %6133 = vrot.lane.b32.xlu0 %v6480_v4, %s6484_s27  ;;  %6138 = vrot.lane.b32.xlu1 %v6480_v4, %s6484_s27 }
  0x25   :  { %6143 = vrot.lane.b32.xlu0 %v6480_v4, %s6485_s28  ;;  %6148 = vrot.lane.b32.xlu1 %v6480_v4, %s6485_s28 }
  0x8c   :  { %v6645_v22 = vpop.permute.xlu1 %70  ;;  %v6653_v24 = vpop.permute.xlu0 %80 }
  0x90   :  { %v6651_v23 = vpop.permute.xlu1 %65  ;;  %v6698_v61 = vpop.permute.xlu0 %75 }
  0xc6   :  { %v181_v25 = vpop.f32.mrf.mxu0  ;;  %v199_v26 = vpop.f32.mrf.mxu1 }
  0xc7   :  { %v6656_v27 = vadd.f32 %v181_v25, %v6651_v23  ;;  %v6659_v28 = vadd.f32 %v199_v26, %v6653_v24  ;;  %v6731_v25 = vrot.slane %v6717_v12, %v629_v8  ;;  %v6734_v26 = vrot.slane %v6717_v12, %v633_v9 }
  0xc8   :  { %v183_v29 = vpop.f32.mrf.mxu0  ;;  %v201_v30 = vpop.f32.mrf.mxu1 }
  0xc9   :  { %v382_v31 = vand.u32 2147483647, %v6656_v27  ;;  %v400_v32 = vand.u32 2147483647, %v6659_v28  ;;  %v6668_v33 = vadd.f32 %v183_v29, %v6651_v23  ;;  %v6671_v34 = vadd.f32 %v201_v30, %v6653_v24  ;;  %10132 = vst [vmem:[#allocation9_spill] sm:$0xff] %v6731_v25  ;;  %10133 = vst [vmem:[#allocation10_spill] sm:$0xff] %v6734_v26 }
  0xca   :  { %v187_v35 = vpop.f32.mrf.mxu0  ;;  %v702_v30 = vmax.f32 %v6656_v27, 0.0  ;;  %vm550_vm3 = vcmp.ge.f32.partialorder %v6656_v27, 0.0  ;;  %vm568_vm5 = vcmp.ge.f32.partialorder %v6659_v28, 0.0 }
  0xcb   :  { %v406_v36 = vsub.f32 0.0, %v382_v31  ;;  %v424_v37 = vsub.f32 0.0, %v400_v32  ;;  %v6674_v38 = vadd.f32 %v187_v35, %v6645_v22  ;;  %v270_v39 = vpop.f32.mrf.mxu1  ;;  %v383_v40 = vand.u32 2147483647, %v6668_v33 }
  0xcc   :  { %v401_v41 = vand.u32 2147483647, %v6671_v34  ;;  %v189_v42 = vpop.f32.mrf.mxu0  ;;  %v6684_v50 = vadd.f32 %v270_v39, %v6651_v23  ;;  %v6738_v31 = vrot.slane %v6717_v12, %v637_v14  ;;  %vm551_vm7 = vcmp.ge.f32.partialorder %v6668_v33, 0.0 }
  0xcd   :  { %v430_v43 = vmul.f32 1.442695, %v406_v36  ;;  %v466_v44 = vmul.f32 1.442695, %v424_v37  ;;  %v272_v45 = vpop.f32.mrf.mxu1  ;;  %v407_v47 = vsub.f32 0.0, %v383_v40  ;;  %v6687_v51 = vadd.f32 %v189_v42, %v6645_v22 }
  0xce   :  { %v425_v48 = vsub.f32 0.0, %v401_v41  ;;  %v388_v49 = vand.u32 2147483647, %v6674_v38  ;;  %v384_v55 = vand.u32 2147483647, %v6684_v50  ;;  %v193_v57 = vpop.f32.mrf.mxu0  ;;  %v6701_v0 = vadd.f32 %v272_v45, %v6651_v23  ;;  %10134 = vst [vmem:[#allocation11_spill] sm:$0xff] %v6738_v31 }
  0xcf   :  { %6192 = vpow2.f32 %v430_v43  ;;  %v432_v52 = vmul.f32 1.442695, %v407_v47  ;;  %v389_v56 = vand.u32 2147483647, %v6687_v51  ;;  %v276_v58 = vpop.f32.mrf.mxu1  ;;  %v6704_v1 = vadd.f32 %v193_v57, %v6698_v61 }
  0xd0   :  { %6194 = vpow2.f32 %v466_v44  ;;  %v468_v53 = vmul.f32 1.442695, %v425_v48  ;;  %v412_v54 = vsub.f32 0.0, %v388_v49  ;;  %v408_v62 = vsub.f32 0.0, %v384_v55  ;;  %v195_v6 = vpop.f32.mrf.mxu0 }
  0xd1   :  { %6196 = vpow2.f32 %v432_v52  ;;  %v413_v63 = vsub.f32 0.0, %v389_v56  ;;  %v6707_v2 = vadd.f32 %v276_v58, %v6645_v22  ;;  %v385_v5 = vand.u32 2147483647, %v6701_v0  ;;  %v278_v11 = vpop.f32.mrf.mxu1 }
  0xd2   :  { %v442_v60 = vmul.f32 1.442695, %v412_v54  ;;  %6198 = vpow2.f32 %v468_v53  ;;  %v434_v3 = vmul.f32 1.442695, %v408_v62  ;;  %v394_v10 = vand.u32 2147483647, %v6704_v1  ;;  %v359_v56 = vpop.f32.mrf.mxu0 }
  0xd3   :  { %v444_v4 = vmul.f32 1.442695, %v413_v63  ;;  %v409_v13 = vsub.f32 0.0, %v385_v5  ;;  %v390_v15 = vand.u32 2147483647, %v6707_v2  ;;  %v6722_v17 = vadd.f32 %v195_v6, %v6698_v61  ;;  %v282_v49 = vpop.f32.mrf.mxu1 }
  0xd4   :  { %6200 = vpow2.f32 %v442_v60  ;;  %v418_v16 = vsub.f32 0.0, %v394_v10  ;;  %v6725_v20 = vadd.f32 %v278_v11, %v6645_v22  ;;  %v720_v36 = vmax.f32 %v6659_v28, 0.0 }
  0xd5   :  { %6202 = vpow2.f32 %v434_v3  ;;  %v436_v18 = vmul.f32 1.442695, %v409_v13  ;;  %v414_v19 = vsub.f32 0.0, %v390_v15  ;;  %v703_v37 = vmax.f32 %v6668_v33, 0.0 }
  0xd6   :  { %6204 = vpow2.f32 %v444_v4  ;;  %v454_v29 = vmul.f32 1.442695, %v418_v16  ;;  %v395_v39 = vand.u32 2147483647, %v6722_v17  ;;  %v391_v44 = vand.u32 2147483647, %v6725_v20 }
  0xd7   :  { %6206 = vpow2.f32 %v436_v18  ;;  %v446_v32 = vmul.f32 1.442695, %v414_v19  ;;  %v6755_v5 = vadd.f32 %v282_v49, %v6698_v61  ;;  %v6759_v8 = vadd.f32 %v359_v56, %v6651_v23 }
  0xd8   :  { %6208 = vpow2.f32 %v454_v29  ;;  %v419_v62 = vsub.f32 0.0, %v395_v39  ;;  %v415_v4 = vsub.f32 0.0, %v391_v44  ;;  %vm569_vm9 = vcmp.ge.f32.partialorder %v6671_v34, 0.0 }
  0xd9   :  { %6210 = vpow2.f32 %v446_v32  ;;  %vm556_vm11 = vcmp.ge.f32.partialorder %v6674_v38, 0.0  ;;  %vm552_vm13 = vcmp.ge.f32.partialorder %v6684_v50, 0.0  ;;  %vm557_vm15 = vcmp.ge.f32.partialorder %v6687_v51, 0.0 }
  0xda   :  { %v6768_v29 = vmul.f32 1.442695, %v419_v62  ;;  %v6770_v32 = vmul.f32 1.442695, %v415_v4  ;;  %vm553_vm1 = vcmp.ge.f32.partialorder %v6701_v0, 0.0 }
  0xdc   :  { %v6193_v35 = vpop.eup %6192 }
  0xdd   :  { %v6195_v40 = vpop.eup %6194  ;;  %v478_v41 = vadd.f32 1.0, %v6193_v35  ;;  %v729_v45 = vmul.f32 -0.5, %v6193_v35  ;;  %v732_v9 = vand.u32 2147483647, %v6193_v35 }
  0xde   :  { %v496_v47 = vadd.f32 1.0, %v6195_v40  ;;  %v6197_v52 = vpop.eup %6196  ;;  %v891_v53 = vmul.f32 -0.5, %v6195_v40  ;;  %v894_v14 = vand.u32 2147483647, %v6195_v40 }
  0xdf   :  { %6212 = vrcp.f32 %v478_v41  ;;  %v6749_v57 = vpop.eup %6198  ;;  %v479_v58 = vadd.f32 1.0, %v6197_v52  ;;  %v738_v3 = vmul.f32 -0.5, %v6197_v52  ;;  %v730_v6 = vadd.f32 1.0, %v729_v45 }
  0xe0   :  { %6214 = vlog2.f32 %v478_v41  ;;  %v497_v7 = vadd.f32 1.0, %v6749_v57  ;;  %v892_v10 = vadd.f32 1.0, %v891_v53  ;;  %v900_v11 = vmul.f32 -0.5, %v6749_v57 }
  0xe1   :  { %v6752_v63 = vpop.eup %6200  ;;  %6216 = vrcp.f32 %v496_v47  ;;  %v739_v19 = vadd.f32 1.0, %v738_v3  ;;  %v6773_v39 = vmul.f32 %v6193_v35, %v730_v6  ;;  %v741_v41 = vand.u32 2147483647, %v6197_v52 }
  0xe2   :  { %6218 = vlog2.f32 %v496_v47  ;;  %v6762_v13 = vpop.eup %6202  ;;  %v484_v15 = vadd.f32 1.0, %v6752_v63  ;;  %v783_v16 = vmul.f32 -0.5, %v6752_v63  ;;  %vm6776_vm4 = vcmp.lt.f32.partialorder %v732_v9, 0.0004427343 }
  0xe3   :  { %6220 = vrcp.f32 %v479_v58  ;;  %v6766_v18 = vpop.eup %6204  ;;  %v480_v44 = vadd.f32 1.0, %v6762_v13  ;;  %v6780_v47 = vmul.f32 %v6195_v40, %v892_v10  ;;  %v901_v49 = vadd.f32 1.0, %v900_v11 }
  0xe4   :  { %6222 = vlog2.f32 %v479_v58  ;;  %v747_v53 = vmul.f32 -0.5, %v6762_v13  ;;  %v6783_v56 = vpop.eup %6206  ;;  %v784_v35 = vadd.f32 1.0, %v783_v16  ;;  %v485_v58 = vadd.f32 1.0, %v6766_v18 }
  0xe5   :  { %6224 = vrcp.f32 %v497_v7  ;;  %v792_v62 = vmul.f32 -0.5, %v6766_v18  ;;  %v6788_v3 = vpop.eup %6208  ;;  %vm6790_vm6 = vcmp.lt.f32.partialorder %v894_v14, 0.0004427343  ;;  %v6794_v40 = vmul.f32 %v6197_v52, %v739_v19 }
  0xe6   :  { %6226 = vlog2.f32 %v497_v7  ;;  %v903_v6 = vand.u32 2147483647, %v6749_v57  ;;  %v748_v7 = vadd.f32 1.0, %v747_v53  ;;  %v481_v10 = vadd.f32 1.0, %v6783_v56 }
  0xe7   :  { %6228 = vrcp.f32 %v484_v15  ;;  %v793_v9 = vadd.f32 1.0, %v792_v62  ;;  %v756_v11 = vmul.f32 -0.5, %v6783_v56  ;;  %vm6802_vm8 = vcmp.lt.f32.partialorder %v741_v41, 0.0004427343 }
  0xe8   :  { %6230 = vlog2.f32 %v484_v15  ;;  %v6800_v15 = vpop.eup %6210  ;;  %v6807_v52 = vmul.f32 %v6749_v57, %v901_v49  ;;  %v786_v16 = vand.u32 2147483647, %v6752_v63  ;;  %v750_v19 = vand.u32 2147483647, %v6762_v13 }
  0xe9   :  { %6232 = vrcp.f32 %v480_v44  ;;  %v6813_v53 = vmul.f32 %v6752_v63, %v784_v35  ;;  %v795_v41 = vand.u32 2147483647, %v6766_v18  ;;  %v490_v62 = vadd.f32 1.0, %v6788_v3 }
  0xea   :  { %6234 = vlog2.f32 %v480_v44  ;;  %vm6817_vm10 = vcmp.lt.f32.partialorder %v903_v6, 0.0004427343  ;;  %v6822_v49 = vmul.f32 %v6762_v13, %v748_v7  ;;  %v757_v55 = vadd.f32 1.0, %v756_v11 }
  0xeb   :  { %6236 = vrcp.f32 %v485_v58  ;;  %v6826_v63 = vmul.f32 %v6766_v18, %v793_v9  ;;  %v759_v35 = vand.u32 2147483647, %v6783_v56  ;;  %vm6831_vm12 = vcmp.lt.f32.partialorder %v786_v16, 0.0004427343 }
  0xec   :  { %v6213_v44 = vpop.eup %6212  ;;  %6238 = vlog2.f32 %v485_v58  ;;  %vm6847_vm14 = vcmp.lt.f32.partialorder %v750_v19, 0.0004427343  ;;  %vm6865_vm0 = vcmp.lt.f32.partialorder %v795_v41, 0.0004427343  ;;  %v486_v28 = vadd.f32 1.0, %v6800_v15 }
  0xed   :  { %v6215_v46 = vpop.eup %6214  ;;  %v574_v60 = vsub.f32 1.0, %v6213_v44  ;;  %6240 = vrcp.f32 %v481_v10  ;;  %vm6880_vm2 = vcmp.lt.f32.partialorder %v759_v35, 0.0004427343  ;;  %v10151_v35 = vmax.f32 %v6671_v34, 0.0 }
  0xee   :  { %v6217_v54 = vpop.eup %6216  ;;  %v728_v48 = vmul.f32 0.6931472, %v6215_v46  ;;  %6242 = vlog2.f32 %v481_v10  ;;  %v6836_v46 = vmul.f32 -0.5, %v6788_v3  ;;  %v10152_v34 = vmax.f32 %v6674_v38, 0.0 }
  0xef   :  { %v6219_v58 = vpop.eup %6218  ;;  %v598_v6 = vsel %vm550_vm3, %v6213_v44, %v574_v60  ;;  %v592_v43 = vsub.f32 1.0, %v6217_v54  ;;  %6244 = vrcp.f32 %v490_v62  ;;  %vm562_vm3 = vcmp.ge.f32.partialorder %v6704_v1, 0.0 }
  0xf0   :  { %v6221_v7 = vpop.eup %6220  ;;  %v653_v18 = vmul.f32 %v6728_v21, %v598_v6  ;;  %v734_v9 = vsel %vm6776_vm4, %v6773_v39, %v728_v48  ;;  %v890_v10 = vmul.f32 0.6931472, %v6219_v58  ;;  %6246 = vlog2.f32 %v490_v62 }
  0xf1   :  { %v6223_v60 = vpop.eup %6222  ;;  %v942_v11 = vadd.f32 %v734_v9, %v702_v30  ;;  %v616_v16 = vsel %vm568_vm5, %v6217_v54, %v592_v43  ;;  %v575_v44 = vsub.f32 1.0, %v6221_v7  ;;  %v6852_v6 = vmul.f32 %v6783_v56, %v757_v55 }
  0xf2   :  { %v6225_v48 = vpop.eup %6224  ;;  %677 = vst [vmem:[#allocation4] sm:$0xff] %v653_v18  ;;  %v671_v39 = vmul.f32 %v6728_v21, %v616_v16  ;;  %v896_v27 = vsel %vm6790_vm6, %v6780_v47, %v890_v10  ;;  %v737_v30 = vmul.f32 0.6931472, %v6223_v60  ;;  %v840_v43 = vand.u32 2147483647, %v6788_v3 }
  0xf3   :  { %v6227_v54 = vpop.eup %6226  ;;  %v966_v45 = vmul.f32 %v942_v11, %v6728_v21  ;;  %v960_v55 = vadd.f32 %v896_v27, %v720_v36  ;;  %v599_v56 = vsel %vm551_vm7, %v6221_v7, %v575_v44  ;;  %v593_v19 = vsub.f32 1.0, %v6225_v48 }
  0xf4   :  { %v6229_v47 = vpop.eup %6228  ;;  %696 = vst [vmem:[#allocation4 + $0x90] sm:$0xff] %v671_v39  ;;  %v654_v4 = vmul.f32 %v6731_v25, %v599_v56  ;;  %v743_v58 = vsel %vm6802_vm8, %v6794_v40, %v737_v30  ;;  %v899_v18 = vmul.f32 0.6931472, %v6227_v54  ;;  %6248 = vrcp.f32 %v486_v28 }
  0xf5   :  { %v6231_v36 = vpop.eup %6230  ;;  %990 = vst [vmem:[#allocation2 + $0x8] sm:$0xff] %v966_v45  ;;  %v984_v41 = vmul.f32 %v960_v55, %v6728_v21  ;;  %v943_v7 = vadd.f32 %v743_v58, %v703_v37  ;;  %v617_v9 = vsel %vm569_vm9, %v6225_v48, %v593_v19  ;;  %v580_v10 = vsub.f32 1.0, %v6229_v47 }
  0xf6   :  { %v6233_v40 = vpop.eup %6232  ;;  %678 = vst [vmem:[#allocation4 + $0x8] sm:$0xff] %v654_v4  ;;  %v672_v14 = vmul.f32 %v6731_v25, %v617_v9  ;;  %v905_v11 = vsel %vm6817_vm10, %v6807_v52, %v899_v18  ;;  %v782_v16 = vmul.f32 0.6931472, %v6231_v36  ;;  %6250 = vlog2.f32 %v486_v28 }
  0xf7   :  { %v6235_v33 = vpop.eup %6234  ;;  %1008 = vst [vmem:[#allocation2 + $0xb0] sm:$0xff] %v984_v41  ;;  %v967_v37 = vmul.f32 %v943_v7, %v6731_v25  ;;  %v961_v44 = vadd.f32 %v905_v11, %v10151_v35  ;;  %v604_v48 = vsel %vm556_vm11, %v6229_v47, %v580_v10  ;;  %v576_v39 = vsub.f32 1.0, %v6233_v40 }
  0xf8   :  { %v6237_v27 = vpop.eup %6236  ;;  %697 = vst [vmem:[#allocation4 + $0x98] sm:$0xff] %v672_v14  ;;  %v659_v57 = vmul.f32 %v6728_v21, %v604_v48  ;;  %v788_v52 = vsel %vm6831_vm12, %v6813_v53, %v782_v16  ;;  %v746_v30 = vmul.f32 0.6931472, %v6235_v33  ;;  %v838_v58 = vadd.f32 1.0, %v6836_v46 }
  0xf9   :  { %v6239_v54 = vpop.eup %6238  ;;  %991 = vst [vmem:[#allocation2 + $0x10] sm:$0xff] %v967_v37  ;;  %v985_v45 = vmul.f32 %v961_v44, %v6731_v25  ;;  %v948_v55 = vadd.f32 %v788_v52, %v10152_v34  ;;  %v600_v56 = vsel %vm552_vm13, %v6233_v40, %v576_v39  ;;  %v581_v19 = vsub.f32 1.0, %v6237_v27  ;;  %v284_v44 = vpop.f32.mrf.mxu1 }
  0xfa   :  { %v6241_v47 = vpop.eup %6240  ;;  %684 = vst [vmem:[#allocation4 + $0x30] sm:$0xff] %v659_v57  ;;  %v655_v4 = vmul.f32 %v6734_v26, %v600_v56  ;;  %v752_v53 = vsel %vm6847_vm14, %v6822_v49, %v746_v30  ;;  %v791_v13 = vmul.f32 0.6931472, %v6239_v54  ;;  %v10153_v28 = vmax.f32 %v6684_v50, 0.0  ;;  %v361_v54 = vpop.f32.mrf.mxu0 }
  0xfb   :  { %v6243_v18 = vpop.eup %6242  ;;  %1009 = vst [vmem:[#allocation2 + $0xb8] sm:$0xff] %v985_v45  ;;  %v972_v38 = vmul.f32 %v948_v55, %v6728_v21  ;;  %v605_v41 = vsel %vm557_vm15, %v6237_v27, %v581_v19  ;;  %v577_v7 = vsub.f32 1.0, %v6241_v47  ;;  %v801_v46 = vmul.f32 -0.5, %v6800_v15  ;;  %v288_v55 = vpop.f32.mrf.mxu1 }
  0xfc   :  { %v944_v36 = vadd.f32 %v752_v53, %v10153_v28  ;;  %v6245_v9 = vpop.eup %6244  ;;  %679 = vst [vmem:[#allocation4 + $0x10] sm:$0xff] %v655_v4  ;;  %v660_v10 = vmul.f32 %v6731_v25, %v605_v41  ;;  %v797_v42 = vsel %vm6865_vm0, %v6826_v63, %v791_v13  ;;  %v755_v49 = vmul.f32 0.6931472, %v6243_v18  ;;  %v6949_v56 = vld [vmem:[#allocation2 + $0x8] sm:$0xff] }
  0xfd   :  { %v6247_v40 = vpop.eup %6246  ;;  %996 = vst [vmem:[#allocation2 + $0x40] sm:$0xff] %v972_v38  ;;  %v10154_v14 = vmax.f32 %v6687_v51, 0.0  ;;  %v601_v16 = vsel %vm553_vm1, %v6241_v47, %v577_v7  ;;  %v586_v33 = vsub.f32 1.0, %v6245_v9  ;;  %v839_v35 = vmul.f32 %v6788_v3, %v838_v58 }
  0xfe   :  { %v968_v50 = vmul.f32 %v944_v36, %v6734_v26  ;;  %685 = vst [vmem:[#allocation4 + $0x38] sm:$0xff] %v660_v10  ;;  %v656_v37 = vmul.f32 %v6738_v31, %v601_v16  ;;  %v761_v63 = vsel %vm6880_vm2, %v6852_v6, %v755_v49  ;;  %v836_v62 = vmul.f32 0.6931472, %v6247_v40  ;;  %v6928_v48 = vld [vmem:[#allocation2 + $0xb0] sm:$0xff]  ;;  %v365_v49 = vpop.f32.mrf.mxu0 }
  0xff   :  { %v949_v11 = vadd.f32 %v797_v42, %v10154_v14  ;;  %v10155_v39 = vmax.f32 %v6701_v0, 0.0  ;;  %v610_v57 = vsel %vm562_vm3, %v6245_v9, %v586_v33  ;;  %vm841_vm4 = vcmp.lt.f32.partialorder %v840_v43, 0.0004427343  ;;  %2321 = vrot.lane.b32.xlu1 %v6928_v48, %s6486_s1  ;;  %1609 = vrot.lane.b32.xlu0 %v6928_v48, %s6482_s3 }
 0x100   :  { %992 = vst [vmem:[#allocation2 + $0x18] sm:$0xff] %v968_v50  ;;  %680 = vst [vmem:[#allocation4 + $0x18] sm:$0xff] %v656_v37  ;;  %v665_v6 = vmul.f32 %v6728_v21, %v610_v57  ;;  %v842_v60 = vsel %vm841_vm4, %v839_v35, %v836_v62  ;;  %6252 = vpow2.f32 %v6768_v29  ;;  %v396_v0 = vand.u32 2147483647, %v6755_v5  ;;  %v367_v62 = vpop.f32.mrf.mxu0 }
 0x101   :  { %v973_v51 = vmul.f32 %v949_v11, %v6731_v25  ;;  %v945_v27 = vadd.f32 %v761_v63, %v10155_v39  ;;  %v10156_v3 = vmax.f32 %v6704_v1, 0.0  ;;  %v802_v30 = vadd.f32 1.0, %v801_v46  ;;  %v6249_v29 = vpop.eup %6248  ;;  %v290_v46 = vpop.f32.mrf.mxu1 }
 0x102   :  { %6254 = vpow2.f32 %v6770_v32  ;;  %690 = vst [vmem:[#allocation4 + $0x60] sm:$0xff] %v665_v6  ;;  %v420_v45 = vsub.f32 0.0, %v396_v0  ;;  %v386_v34 = vand.u32 2147483647, %v6759_v8  ;;  %vm558_vm5 = vcmp.ge.f32.partialorder %v6707_v2, 0.0 }
 0x103   :  { %997 = vst [vmem:[#allocation2 + $0x48] sm:$0xff] %v973_v51  ;;  %v969_v52 = vmul.f32 %v945_v27, %v6738_v31  ;;  %v954_v43 = vadd.f32 %v842_v60, %v10156_v3  ;;  %v804_v1 = vand.u32 2147483647, %v6800_v15  ;;  %v6955_v47 = vadd.f32 %v284_v44, %v6698_v61  ;;  %2285 = vrot.lane.b32.xlu1 %v6949_v56, %s6486_s1  ;;  %v6251_v58 = vpop.eup %6250 }
 0x104   :  { %1567 = vrot.lane.b32.xlu0 %v6949_v56, %s6482_s3  ;;  %v582_v32 = vsub.f32 1.0, %v6249_v29  ;;  %v458_v4 = vmul.f32 1.442695, %v420_v45  ;;  %v410_v53 = vsub.f32 0.0, %v386_v34  ;;  %v6962_v13 = vadd.f32 %v361_v54, %v6651_v23 }
 0x105   :  { %993 = vst [vmem:[#allocation2 + $0x20] sm:$0xff] %v969_v52  ;;  %v978_v19 = vmul.f32 %v954_v43, %v6728_v21  ;;  %v710_v18 = vmax.f32 %v6707_v2, 0.0  ;;  %v803_v38 = vmul.f32 %v6800_v15, %v802_v30  ;;  %v397_v28 = vand.u32 2147483647, %v6955_v47  ;;  %v7000_v52 = vld [vmem:[#allocation2 + $0xb8] sm:$0xff] }
 0x106   :  { %v6968_v36 = vadd.f32 %v288_v55, %v6653_v24  ;;  %v606_v41 = vsel %vm558_vm5, %v6249_v29, %v582_v32  ;;  %v800_v7 = vmul.f32 0.6931472, %v6251_v58  ;;  %6256 = vpow2.f32 %v458_v4  ;;  %v371_v58 = vpop.f32.mrf.mxu0 }
 0x107   :  { %1002 = vst [vmem:[#allocation2 + $0x78] sm:$0xff] %v978_v19  ;;  %v438_v9 = vmul.f32 1.442695, %v410_v53  ;;  %v661_v10 = vmul.f32 %v6734_v26, %v606_v41  ;;  %vm805_vm6 = vcmp.lt.f32.partialorder %v804_v1, 0.0004427343  ;;  %v421_v23 = vsub.f32 0.0, %v397_v28  ;;  %1955 = vrot.lane.b32.xlu1 %v6949_v56, %s6487_s10 }
 0x108   :  { %v387_v42 = vand.u32 2147483647, %v6962_v13  ;;  %1430 = vrot.lane.b32.xlu0 %v6928_v48, %s6483_s26  ;;  %v806_v2 = vsel %vm805_vm6, %v803_v38, %v800_v7  ;;  %v402_v15 = vand.u32 2147483647, %v6968_v36  ;;  %v6978_v16 = vadd.f32 %v365_v49, %v6645_v22  ;;  %v7017_v1 = vld [vmem:[#allocation2 + $0x10] sm:$0xff] }
 0x109   :  { %6258 = vpow2.f32 %v438_v9  ;;  %686 = vst [vmem:[#allocation4 + $0x40] sm:$0xff] %v661_v10  ;;  %v950_v40 = vadd.f32 %v806_v2, %v710_v18  ;;  %v460_v50 = vmul.f32 1.442695, %v421_v23  ;;  %v6981_v33 = vadd.f32 %v290_v46, %v6653_v24 }
 0x10a   :  { %v411_v14 = vsub.f32 0.0, %v387_v42  ;;  %v426_v11 = vsub.f32 0.0, %v402_v15  ;;  %v641_v35 = vsub.s32 4, %v6696_v59  ;;  %v645_v44 = vsub.s32 5, %v6696_v59 }
 0x10b   :  { %v974_v37 = vmul.f32 %v950_v40, %v6734_v26  ;;  %6260 = vpow2.f32 %v460_v50  ;;  %1790 = vrot.lane.b32.xlu1 %v6949_v56, %s6488_s11  ;;  %v392_v39 = vand.u32 2147483647, %v6978_v16  ;;  %v403_v57 = vand.u32 2147483647, %v6981_v33 }
 0x10c   :  { %v440_v63 = vmul.f32 1.442695, %v411_v14  ;;  %1394 = vrot.lane.b32.xlu0 %v6949_v56, %s6483_s26  ;;  %v470_v51 = vmul.f32 1.442695, %v426_v11  ;;  %v6998_v0 = vadd.f32 %v367_v62, %v6645_v22  ;;  %v7008_v43 = vrot.slane %v6717_v12, %v641_v35  ;;  %v373_v35 = vpop.f32.mrf.mxu0 }
 0x10d   :  { %v6991_v27 = vpop.eup %6252  ;;  %998 = vst [vmem:[#allocation2 + $0x50] sm:$0xff] %v974_v37  ;;  %v416_v3 = vsub.f32 0.0, %v392_v39  ;;  %v7011_v30 = vrot.slane %v6717_v12, %v645_v44  ;;  %v427_v22 = vsub.f32 0.0, %v403_v57  ;;  %v715_v54 = vmax.f32 %v6722_v17, 0.0 }
 0x10e   :  { %6262 = vpow2.f32 %v440_v63  ;;  %v491_v60 = vadd.f32 1.0, %v6991_v27  ;;  %10157 = vst [vmem:[#allocation12_spill] sm:$0xff] %v7008_v43  ;;  %v711_v45 = vmax.f32 %v6725_v20, 0.0  ;;  %v846_v55 = vmul.f32 -0.5, %v6991_v27 }
 0x10f   :  { %v6994_v6 = vpop.eup %6254  ;;  %6264 = vpow2.f32 %v470_v51  ;;  %1611 = vrot.lane.b32.xlu1 %v7000_v52, %s6482_s3  ;;  %10158 = vst [vmem:[#allocation13_spill] sm:$0xff] %v7011_v30  ;;  %v450_v34 = vmul.f32 1.442695, %v416_v3  ;;  %v472_v29 = vmul.f32 1.442695, %v427_v22  ;;  %v716_v4 = vmax.f32 %v6755_v5, 0.0 }
 0x110   :  { %v487_v59 = vadd.f32 1.0, %v6994_v6  ;;  %1265 = vrot.lane.b32.xlu0 %v6928_v48, %s6484_s27  ;;  %6266 = vrcp.f32 %v491_v60  ;;  %v393_v19 = vand.u32 2147483647, %v6998_v0  ;;  %v810_v12 = vmul.f32 -0.5, %v6994_v6 }
 0x111   :  { %6268 = vlog2.f32 %v491_v60  ;;  %v706_v53 = vmax.f32 %v6759_v8, 0.0  ;;  %v849_v18 = vand.u32 2147483647, %v6991_v27  ;;  %v717_v28 = vmax.f32 %v6955_v47, 0.0 }
 0x112   :  { %6270 = vrcp.f32 %v487_v59  ;;  %v813_v7 = vand.u32 2147483647, %v6994_v6  ;;  %v417_v10 = vsub.f32 0.0, %v393_v19  ;;  %v847_v23 = vadd.f32 1.0, %v846_v55 }
 0x113   :  { %v7019_v32 = vpop.eup %6256  ;;  %6272 = vlog2.f32 %v487_v59  ;;  %1569 = vrot.lane.b32.xlu1 %v7017_v1, %s6482_s3  ;;  %v7037_v49 = vadd.f32 %v371_v58, %v6698_v61  ;;  %vm563_vm7 = vcmp.ge.f32.partialorder %v6722_v17, 0.0  ;;  %v811_v46 = vadd.f32 1.0, %v810_v12 }
 0x114   :  { %1229 = vrot.lane.b32.xlu0 %v6949_v56, %s6484_s27  ;;  %v492_v38 = vadd.f32 1.0, %v7019_v32  ;;  %6274 = vpow2.f32 %v450_v34  ;;  %v855_v9 = vmul.f32 -0.5, %v7019_v32  ;;  %v707_v2 = vmax.f32 %v6962_v13, 0.0 }
 0x115   :  { %6276 = vpow2.f32 %v472_v29  ;;  %v452_v15 = vmul.f32 1.442695, %v417_v10  ;;  %vm7047_vm8 = vcmp.lt.f32.partialorder %v849_v18, 0.0004427343  ;;  %v722_v14 = vmax.f32 %v6968_v36, 0.0 }
 0x116   :  { %v7031_v41 = vpop.eup %6258  ;;  %6278 = vrcp.f32 %v492_v38  ;;  %v712_v11 = vmax.f32 %v6978_v16, 0.0  ;;  %vm559_vm9 = vcmp.ge.f32.partialorder %v6725_v20, 0.0  ;;  %v856_v37 = vadd.f32 1.0, %v855_v9 }
 0x117   :  { %v482_v42 = vadd.f32 1.0, %v7031_v41  ;;  %6280 = vlog2.f32 %v492_v38  ;;  %1432 = vrot.lane.b32.xlu1 %v7000_v52, %s6483_s26  ;;  %v765_v63 = vmul.f32 -0.5, %v7031_v41  ;;  %v848_v51 = vmul.f32 %v6991_v27, %v847_v23 }
 0x118   :  { %1100 = vrot.lane.b32.xlu0 %v6928_v48, %s6485_s28  ;;  %v7045_v40 = vpop.eup %6260  ;;  %vm7059_vm10 = vcmp.lt.f32.partialorder %v813_v7, 0.0004427343  ;;  %v858_v57 = vand.u32 2147483647, %v7019_v32  ;;  %v398_v60 = vand.u32 2147483647, %v7037_v49  ;;  %v812_v3 = vmul.f32 %v6994_v6, %v811_v46 }
 0x119   :  { %6282 = vrcp.f32 %v482_v42  ;;  %v493_v62 = vadd.f32 1.0, %v7045_v40  ;;  %v864_v22 = vmul.f32 -0.5, %v7045_v40  ;;  %v768_v27 = vand.u32 2147483647, %v7031_v41 }
 0x11a   :  { %6284 = vlog2.f32 %v482_v42  ;;  %v7077_v29 = vadd.f32 %v373_v35, %v6698_v61  ;;  %vm564_vm11 = vcmp.ge.f32.partialorder %v6755_v5, 0.0  ;;  %v7081_v19 = vmul.f32 %v7019_v32, %v856_v37 }
 0x11b   :  { %v7056_v44 = vpop.eup %6262  ;;  %6286 = vpow2.f32 %v452_v15  ;;  %1396 = vrot.lane.b32.xlu1 %v7017_v1, %s6483_s26  ;;  %v766_v12 = vadd.f32 1.0, %v765_v63  ;;  %vm7084_vm12 = vcmp.lt.f32.partialorder %v858_v57, 0.0004427343  ;;  %v867_v9 = vand.u32 2147483647, %v7045_v40 }
 0x11c   :  { %v7065_v59 = vpop.eup %6264  ;;  %6288 = vrcp.f32 %v493_v62  ;;  %v483_v34 = vadd.f32 1.0, %v7056_v44  ;;  %1064 = vrot.lane.b32.xlu0 %v6949_v56, %s6485_s28  ;;  %v774_v55 = vmul.f32 -0.5, %v7056_v44  ;;  %v7089_v61 = vsub.f32 0.0, %v398_v60 }
 0x11d   :  { %6290 = vlog2.f32 %v493_v62  ;;  %v6267_v6 = vpop.eup %6266  ;;  %v498_v58 = vadd.f32 1.0, %v7065_v59  ;;  %vm554_vm13 = vcmp.ge.f32.partialorder %v6759_v8, 0.0  ;;  %v865_v32 = vadd.f32 1.0, %v864_v22 }
 0x11e   :  { %6292 = vrcp.f32 %v483_v34  ;;  %v6269_v18 = vpop.eup %6268  ;;  %v587_v38 = vsub.f32 1.0, %v6267_v6  ;;  %v777_v42 = vand.u32 2147483647, %v7056_v44  ;;  %vm7099_vm14 = vcmp.lt.f32.partialorder %v768_v27, 0.0004427343 }
 0x11f   :  { %6294 = vlog2.f32 %v483_v34  ;;  %v6271_v10 = vpop.eup %6270  ;;  %v845_v23 = vmul.f32 0.6931472, %v6269_v18  ;;  %1267 = vrot.lane.b32.xlu1 %v7000_v52, %s6484_s27  ;;  %v775_v62 = vadd.f32 1.0, %v774_v55  ;;  %v909_v34 = vmul.f32 -0.5, %v7065_v59 }
 0x120   :  { %6296 = vrcp.f32 %v498_v58  ;;  %2156 = vrot.lane.b32.xlu0 %v6928_v48, %s6489_s12  ;;  %v6273_v46 = vpop.eup %6272  ;;  %v611_v15 = vsel %vm563_vm7, %v6267_v6, %v587_v38  ;;  %v583_v37 = vsub.f32 1.0, %v6271_v10  ;;  %v767_v55 = vmul.f32 %v7031_v41, %v766_v12 }
 0x121   :  { %6298 = vlog2.f32 %v498_v58  ;;  %v7103_v35 = vpop.eup %6274  ;;  %v666_v57 = vmul.f32 %v6731_v25, %v611_v15  ;;  %v851_v60 = vsel %vm7047_vm8, %v848_v51, %v845_v23  ;;  %v809_v22 = vmul.f32 0.6931472, %v6273_v46 }
 0x122   :  { %v7109_v18 = vpop.eup %6276  ;;  %v955_v27 = vadd.f32 %v851_v60, %v715_v54  ;;  %v607_v6 = vsel %vm559_vm9, %v6271_v10, %v583_v37  ;;  %vm565_vm15 = vcmp.ge.f32.partialorder %v6955_v47, 0.0  ;;  %v488_v58 = vadd.f32 1.0, %v7103_v35 }
 0x123   :  { %v6279_v38 = vpop.eup %6278  ;;  %691 = vst [vmem:[#allocation4 + $0x68] sm:$0xff] %v666_v57  ;;  %v662_v50 = vmul.f32 %v6738_v31, %v607_v6  ;;  %v815_v51 = vsel %vm7059_vm10, %v812_v3, %v809_v22  ;;  %v7122_v23 = vmul.f32 %v7045_v40, %v865_v32  ;;  %vm7124_vm0 = vcmp.lt.f32.partialorder %v867_v9, 0.0004427343  ;;  %1231 = vrot.lane.b32.xlu1 %v7017_v1, %s6484_s27 }
 0x124   :  { %2120 = vrot.lane.b32.xlu0 %v6949_v56, %s6489_s12  ;;  %v6281_v54 = vpop.eup %6280  ;;  %v979_v41 = vmul.f32 %v955_v27, %v6731_v25  ;;  %v951_v39 = vadd.f32 %v815_v51, %v711_v45  ;;  %v588_v3 = vsub.f32 1.0, %v6279_v38  ;;  %vm555_vm1 = vcmp.ge.f32.partialorder %v6962_v13, 0.0 }
 0x125   :  { %6300 = vrcp.f32 %v488_v58  ;;  %687 = vst [vmem:[#allocation4 + $0x48] sm:$0xff] %v662_v50  ;;  %v854_v12 = vmul.f32 0.6931472, %v6281_v54  ;;  %vm682_vm2 = vcmask 64512   ;;  %v7137_v9 = vmul.f32 %v7056_v44, %v775_v62 }
 0x126   :  { %v6283_v40 = vpop.eup %6282  ;;  %vm7139_vm3 = vcmp.lt.f32.partialorder %v777_v42, 0.0004427343  ;;  %v910_v56 = vadd.f32 1.0, %v909_v34  ;;  %6302 = vlog2.f32 %v488_v58  ;;  %1003 = vst [vmem:[#allocation2 + $0x80] sm:$0xff] %v979_v41  ;;  %v975_v20 = vmul.f32 %v951_v39, %v6738_v31 }
 0x127   :  { %v6285_v32 = vpop.eup %6284  ;;  %v612_v45 = vsel %vm564_vm11, %v6279_v38, %v588_v3  ;;  %v578_v46 = vsub.f32 1.0, %v6283_v40  ;;  %vm570_vm4 = vcmp.ge.f32.partialorder %v6968_v36, 0.0  ;;  %v499_v15 = vadd.f32 1.0, %v7109_v18  ;;  %1102 = vrot.lane.b32.xlu1 %v7000_v52, %s6485_s28 }
 0x128   :  { %v7148_v44 = vpop.eup %6286  ;;  %v667_v42 = vmul.f32 %v6734_v26, %v612_v45  ;;  %v860_v37 = vsel %vm7084_vm12, %v7081_v19, %v854_v12  ;;  %v764_v62 = vmul.f32 0.6931472, %v6285_v32  ;;  %v912_v57 = vand.u32 2147483647, %v7065_v59  ;;  %1991 = vrot.lane.b32.xlu0 %v6928_v48, %s6487_s10  ;;  %999 = vst [vmem:[#allocation2 + $0x58] sm:$0xff] %v975_v20 }
 0x129   :  { %v6289_v60 = vpop.eup %6288  ;;  %v956_v22 = vadd.f32 %v860_v37, %v716_v4  ;;  %v602_v34 = vsel %vm554_vm13, %v6283_v40, %v578_v46  ;;  %v819_v7 = vmul.f32 -0.5, %v7103_v35  ;;  %6304 = vrcp.f32 %v499_v15 }
 0x12a   :  { %v6291_v19 = vpop.eup %6290  ;;  %692 = vst [vmem:[#allocation4 + $0x70] sm:$0xff] %v667_v42  ;;  %v657_v27 = vmul.f32 %v7008_v43, %v602_v34  ;;  %v770_v6 = vsel %vm7099_vm14, %v767_v55, %v764_v62  ;;  %v589_v58 = vsub.f32 1.0, %v6289_v60  ;;  %6306 = vlog2.f32 %v499_v15  ;;  %v377_v42 = vpop.f32.mrf.mxu0 }
 0x12b   :  { %v6293_v38 = vpop.eup %6292  ;;  %v980_v50 = vmul.f32 %v956_v22, %v6734_v26  ;;  %v946_v5 = vadd.f32 %v770_v6, %v706_v53  ;;  %v863_v4 = vmul.f32 0.6931472, %v6291_v19  ;;  %v911_v51 = vmul.f32 %v7065_v59, %v910_v56  ;;  %1066 = vrot.lane.b32.xlu1 %v7017_v1, %s6485_s28 }
 0x12c   :  { %v6295_v54 = vpop.eup %6294  ;;  %681 = vst [vmem:[#allocation4 + $0x20] sm:$0xff] %v657_v27  ;;  %v613_v41 = vsel %vm565_vm15, %v6289_v60, %v589_v58  ;;  %v579_v39 = vsub.f32 1.0, %v6293_v38  ;;  %vm7173_vm5 = vcmp.lt.f32.partialorder %v912_v57, 0.0004427343  ;;  %vm560_vm6 = vcmp.ge.f32.partialorder %v6978_v16, 0.0  ;;  %1826 = vrot.lane.b32.xlu0 %v6928_v48, %s6488_s11 }
 0x12d   :  { %v489_v55 = vadd.f32 1.0, %v7148_v44  ;;  %v6297_v8 = vpop.eup %6296  ;;  %1004 = vst [vmem:[#allocation2 + $0x88] sm:$0xff] %v980_v50  ;;  %v970_v53 = vmul.f32 %v946_v5, %v7008_v43  ;;  %v668_v59 = vmul.f32 %v6738_v31, %v613_v41  ;;  %v869_v3 = vsel %vm7124_vm0, %v7122_v23, %v863_v4 }
 0x12e   :  { %v773_v40 = vmul.f32 0.6931472, %v6295_v54  ;;  %v6299_v12 = vpop.eup %6298  ;;  %v957_v56 = vadd.f32 %v869_v3, %v717_v28  ;;  %v603_v32 = vsel %vm555_vm1, %v6293_v38, %v579_v39  ;;  %v594_v20 = vsub.f32 1.0, %v6297_v8 }
 0x12f   :  { %v820_v48 = vadd.f32 1.0, %v819_v7  ;;  %994 = vst [vmem:[#allocation2 + $0x28] sm:$0xff] %v970_v53  ;;  %693 = vst [vmem:[#allocation4 + $0x78] sm:$0xff] %v668_v59  ;;  %v658_v45 = vmul.f32 %v7011_v30, %v603_v32  ;;  %v908_v17 = vmul.f32 0.6931472, %v6299_v12  ;;  %v918_v23 = vmul.f32 -0.5, %v7109_v18  ;;  %1957 = vrot.lane.b32.xlu1 %v7017_v1, %s6487_s10 }
 0x130   :  { %v779_v46 = vsel %vm7139_vm3, %v7137_v9, %v773_v40  ;;  %v981_v15 = vmul.f32 %v957_v56, %v6738_v31  ;;  %v618_v28 = vsel %vm570_vm4, %v6297_v8, %v594_v20  ;;  %6308 = vrcp.f32 %v489_v55  ;;  %2158 = vrot.lane.b32.xlu0 %v7000_v52, %s6489_s12  ;;  %v7238_v8 = vld [vmem:[#allocation2 + $0x40] sm:$0xff] }
 0x131   :  { %v947_v47 = vadd.f32 %v779_v46, %v707_v2  ;;  %683 = vst.msk [vmem:[#allocation4 + $0x28] sm:$0xff] %vm682_vm2, %v658_v45  ;;  %v673_v9 = vmul.f32 %v6734_v26, %v618_v28  ;;  %v914_v10 = vsel %vm7173_vm5, %v911_v51, %v908_v17  ;;  %v822_v13 = vand.u32 2147483647, %v7103_v35 }
 0x132   :  { %6310 = vlog2.f32 %v489_v55  ;;  %v6301_v2 = vpop.eup %6300  ;;  %1005 = vst [vmem:[#allocation2 + $0x90] sm:$0xff] %v981_v15  ;;  %v962_v62 = vadd.f32 %v914_v10, %v722_v14  ;;  %vm571_vm7 = vcmp.ge.f32.partialorder %v6981_v33, 0.0  ;;  %v462_v57 = vmul.f32 1.442695, %v7089_v61  ;;  %v379_v14 = vpop.f32.mrf.mxu0 }
 0x133   :  { %v971_v37 = vmul.f32 %v947_v47, %v7011_v30  ;;  %v6303_v60 = vpop.eup %6302  ;;  %698 = vst [vmem:[#allocation4 + $0xa0] sm:$0xff] %v673_v9  ;;  %v584_v22 = vsub.f32 1.0, %v6301_v2  ;;  %v821_v34 = vmul.f32 %v7103_v35, %v820_v48  ;;  %v919_v7 = vadd.f32 1.0, %v918_v23  ;;  %1792 = vrot.lane.b32.xlu1 %v7017_v1, %s6488_s11 }
 0x134   :  { %v399_v19 = vand.u32 2147483647, %v7077_v29  ;;  %v986_v27 = vmul.f32 %v962_v62, %v6734_v26  ;;  %v818_v6 = vmul.f32 0.6931472, %v6303_v60  ;;  %v921_v36 = vand.u32 2147483647, %v7109_v18  ;;  %2323 = vrot.lane.b32.xlu0 %v7000_v52, %s6486_s1 }
 0x135   :  { %995 = vst.msk [vmem:[#allocation2 + $0x30] sm:$0xff] %vm682_vm2, %v971_v37  ;;  %6312 = vpow2.f32 %v462_v57  ;;  %v608_v61 = vsel %vm560_vm6, %v6301_v2, %v584_v22  ;;  %vm823_vm8 = vcmp.lt.f32.partialorder %v822_v13, 0.0004427343  ;;  %v723_v35 = vmax.f32 %v6981_v33, 0.0 }
 0x136   :  { %v423_v58 = vsub.f32 0.0, %v399_v19  ;;  %v6305_v38 = vpop.eup %6304  ;;  %1010 = vst [vmem:[#allocation2 + $0xc0] sm:$0xff] %v986_v27  ;;  %v663_v50 = vmul.f32 %v7008_v43, %v608_v61  ;;  %v824_v5 = vsel %vm823_vm8, %v821_v34, %v818_v6  ;;  %v828_v4 = vmul.f32 -0.5, %v7148_v44  ;;  %v7279_v34 = vld [vmem:[#allocation2 + $0x18] sm:$0xff] }
 0x137   :  { %v7231_v51 = vadd.f32 %v377_v42, %v6653_v24  ;;  %v6307_v54 = vpop.eup %6306  ;;  %v952_v41 = vadd.f32 %v824_v5, %v712_v11  ;;  %v595_v39 = vsub.f32 1.0, %v6305_v38  ;;  %v7236_v55 = vadd.f32 %v379_v14, %v6653_v24  ;;  %1581 = vrot.lane.b32.xlu1 %v7238_v8, %s6482_s3 }
 0x138   :  { %v464_v63 = vmul.f32 1.442695, %v423_v58  ;;  %688 = vst [vmem:[#allocation4 + $0x50] sm:$0xff] %v663_v50  ;;  %v917_v53 = vmul.f32 0.6931472, %v6307_v54  ;;  %v920_v59 = vmul.f32 %v7109_v18, %v919_v7  ;;  %2122 = vrot.lane.b32.xlu0 %v7017_v1, %s6489_s12  ;;  %v829_v32 = vadd.f32 1.0, %v828_v4 }
 0x139   :  { %vm922_vm9 = vcmp.lt.f32.partialorder %v921_v36, 0.0004427343  ;;  %v404_v3 = vand.u32 2147483647, %v7231_v51  ;;  %v976_v16 = vmul.f32 %v952_v41, %v7008_v43  ;;  %v619_v24 = vsel %vm571_vm7, %v6305_v38, %v595_v39 }
 0x13a   :  { %6314 = vpow2.f32 %v464_v63  ;;  %v405_v11 = vand.u32 2147483647, %v7236_v55  ;;  %v674_v40 = vmul.f32 %v6738_v31, %v619_v24  ;;  %v923_v18 = vsel %vm922_vm9, %v920_v59, %v917_v53 }
 0x13b   :  { %v428_v12 = vsub.f32 0.0, %v404_v3  ;;  %1000 = vst [vmem:[#allocation2 + $0x60] sm:$0xff] %v976_v16  ;;  %v963_v56 = vadd.f32 %v923_v18, %v723_v35  ;;  %v831_v45 = vand.u32 2147483647, %v7148_v44  ;;  %1406 = vrot.lane.b32.xlu1 %v7238_v8, %s6483_s26  ;;  %vm561_vm10 = vcmp.ge.f32.partialorder %v6998_v0, 0.0 }
 0x13c   :  { %v429_v20 = vsub.f32 0.0, %v405_v11  ;;  %v1699_v48 = vld [vmem:[#allocation2 + $0x30] sm:$0xff]  ;;  %699 = vst [vmem:[#allocation4 + $0xa8] sm:$0xff] %v674_v40  ;;  %2287 = vrot.lane.b32.xlu0 %v7017_v1, %s6486_s1  ;;  %v830_v42 = vmul.f32 %v7148_v44, %v829_v32  ;;  %v713_v10 = vmax.f32 %v6998_v0, 0.0  ;;  %vm566_vm12 = vcmp.ge.f32.partialorder %v7037_v49, 0.0 }
 0x13d   :  { %v474_v46 = vmul.f32 1.442695, %v428_v12  ;;  %1723 = vst.msk [vmem:[#allocation3 + $0x328] sm:$0xff] %vm682_vm2, %v1699_v48  ;;  %v6309_v33 = vpop.eup %6308  ;;  %v987_v17 = vmul.f32 %v963_v56, %v6738_v31  ;;  %vm832_vm11 = vcmp.lt.f32.partialorder %v831_v45, 0.0004427343  ;;  %v718_v4 = vmax.f32 %v7037_v49, 0.0  ;;  %v7312_v45 = vpop.permute.xlu0 %6113 }
 0x13e   :  { %v476_v23 = vmul.f32 1.442695, %v429_v20  ;;  %v585_v47 = vsub.f32 1.0, %v6309_v33  ;;  %vm567_vm14 = vcmp.ge.f32.partialorder %v7077_v29, 0.0  ;;  %v719_v12 = vmax.f32 %v7077_v29, 0.0 }
 0x13f   :  { %v6311_v15 = vpop.eup %6310  ;;  %6316 = vpow2.f32 %v474_v46  ;;  %1011 = vst [vmem:[#allocation2 + $0xc8] sm:$0xff] %v987_v17  ;;  %1241 = vrot.lane.b32.xlu1 %v7238_v8, %s6484_s27  ;;  %v7314_v46 = vpop.permute.xlu1 %6118  ;;  %vm572_vm0 = vcmp.ge.f32.partialorder %v7231_v51, 0.0  ;;  %vm573_vm3 = vcmp.ge.f32.partialorder %v7236_v55, 0.0  ;;  %vm1621_vm5 = vcmask 7168  }
 0x140   :  { %v827_v28 = vmul.f32 0.6931472, %v6311_v15  ;;  %6318 = vpow2.f32 %v476_v23  ;;  %v609_v9 = vsel %vm561_vm10, %v6309_v33, %v585_v47  ;;  %1993 = vrot.lane.b32.xlu0 %v7000_v52, %s6487_s10  ;;  %v7316_v15 = vld [vmem:[#allocation2 + $0x20] sm:$0xff]  ;;  %vm2003_vm6 = vcmask 908288  }
 0x141   :  { %v664_v13 = vmul.f32 %v7011_v30, %v609_v9  ;;  %vm1838_vm7 = vcmask 1039360   ;;  %vm1440_vm8 = vcmask 138240   ;;  %vm1275_vm9 = vcmask 146432  }
 0x142   :  { %v6313_v1 = vpop.eup %6312  ;;  %v833_v2 = vsel %vm832_vm11, %v830_v42, %v827_v28  ;;  %v7536_v26 = vld [vmem:[#allocation2 + $0x60] sm:$0xff]  ;;  %vm1110_vm10 = vcmask 154624   ;;  %vm2333_vm11 = vcmask 891904  }
 0x143   :  { %v953_v37 = vadd.f32 %v833_v2, %v713_v10  ;;  %v494_v62 = vadd.f32 1.0, %v6313_v1  ;;  %689 = vst.msk [vmem:[#allocation4 + $0x58] sm:$0xff] %vm682_vm2, %v664_v13  ;;  %1076 = vrot.lane.b32.xlu1 %v7238_v8, %s6485_s28  ;;  %v873_v22 = vmul.f32 -0.5, %v6313_v1  ;;  %v876_v36 = vand.u32 2147483647, %v6313_v1 }
 0x144   :  { %1828 = vrot.lane.b32.xlu0 %v7000_v52, %s6488_s11  ;;  %v724_v10 = vmax.f32 %v7231_v51, 0.0  ;;  %v725_v51 = vmax.f32 %v7236_v55, 0.0  ;;  %v1524_v55 = vld [vmem:[#allocation2 + $0x78] sm:$0xff] }
 0x145   :  { %v977_v44 = vmul.f32 %v953_v37, %v7011_v30  ;;  %6320 = vrcp.f32 %v494_v62  ;;  %v874_v6 = vadd.f32 1.0, %v873_v22  ;;  %vm877_vm13 = vcmp.lt.f32.partialorder %v876_v36, 0.0004427343 }
 0x146   :  { %6322 = vlog2.f32 %v494_v62  ;;  %v7556_v21 = vld [vmem:[#allocation2 + $0xc8] sm:$0xff] }
 0x147   :  { %v6315_v0 = vpop.eup %6314  ;;  %1001 = vst.msk [vmem:[#allocation2 + $0x68] sm:$0xff] %vm682_vm2, %v977_v44  ;;  %2297 = vrot.lane.b32.xlu1 %v7238_v8, %s6486_s1  ;;  %v875_v50 = vmul.f32 %v6313_v1, %v874_v6 }
 0x148   :  { %v495_v57 = vadd.f32 1.0, %v6315_v0  ;;  %2132 = vrot.lane.b32.xlu0 %v7238_v8, %s6489_s12  ;;  %v882_v14 = vmul.f32 -0.5, %v6315_v0  ;;  %v885_v63 = vand.u32 2147483647, %v6315_v0 }
 0x14a   :  { %6324 = vrcp.f32 %v495_v57  ;;  %v883_v54 = vadd.f32 1.0, %v882_v14  ;;  %vm886_vm15 = vcmp.lt.f32.partialorder %v885_v63, 0.0004427343 }
 0x14b   :  { %6326 = vlog2.f32 %v495_v57  ;;  %2124 = vrot.lane.b32.xlu1 %v7279_v34, %s6489_s12 }
 0x14c   :  { %v7277_v60 = vpop.eup %6316  ;;  %1967 = vrot.lane.b32.xlu0 %v7238_v8, %s6487_s10  ;;  %v884_v18 = vmul.f32 %v6315_v0, %v883_v54 }
 0x14d   :  { %v7281_v7 = vpop.eup %6318  ;;  %v500_v52 = vadd.f32 1.0, %v7277_v60  ;;  %v927_v53 = vmul.f32 -0.5, %v7277_v60  ;;  %v930_v48 = vand.u32 2147483647, %v7277_v60 }
 0x14e   :  { %v501_v19 = vadd.f32 1.0, %v7281_v7  ;;  %v1705_v27 = vld [vmem:[#allocation2 + $0x68] sm:$0xff]  ;;  %v936_v49 = vmul.f32 -0.5, %v7281_v7  ;;  %v939_v28 = vand.u32 2147483647, %v7281_v7 }
 0x14f   :  { %6328 = vrcp.f32 %v500_v52  ;;  %1729 = vst.msk [vmem:[#allocation3 + $0x358] sm:$0xff] %vm682_vm2, %v1705_v27  ;;  %2289 = vrot.lane.b32.xlu1 %v7279_v34, %s6486_s1  ;;  %v928_v56 = vadd.f32 1.0, %v927_v53  ;;  %vm931_vm1 = vcmp.lt.f32.partialorder %v930_v48, 0.0004427343  ;;  %v7339_v27 = vpop.permute.xlu1 %6128  ;;  %v2080_v53 = vld [vmem:[#allocation2 + $0x50] sm:$0xff] }
 0x150   :  { %6330 = vlog2.f32 %v500_v52  ;;  %1959 = vrot.lane.b32.xlu0 %v7279_v34, %s6487_s10  ;;  %v937_v23 = vadd.f32 1.0, %v936_v49  ;;  %vm940_vm4 = vcmp.lt.f32.partialorder %v939_v28, 0.0004427343 }
 0x151   :  { %6332 = vrcp.f32 %v501_v19  ;;  %v929_v13 = vmul.f32 %v7277_v60, %v928_v56  ;;  %v7337_v60 = vpop.permute.xlu0 %6123 }
 0x152   :  { %v6321_v61 = vpop.eup %6320  ;;  %6334 = vlog2.f32 %v501_v19  ;;  %v938_v22 = vmul.f32 %v7281_v7, %v937_v23 }
 0x153   :  { %v6323_v35 = vpop.eup %6322  ;;  %v590_v58 = vsub.f32 1.0, %v6321_v61  ;;  %1571 = vrot.lane.b32.xlu1 %v7279_v34, %s6482_s3 }
 0x154   :  { %v872_v38 = vmul.f32 0.6931472, %v6323_v35  ;;  %1802 = vrot.lane.b32.xlu0 %v7238_v8, %s6488_s11 }
 0x155   :  { %v614_v5 = vsel %vm566_vm12, %v6321_v61, %v590_v58  ;;  %v1518_v61 = vld [vmem:[#allocation2 + $0x48] sm:$0xff]  ;;  %v7350_v58 = vpop.permute.xlu1 %6138  ;;  %vm2168_vm12 = vcmask 900096  }
 0x156   :  { %v669_v41 = vmul.f32 %v7008_v43, %v614_v5  ;;  %v878_v39 = vsel %vm877_vm13, %v875_v50, %v872_v38  ;;  %vm2654_vm13 = vcmask 261120  }
 0x157   :  { %v6325_v59 = vpop.eup %6324  ;;  %v958_v3 = vadd.f32 %v878_v39, %v718_v4  ;;  %1398 = vrot.lane.b32.xlu1 %v7279_v34, %s6483_s26 }
 0x158   :  { %v6327_v16 = vpop.eup %6326  ;;  %694 = vst [vmem:[#allocation4 + $0x80] sm:$0xff] %v669_v41  ;;  %v591_v24 = vsub.f32 1.0, %v6325_v59  ;;  %1794 = vrot.lane.b32.xlu0 %v7279_v34, %s6488_s11 }
 0x159   :  { %v982_v11 = vmul.f32 %v958_v3, %v7008_v43  ;;  %v881_v40 = vmul.f32 0.6931472, %v6327_v16  ;;  %v7359_v5 = vpop.permute.xlu1 %6148 }
 0x15a   :  { %v615_v8 = vsel %vm567_vm14, %v6325_v59, %v591_v24  ;;  %vm5893_vm14 = vcmask 57344  }
 0x15b   :  { %1006 = vst [vmem:[#allocation2 + $0x98] sm:$0xff] %v982_v11  ;;  %v670_v32 = vmul.f32 %v7011_v30, %v615_v8  ;;  %v887_v20 = vsel %vm886_vm15, %v884_v18, %v881_v40  ;;  %1235 = vrot.lane.b32.xlu1 %v7316_v15, %s6484_s27  ;;  %v6115_v40 = vunpack.i.l.bf16 %v7312_v45  ;;  %vm5953_vm15 = vcmask 162816  }
 0x15c   :  { %v6329_v33 = vpop.eup %6328  ;;  %v959_v17 = vadd.f32 %v887_v20, %v719_v12  ;;  %1233 = vrot.lane.b32.xlu0 %v7279_v34, %s6484_s27 }
 0x15d   :  { %v6331_v47 = vpop.eup %6330  ;;  %695 = vst.msk [vmem:[#allocation4 + $0x88] sm:$0xff] %vm682_vm2, %v670_v32  ;;  %v596_v29 = vsub.f32 1.0, %v6329_v33 }
 0x15e   :  { %v6333_v42 = vpop.eup %6332  ;;  %v983_v9 = vmul.f32 %v959_v17, %v7011_v30  ;;  %v926_v1 = vmul.f32 0.6931472, %v6331_v47  ;;  %v1920_v17 = vld [vmem:[#allocation2 + $0x80] sm:$0xff] }
 0x15f   :  { %v6335_v2 = vpop.eup %6334  ;;  %v620_v37 = vsel %vm572_vm0, %v6329_v33, %v596_v29  ;;  %v597_v62 = vsub.f32 1.0, %v6333_v42  ;;  %1070 = vrot.lane.b32.xlu1 %v7316_v15, %s6485_s28  ;;  %v7416_v29 = vld [vmem:[#allocation2 + $0x58] sm:$0xff]  ;;  %vm5965_vm0 = vcmask 293888  }
 0x160   :  { %1007 = vst.msk [vmem:[#allocation2 + $0xa0] sm:$0xff] %vm682_vm2, %v983_v9  ;;  %v675_v44 = vmul.f32 %v7008_v43, %v620_v37  ;;  %v932_v0 = vsel %vm931_vm1, %v929_v13, %v926_v1  ;;  %v935_v57 = vmul.f32 0.6931472, %v6335_v2  ;;  %1068 = vrot.lane.b32.xlu0 %v7279_v34, %s6485_s28  ;;  %v7348_v34 = vpop.permute.xlu0 %6133  ;;  %vm5977_vm1 = vcmask 302080  }
 0x161   :  { %v964_v52 = vadd.f32 %v932_v0, %v724_v10  ;;  %v621_v19 = vsel %vm573_vm3, %v6333_v42, %v597_v62  ;;  %vm5989_vm3 = vcmask 310272  }
 0x162   :  { %700 = vst [vmem:[#allocation4 + $0xb0] sm:$0xff] %v675_v44  ;;  %v676_v6 = vmul.f32 %v7011_v30, %v621_v19  ;;  %v941_v36 = vsel %vm940_vm4, %v938_v22, %v935_v57  ;;  %v2086_v22 = vld [vmem:[#allocation2 + $0x88] sm:$0xff] }
 0x163   :  { %v988_v7 = vmul.f32 %v964_v52, %v7008_v43  ;;  %v965_v14 = vadd.f32 %v941_v36, %v725_v51  ;;  %1595 = vrot.lane.b32.xlu1 %v1524_v55, %s6482_s3 }
 0x164   :  { %701 = vst.msk [vmem:[#allocation4 + $0xb8] sm:$0xff] %vm682_vm2, %v676_v6  ;;  %1583 = vrot.lane.b32.xlu0 %v1518_v61, %s6482_s3  ;;  %v7357_v50 = vpop.permute.xlu0 %6143 }
 0x165   :  { %1012 = vst [vmem:[#allocation2 + $0xd0] sm:$0xff] %v988_v7  ;;  %v989_v35 = vmul.f32 %v965_v14, %v7011_v30 }
 0x167   :  { %1013 = vst.msk [vmem:[#allocation2 + $0xd8] sm:$0xff] %vm682_vm2, %v989_v35  ;;  %v1711_v38 = vld [vmem:[#allocation2 + $0xa0] sm:$0xff]  ;;  %1418 = vrot.lane.b32.xlu1 %v1524_v55, %s6483_s26 }
 0x168   :  { %1735 = vst.msk [vmem:[#allocation3 + $0x388] sm:$0xff] %vm682_vm2, %v1711_v38  ;;  %1408 = vrot.lane.b32.xlu0 %v1518_v61, %s6483_s26 }
 0x16b   :  { %1253 = vrot.lane.b32.xlu1 %v1524_v55, %s6484_s27 }
 0x16c   :  { %1243 = vrot.lane.b32.xlu0 %v1518_v61, %s6484_s27 }
 0x16e   :  { %v1717_v4 = vld [vmem:[#allocation2 + $0xd8] sm:$0xff] }
 0x16f   :  { %1741 = vst.msk [vmem:[#allocation3 + $0x3b8] sm:$0xff] %vm682_vm2, %v1717_v4  ;;  %1088 = vrot.lane.b32.xlu1 %v1524_v55, %s6485_s28 }
 0x170   :  { %1078 = vrot.lane.b32.xlu0 %v1518_v61, %s6485_s28 }
 0x171   :  { %v7364_v54 = vpop.permute.xlu1 %2321  ;;  %v1610_v41 = vpop.permute.xlu0 %1609 }
 0x172   :  { %v1640_v8 = vsel %vm1621_vm5, %v6115_v40, %v1610_v41 }
 0x173   :  { %2309 = vrot.lane.b32.xlu1 %v1524_v55, %s6486_s1 }
 0x174   :  { %2134 = vrot.lane.b32.xlu0 %v1518_v61, %s6489_s12 }
 0x175   :  { %v7368_v39 = vpop.permute.xlu1 %2285 }
 0x176   :  { %10173 = vst [vmem:[#allocation14_spill] sm:$0xff] %v7368_v39  ;;  %v7370_v63 = vpop.permute.xlu0 %1567  ;;  %v7624_v39 = vld [vmem:[#allocation2 + $0xd0] sm:$0xff] }
 0x177   :  { %2136 = vrot.lane.b32.xlu1 %v2080_v53, %s6489_s12 }
 0x178   :  { %2299 = vrot.lane.b32.xlu0 %v1518_v61, %s6486_s1 }
 0x179   :  { %v1956_v59 = vpop.permute.xlu1 %1955 }
 0x17a   :  { %v7374_v3 = vpop.permute.xlu0 %1430 }
 0x17b   :  { %2301 = vrot.lane.b32.xlu1 %v2080_v53, %s6486_s1 }
 0x17c   :  { %1969 = vrot.lane.b32.xlu0 %v1518_v61, %s6487_s10 }
 0x17d   :  { %v1791_v16 = vpop.permute.xlu1 %1790 }
 0x17e   :  { %v7378_v24 = vpop.permute.xlu0 %1394 }
 0x17f   :  { %1979 = vrot.lane.b32.xlu1 %v1524_v55, %s6487_s10 }
 0x180   :  { %1573 = vrot.lane.b32.xlu0 %v7316_v15, %s6482_s3 }
 0x181   :  { %v7383_v49 = vpop.permute.xlu1 %1611 }
 0x182   :  { %10174 = vst [vmem:[#allocation15_spill] sm:$0xff] %v7383_v49  ;;  %v7385_v11 = vpop.permute.xlu0 %1265  ;;  %v1641_v18 = vsel %vm1621_vm5, %v1610_v41, %v7383_v49 }
 0x183   :  { %1971 = vrot.lane.b32.xlu1 %v2080_v53, %s6487_s10  ;;  %2667 = vmatprep.subr.mxu1 %v1641_v18 }
 0x184   :  { %1804 = vrot.lane.b32.xlu0 %v1518_v61, %s6488_s11  ;;  %2668 = vmatpush1.msra.mxu1 %v1640_v8  ;;  %v7480_v61 = vld [vmem:[#allocation2 + $0x90] sm:$0xff] }
 0x185   :  { %v7393_v12 = vpop.permute.xlu1 %1569 }
 0x186   :  { %v7395_v56 = vpop.permute.xlu0 %1229 }
 0x187   :  { %1814 = vrot.lane.b32.xlu1 %v1524_v55, %s6488_s11 }
 0x188   :  { %1400 = vrot.lane.b32.xlu0 %v7316_v15, %s6483_s26 }
 0x189   :  { %v7400_v32 = vpop.permute.xlu1 %1432 }
 0x18a   :  { %v7402_v20 = vpop.permute.xlu0 %1100 }
 0x18b   :  { %1806 = vrot.lane.b32.xlu1 %v2080_v53, %s6488_s11 }
 0x18c   :  { %2144 = vrot.lane.b32.xlu0 %v1524_v55, %s6489_s12 }
 0x18d   :  { %v7406_v48 = vpop.permute.xlu1 %1396 }
 0x18e   :  { %v7408_v33 = vpop.permute.xlu0 %1064 }
 0x18f   :  { %1981 = vrot.lane.b32.xlu1 %v1920_v17, %s6487_s10 }
 0x190   :  { %1585 = vrot.lane.b32.xlu0 %v2080_v53, %s6482_s3 }
 0x191   :  { %v7412_v23 = vpop.permute.xlu1 %1267 }
 0x192   :  { %v7414_v47 = vpop.permute.xlu0 %2156 }
 0x193   :  { %1587 = vrot.lane.b32.xlu1 %v7416_v29, %s6482_s3 }
 0x194   :  { %1410 = vrot.lane.b32.xlu0 %v2080_v53, %s6483_s26 }
 0x195   :  { %v7421_v28 = vpop.permute.xlu1 %1231 }
 0x196   :  { %v7423_v42 = vpop.permute.xlu0 %2120 }
 0x197   :  { %1816 = vrot.lane.b32.xlu1 %v1920_v17, %s6488_s11 }
 0x198   :  { %1245 = vrot.lane.b32.xlu0 %v2080_v53, %s6484_s27 }
 0x199   :  { %v7427_v9 = vpop.permute.xlu1 %1102 }
 0x19a   :  { %v7429_v10 = vpop.permute.xlu0 %1991 }
 0x19b   :  { %10175 = vst [vmem:[#allocation16_spill] sm:$0xff] %v7429_v10  ;;  %1412 = vrot.lane.b32.xlu1 %v7416_v29, %s6483_s26  ;;  %v7668_v10 = vld [vmem:[#allocation2 + $0xa0] sm:$0xff] }
 0x19c   :  { %1080 = vrot.lane.b32.xlu0 %v2080_v53, %s6485_s28  ;;  %v7498_v53 = vld [vmem:[#allocation2 + $0xc0] sm:$0xff]  ;;  %10206 = vst [vmem:[#allocation47_spill] sm:$0xff] %v7668_v10 }
 0x19d   :  { %v7434_v1 = vpop.permute.xlu1 %1066 }
 0x19e   :  { %v7436_v13 = vpop.permute.xlu0 %1826 }
 0x19f   :  { %10176 = vst [vmem:[#allocation17_spill] sm:$0xff] %v7436_v13  ;;  %1247 = vrot.lane.b32.xlu1 %v7416_v29, %s6484_s27  ;;  %v7606_v13 = vld [vmem:[#allocation2 + $0x98] sm:$0xff] }
 0x1a0   :  { %1597 = vrot.lane.b32.xlu0 %v1920_v17, %s6482_s3 }
 0x1a1   :  { %v7441_v2 = vpop.permute.xlu1 %1957 }
 0x1a2   :  { %10177 = vst [vmem:[#allocation18_spill] sm:$0xff] %v7441_v2  ;;  %v7443_v37 = vpop.permute.xlu0 %2158  ;;  %v2004_v62 = vsel %vm2003_vm6, %v1956_v59, %v7441_v2 }
 0x1a3   :  { %2048 = vst [vmem:[#allocation3 + $0x480] sm:$0xff] %v2004_v62  ;;  %1082 = vrot.lane.b32.xlu1 %v7416_v29, %s6485_s28 }
 0x1a4   :  { %1420 = vrot.lane.b32.xlu0 %v1920_v17, %s6483_s26 }
 0x1a5   :  { %v7450_v44 = vpop.permute.xlu1 %1792 }
 0x1a6   :  { %10178 = vst [vmem:[#allocation19_spill] sm:$0xff] %v7450_v44  ;;  %v7452_v0 = vpop.permute.xlu0 %2323  ;;  %v1839_v57 = vsel %vm1838_vm7, %v1791_v16, %v7450_v44  ;;  %v7596_v44 = vld [vmem:[#allocation2 + $0x28] sm:$0xff] }
 0x1a7   :  { %1883 = vst [vmem:[#allocation3 + $0x3c0] sm:$0xff] %v1839_v57  ;;  %2148 = vrot.lane.b32.xlu1 %v2086_v22, %s6489_s12 }
 0x1a8   :  { %1255 = vrot.lane.b32.xlu0 %v1920_v17, %s6484_s27 }
 0x1a9   :  { %v7458_v52 = vpop.permute.xlu1 %1581 }
 0x1aa   :  { %v7460_v19 = vpop.permute.xlu0 %2122 }
 0x1ab   :  { %2313 = vrot.lane.b32.xlu1 %v2086_v22, %s6486_s1 }
 0x1ac   :  { %1090 = vrot.lane.b32.xlu0 %v1920_v17, %s6485_s28 }
 0x1ad   :  { %v7464_v51 = vpop.permute.xlu1 %1406 }
 0x1ae   :  { %v7466_v6 = vpop.permute.xlu0 %2287 }
 0x1af   :  { %10179 = vst [vmem:[#allocation20_spill] sm:$0xff] %v7466_v6  ;;  %1599 = vrot.lane.b32.xlu1 %v2086_v22, %s6482_s3 }
 0x1b0   :  { %2146 = vrot.lane.b32.xlu0 %v1920_v17, %s6489_s12 }
 0x1b1   :  { %v7470_v36 = vpop.permute.xlu1 %1241 }
 0x1b2   :  { %v7472_v7 = vpop.permute.xlu0 %1993 }
 0x1b3   :  { %1422 = vrot.lane.b32.xlu1 %v2086_v22, %s6483_s26 }
 0x1b4   :  { %2311 = vrot.lane.b32.xlu0 %v1920_v17, %s6486_s1 }
 0x1b5   :  { %v7476_v14 = vpop.permute.xlu1 %1076 }
 0x1b6   :  { %v7478_v55 = vpop.permute.xlu0 %1828 }
 0x1b7   :  { %10180 = vst [vmem:[#allocation21_spill] sm:$0xff] %v7478_v55  ;;  %1259 = vrot.lane.b32.xlu1 %v7480_v61, %s6484_s27 }
 0x1b8   :  { %2303 = vrot.lane.b32.xlu0 %v7416_v29, %s6486_s1 }
 0x1b9   :  { %v7486_v35 = vpop.permute.xlu1 %2297 }
 0x1ba   :  { %10181 = vst [vmem:[#allocation22_spill] sm:$0xff] %v7486_v35  ;;  %v7488_v38 = vpop.permute.xlu0 %2132 }
 0x1bb   :  { %1094 = vrot.lane.b32.xlu1 %v7480_v61, %s6485_s28 }
 0x1bc   :  { %2138 = vrot.lane.b32.xlu0 %v7416_v29, %s6489_s12 }
 0x1bd   :  { %v7494_v4 = vpop.permute.xlu1 %2124 }
 0x1be   :  { %v7496_v41 = vpop.permute.xlu0 %1967 }
 0x1bf   :  { %10182 = vst [vmem:[#allocation23_spill] sm:$0xff] %v7496_v41  ;;  %2160 = vrot.lane.b32.xlu1 %v7498_v53, %s6489_s12 }
 0x1c0   :  { %1983 = vrot.lane.b32.xlu0 %v2086_v22, %s6487_s10 }
 0x1c1   :  { %v7503_v59 = vpop.permute.xlu1 %2289 }
 0x1c2   :  { %10183 = vst [vmem:[#allocation24_spill] sm:$0xff] %v7503_v59  ;;  %v7505_v16 = vpop.permute.xlu0 %1959 }
 0x1c3   :  { %10184 = vst [vmem:[#allocation25_spill] sm:$0xff] %v7505_v16  ;;  %2325 = vrot.lane.b32.xlu1 %v7498_v53, %s6486_s1 }
 0x1c4   :  { %1818 = vrot.lane.b32.xlu0 %v2086_v22, %s6488_s11 }
 0x1c5   :  { %v7510_v40 = vpop.permute.xlu1 %1571 }
 0x1c6   :  { %10185 = vst [vmem:[#allocation26_spill] sm:$0xff] %v7510_v40  ;;  %v7512_v18 = vpop.permute.xlu0 %1802  ;;  %v1624_v8 = vsel %vm1621_vm5, %v7393_v12, %v7510_v40 }
 0x1c7   :  { %10186 = vst [vmem:[#allocation27_spill] sm:$0xff] %v7512_v18  ;;  %1672 = vst [vmem:[#allocation3 + $0x250] sm:$0xff] %v1624_v8  ;;  %1995 = vrot.lane.b32.xlu1 %v7498_v53, %s6487_s10 }
 0x1c8   :  { %1257 = vrot.lane.b32.xlu0 %v2086_v22, %s6484_s27 }
 0x1c9   :  { %v7520_v17 = vpop.permute.xlu1 %1398 }
 0x1ca   :  { %10187 = vst [vmem:[#allocation28_spill] sm:$0xff] %v7520_v17  ;;  %v7522_v62 = vpop.permute.xlu0 %1794  ;;  %v1443_v57 = vsel %vm1440_vm8, %v7406_v48, %v7520_v17 }
 0x1cb   :  { %10188 = vst [vmem:[#allocation29_spill] sm:$0xff] %v7522_v62  ;;  %1487 = vst [vmem:[#allocation3 + $0x190] sm:$0xff] %v1443_v57  ;;  %1830 = vrot.lane.b32.xlu1 %v7498_v53, %s6488_s11 }
 0x1cc   :  { %1092 = vrot.lane.b32.xlu0 %v2086_v22, %s6485_s28 }
 0x1cd   :  { %v7530_v8 = vpop.permute.xlu1 %1235 }
 0x1ce   :  { %10189 = vst [vmem:[#allocation30_spill] sm:$0xff] %v7530_v8  ;;  %v1234_v30 = vpop.permute.xlu0 %1233 }
 0x1cf   :  { %v1278_v43 = vsel %vm1275_vm9, %v7421_v28, %v1234_v30  ;;  %v1279_v31 = vsel %vm1275_vm9, %v1234_v30, %v7530_v8  ;;  %2305 = vrot.lane.b32.xlu1 %v7536_v26, %s6486_s1 }
 0x1d0   :  { %1322 = vst [vmem:[#allocation3 + $0xd0] sm:$0xff] %v1278_v43  ;;  %1323 = vst [vmem:[#allocation3 + $0xd8] sm:$0xff] %v1279_v31  ;;  %1601 = vrot.lane.b32.xlu0 %v7480_v61, %s6482_s3 }
 0x1d1   :  { %v7542_v22 = vpop.permute.xlu1 %1070 }
 0x1d2   :  { %10190 = vst [vmem:[#allocation31_spill] sm:$0xff] %v7542_v22  ;;  %v1069_v57 = vpop.permute.xlu0 %1068 }
 0x1d3   :  { %v1113_v25 = vsel %vm1110_vm10, %v7434_v1, %v1069_v57  ;;  %v1114_v30 = vsel %vm1110_vm10, %v1069_v57, %v7542_v22  ;;  %2140 = vrot.lane.b32.xlu1 %v7536_v26, %s6489_s12 }
 0x1d4   :  { %1157 = vst [vmem:[#allocation3 + $0x10] sm:$0xff] %v1113_v25  ;;  %1158 = vst [vmem:[#allocation3 + $0x18] sm:$0xff] %v1114_v30  ;;  %1424 = vrot.lane.b32.xlu0 %v7480_v61, %s6483_s26  ;;  %v7569_v30 = vld [vmem:[%s10036_s4 + $0x8] sm:$0xff] }
 0x1d5   :  { %v7552_v31 = vpop.permute.xlu1 %1595  ;;  %10191 = vst [vmem:[#allocation32_spill] sm:$0xff] %v7569_v30  ;;  %2731 = vmatprep.mubr.f32.mxu1 %v7569_v30 }
 0x1d6   :  { %v7554_v43 = vpop.permute.xlu0 %1583 }
 0x1d7   :  { %1615 = vrot.lane.b32.xlu1 %v7556_v21, %s6482_s3 }
 0x1d8   :  { %2315 = vrot.lane.b32.xlu0 %v7480_v61, %s6486_s1 }
 0x1d9   :  { %v7562_v25 = vpop.permute.xlu1 %1418 }
 0x1da   :  { %v7564_v57 = vpop.permute.xlu0 %1408 }
 0x1db   :  { %1436 = vrot.lane.b32.xlu1 %v7556_v21, %s6483_s26 }
 0x1dc   :  { %2150 = vrot.lane.b32.xlu0 %v7480_v61, %s6489_s12 }
 0x1dd   :  { %v7576_v22 = vpop.permute.xlu1 %1253 }
 0x1de   :  { %v7578_v8 = vpop.permute.xlu0 %1243 }
 0x1df   :  { %1271 = vrot.lane.b32.xlu1 %v7556_v21, %s6484_s27 }
 0x1e0   :  { %1613 = vrot.lane.b32.xlu0 %v7498_v53, %s6482_s3 }
 0x1e1   :  { %v7584_v17 = vpop.permute.xlu1 %1088 }
 0x1e2   :  { %v7586_v40 = vpop.permute.xlu0 %1078 }
 0x1e3   :  { %1106 = vrot.lane.b32.xlu1 %v7556_v21, %s6485_s28 }
 0x1e4   :  { %1434 = vrot.lane.b32.xlu0 %v7498_v53, %s6483_s26 }
 0x1e5   :  { %v7592_v30 = vpop.permute.xlu1 %2309 }
 0x1e6   :  { %v7594_v49 = vpop.permute.xlu0 %2134 }
 0x1e7   :  { %2293 = vrot.lane.b32.xlu1 %v7596_v44, %s6486_s1 }
 0x1e8   :  { %1269 = vrot.lane.b32.xlu0 %v7498_v53, %s6484_s27 }
 0x1e9   :  { %v7602_v62 = vpop.permute.xlu1 %2136 }
 0x1ea   :  { %v7604_v18 = vpop.permute.xlu0 %2299 }
 0x1eb   :  { %10192 = vst [vmem:[#allocation33_spill] sm:$0xff] %v7604_v18  ;;  %2317 = vrot.lane.b32.xlu1 %v7606_v13, %s6486_s1  ;;  %v6121_v18 = vunpack.i.h.bf16 %v7314_v46 }
 0x1ec   :  { %1104 = vrot.lane.b32.xlu0 %v7498_v53, %s6485_s28 }
 0x1ed   :  { %v7612_v55 = vpop.permute.xlu1 %2301 }
 0x1ee   :  { %v7614_v2 = vpop.permute.xlu0 %1969 }
 0x1ef   :  { %10193 = vst [vmem:[#allocation34_spill] sm:$0xff] %v7614_v2  ;;  %2152 = vrot.lane.b32.xlu1 %v7606_v13, %s6489_s12 }
 0x1f0   :  { %2327 = vrot.lane.b32.xlu0 %v7556_v21, %s6486_s1 }
 0x1f1   :  { %v7620_v16 = vpop.permute.xlu1 %1979 }
 0x1f2   :  { %10194 = vst [vmem:[#allocation35_spill] sm:$0xff] %v7620_v16  ;;  %v7622_v41 = vpop.permute.xlu0 %1573 }
 0x1f3   :  { %10195 = vst [vmem:[#allocation36_spill] sm:$0xff] %v7622_v41  ;;  %2329 = vrot.lane.b32.xlu1 %v7624_v39, %s6486_s1 }
 0x1f4   :  { %2162 = vrot.lane.b32.xlu0 %v7556_v21, %s6489_s12 }
 0x1f5   :  { %v7630_v53 = vpop.permute.xlu1 %1971 }
 0x1f6   :  { %10196 = vst [vmem:[#allocation37_spill] sm:$0xff] %v7630_v53  ;;  %v7632_v2 = vpop.permute.xlu0 %1804 }
 0x1f7   :  { %10197 = vst [vmem:[#allocation38_spill] sm:$0xff] %v7632_v2  ;;  %2164 = vrot.lane.b32.xlu1 %v7624_v39, %s6489_s12  ;;  %v7650_v2 = vld [vmem:[#allocation2 + $0xd8] sm:$0xff] }
 0x1f8   :  { %2291 = vrot.lane.b32.xlu0 %v7316_v15, %s6486_s1  ;;  %10201 = vst [vmem:[#allocation42_spill] sm:$0xff] %v7650_v2 }
 0x1f9   :  { %v7638_v16 = vpop.permute.xlu1 %1814 }
 0x1fa   :  { %10198 = vst [vmem:[#allocation39_spill] sm:$0xff] %v7638_v16  ;;  %v7640_v41 = vpop.permute.xlu0 %1400 }
 0x1fb   :  { %10199 = vst [vmem:[#allocation40_spill] sm:$0xff] %v7640_v41  ;;  %2128 = vrot.lane.b32.xlu1 %v7596_v44, %s6489_s12 }
 0x1fc   :  { %2126 = vrot.lane.b32.xlu0 %v7316_v15, %s6489_s12 }
 0x1fd   :  { %v7646_v6 = vpop.permute.xlu1 %1806 }
 0x1fe   :  { %10200 = vst [vmem:[#allocation41_spill] sm:$0xff] %v7646_v6  ;;  %v7648_v53 = vpop.permute.xlu0 %2144 }
 0x1ff   :  { %1619 = vrot.lane.b32.xlu1 %v7650_v2, %s6482_s3 }
 0x200   :  { %1617 = vrot.lane.b32.xlu0 %v7624_v39, %s6482_s3 }
 0x201   :  { %v7656_v16 = vpop.permute.xlu1 %1981 }
 0x202   :  { %10202 = vst [vmem:[#allocation43_spill] sm:$0xff] %v7656_v16  ;;  %v7658_v41 = vpop.permute.xlu0 %1585  ;;  %v7689_v16 = vld [vmem:[#allocation2 + $0x68] sm:$0xff] }
 0x203   :  { %10203 = vst [vmem:[#allocation44_spill] sm:$0xff] %v7658_v41  ;;  %1999 = vrot.lane.b32.xlu1 %v7624_v39, %s6487_s10  ;;  %10211 = vst [vmem:[#allocation52_spill] sm:$0xff] %v7689_v16 }
 0x204   :  { %1997 = vrot.lane.b32.xlu0 %v7556_v21, %s6487_s10 }
 0x205   :  { %v7664_v6 = vpop.permute.xlu1 %1587 }
 0x206   :  { %10204 = vst [vmem:[#allocation45_spill] sm:$0xff] %v7664_v6  ;;  %v7666_v59 = vpop.permute.xlu0 %1410 }
 0x207   :  { %10205 = vst [vmem:[#allocation46_spill] sm:$0xff] %v7666_v59  ;;  %1605 = vrot.lane.b32.xlu1 %v7668_v10, %s6482_s3 }
 0x208   :  { %1603 = vrot.lane.b32.xlu0 %v7606_v13, %s6482_s3 }
 0x209   :  { %v7674_v2 = vpop.permute.xlu1 %1816 }
 0x20a   :  { %10207 = vst [vmem:[#allocation48_spill] sm:$0xff] %v7674_v2  ;;  %v7676_v41 = vpop.permute.xlu0 %1245 }
 0x20b   :  { %10208 = vst [vmem:[#allocation49_spill] sm:$0xff] %v7676_v41  ;;  %1987 = vrot.lane.b32.xlu1 %v7606_v13, %s6487_s10 }
 0x20c   :  { %1985 = vrot.lane.b32.xlu0 %v7480_v61, %s6487_s10 }
 0x20d   :  { %v7682_v6 = vpop.permute.xlu1 %1412 }
 0x20e   :  { %10209 = vst [vmem:[#allocation50_spill] sm:$0xff] %v7682_v6  ;;  %v7684_v59 = vpop.permute.xlu0 %1080  ;;  %v6116_v6 = vunpack.i.h.bf16 %v7312_v45  ;;  %v1629_v45 = vsel %vm1621_vm5, %v7458_v52, %v7554_v43 }
 0x20f   :  { %10210 = vst [vmem:[#allocation51_spill] sm:$0xff] %v7684_v59  ;;  %v1118_v10 = vsel %vm1110_vm10, %v7586_v40, %v7684_v59  ;;  %1591 = vrot.lane.b32.xlu1 %v7689_v16, %s6482_s3  ;;  %v6120_v59 = vunpack.i.l.bf16 %v7314_v46 }
 0x210   :  { %1163 = vst [vmem:[#allocation3 + $0x40] sm:$0xff] %v1118_v10  ;;  %1589 = vrot.lane.b32.xlu0 %v7536_v26, %s6482_s3  ;;  %v1634_v10 = vsel %vm1621_vm5, %v6116_v6, %v7552_v31 }
 0x211   :  { %v7695_v41 = vpop.permute.xlu1 %1247  ;;  %v1628_v6 = vsel %vm1621_vm5, %v6120_v59, %v7458_v52  ;;  %v6125_v52 = vunpack.i.l.bf16 %v7337_v60  ;;  %v1457_v59 = vsel %vm1440_vm8, %v7374_v3, %v7400_v32 }
 0x212   :  { %10212 = vst [vmem:[#allocation53_spill] sm:$0xff] %v7695_v41  ;;  %v7697_v2 = vpop.permute.xlu0 %1597 }
 0x213   :  { %10213 = vst [vmem:[#allocation54_spill] sm:$0xff] %v7697_v2  ;;  %v1635_v35 = vsel %vm1621_vm5, %v7552_v31, %v7697_v2  ;;  %1975 = vrot.lane.b32.xlu1 %v7536_v26, %s6487_s10  ;;  %v7717_v2 = vld [vmem:[#allocation2 + $0x30] sm:$0xff]  ;;  %v1622_v31 = vsel %vm1621_vm5, %v6121_v18, %v7370_v63 }
 0x214   :  { %1973 = vrot.lane.b32.xlu0 %v7416_v29, %s6487_s10  ;;  %2669 = vmatprep.subr.mxu1 %v1635_v35  ;;  %v1623_v35 = vsel %vm1621_vm5, %v7370_v63, %v7393_v12  ;;  %v1456_v63 = vsel %vm1440_vm8, %v6125_v52, %v7374_v3  ;;  %v6126_v12 = vunpack.i.h.bf16 %v7337_v60  ;;  %v1447_v60 = vsel %vm1440_vm8, %v7464_v51, %v7564_v57 }
 0x215   :  { %v7713_v41 = vpop.permute.xlu1 %1082  ;;  %2670 = vmatpush1.msra.mxu1 %v1634_v10 }
 0x216   :  { %v7715_v16 = vpop.permute.xlu0 %1420  ;;  %2671 = vmatprep.subr.mxu1 %v1629_v45 }
 0x217   :  { %1577 = vrot.lane.b32.xlu1 %v7717_v2, %s6482_s3  ;;  %2672 = vmatpush1.msra.mxu1 %v1628_v6  ;;  %v1452_v18 = vsel %vm1440_vm8, %v7562_v25, %v7715_v16 }
 0x218   :  { %1575 = vrot.lane.b32.xlu0 %v7596_v44, %s6482_s3  ;;  %2673 = vmatprep.subr.mxu1 %v1623_v35  ;;  %v6130_v35 = vunpack.i.l.bf16 %v7339_v27 }
 0x219   :  { %v7731_v10 = vpop.permute.xlu1 %2148  ;;  %2674 = vmatpush1.msra.mxu1 %v1622_v31 }
 0x21a   :  { %v7733_v46 = vpop.permute.xlu0 %1255  ;;  %2675 = vmatprep.subr.mxu1 %v1457_v59  ;;  %v1446_v3 = vsel %vm1440_vm8, %v6130_v35, %v7464_v51  ;;  %v6135_v59 = vunpack.i.l.bf16 %v7348_v34 }
 0x21b   :  { %1963 = vrot.lane.b32.xlu1 %v7596_v44, %s6487_s10  ;;  %2676 = vmatpush1.msra.mxu1 %v1456_v63 }
 0x21c   :  { %1961 = vrot.lane.b32.xlu0 %v7316_v15, %s6487_s10  ;;  %2677 = vmatprep.subr.mxu1 %v1452_v18  ;;  %v1451_v15 = vsel %vm1440_vm8, %v6126_v12, %v7562_v25  ;;  %v6131_v25 = vunpack.i.h.bf16 %v7339_v27  ;;  %v1292_v27 = vsel %vm1275_vm9, %v7385_v11, %v7412_v23  ;;  %v1291_v18 = vsel %vm1275_vm9, %v6135_v59, %v7385_v11 }
 0x21d   :  { %v7749_v45 = vpop.permute.xlu1 %2313  ;;  %2678 = vmatpush1.msra.mxu1 %v1451_v15  ;;  %v6140_v11 = vunpack.i.l.bf16 %v7350_v58 }
 0x21e   :  { %v7751_v6 = vpop.permute.xlu0 %1090  ;;  %2679 = vmatprep.subr.mxu1 %v1447_v60  ;;  %v1441_v51 = vsel %vm1440_vm8, %v6131_v25, %v7378_v24  ;;  %v6141_v60 = vunpack.i.h.bf16 %v7350_v58  ;;  %v1127_v58 = vsel %vm1110_vm10, %v7402_v20, %v7427_v9 }
 0x21f   :  { %1832 = vrot.lane.b32.xlu1 %v7556_v21, %s6488_s11  ;;  %2680 = vmatpush1.msra.mxu1 %v1446_v3  ;;  %v1442_v21 = vsel %vm1440_vm8, %v7378_v24, %v7406_v48  ;;  %v6136_v48 = vunpack.i.h.bf16 %v7348_v34  ;;  %v1287_v24 = vsel %vm1275_vm9, %v7576_v22, %v7733_v46  ;;  %v1277_v3 = vsel %vm1275_vm9, %v7395_v56, %v7421_v28 }
 0x220   :  { %1438 = vrot.lane.b32.xlu0 %v7624_v39, %s6483_s26  ;;  %2681 = vmatprep.subr.mxu1 %v1442_v21 }
 0x221   :  { %v7765_v31 = vpop.permute.xlu1 %1599  ;;  %2682 = vmatpush1.msra.mxu1 %v1441_v51  ;;  %v1286_v35 = vsel %vm1275_vm9, %v6136_v48, %v7576_v22  ;;  %v1281_v22 = vsel %vm1275_vm9, %v6140_v11, %v7470_v36  ;;  %v1276_v51 = vsel %vm1275_vm9, %v6141_v60, %v7395_v56  ;;  %v6146_v56 = vunpack.i.h.bf16 %v7357_v50 }
 0x222   :  { %v7767_v52 = vpop.permute.xlu0 %2146  ;;  %2683 = vmatprep.subr.mxu1 %v1292_v27  ;;  %v1745_v27 = vld [vmem:[#allocation2 + $0x20] sm:$0xff]  ;;  %v1122_v48 = vsel %vm1110_vm10, %v7584_v17, %v7751_v6  ;;  %v6151_v11 = vunpack.i.h.bf16 %v7359_v5 }
 0x223   :  { %1426 = vrot.lane.b32.xlu1 %v7606_v13, %s6483_s26  ;;  %2684 = vmatpush1.msra.mxu1 %v1291_v18  ;;  %v1121_v18 = vsel %vm1110_vm10, %v6146_v56, %v7584_v17 }
 0x224   :  { %1834 = vrot.lane.b32.xlu0 %v7624_v39, %s6488_s11  ;;  %2685 = vmatprep.subr.mxu1 %v1287_v24 }
 0x225   :  { %v7783_v63 = vpop.permute.xlu1 %1422  ;;  %2686 = vmatpush1.msra.mxu1 %v1286_v35 }
 0x226   :  { %v7785_v12 = vpop.permute.xlu0 %2311 }
 0x227   :  { %1822 = vrot.lane.b32.xlu1 %v7606_v13, %s6488_s11 }
 0x228   :  { %1820 = vrot.lane.b32.xlu0 %v7480_v61, %s6488_s11  ;;  %v1282_v61 = vsel %vm1275_vm9, %v7470_v36, %v7578_v8 }
 0x229   :  { %v7799_v15 = vpop.permute.xlu1 %1259  ;;  %2687 = vmatprep.subr.mxu1 %v1282_v61 }
 0x22a   :  { %v7801_v34 = vpop.permute.xlu0 %2303  ;;  %2688 = vmatpush1.msra.mxu1 %v1281_v22 }
 0x22b   :  { %1808 = vrot.lane.b32.xlu1 %v7416_v29, %s6488_s11  ;;  %2689 = vmatprep.subr.mxu1 %v1277_v3  ;;  %v6145_v29 = vunpack.i.l.bf16 %v7357_v50  ;;  %v1117_v50 = vsel %vm1110_vm10, %v7476_v14, %v7586_v40  ;;  %v1112_v40 = vsel %vm1110_vm10, %v7408_v33, %v7434_v1  ;;  %v2184_v3 = vsel %vm2168_vm12, %v7414_v47, %v7443_v37 }
 0x22c   :  { %1414 = vrot.lane.b32.xlu0 %v7536_v26, %s6483_s26  ;;  %2690 = vmatpush1.msra.mxu1 %v1276_v51  ;;  %v2175_v47 = vsel %vm2168_vm12, %v7594_v49, %v7602_v62 }
 0x22d   :  { %v7817_v25 = vpop.permute.xlu1 %1094  ;;  %v1126_v28 = vsel %vm1110_vm10, %v6145_v29, %v7402_v20  ;;  %2691 = vmatprep.subr.mxu1 %v1127_v58  ;;  %v6150_v20 = vunpack.i.l.bf16 %v7359_v5  ;;  %v1111_v5 = vsel %vm1110_vm10, %v6151_v11, %v7408_v33  ;;  %v2180_v33 = vsel %vm2168_vm12, %v7767_v52, %v7731_v10  ;;  %v10215_v58 = vld [vmem:[#allocation22_spill] sm:$0xff] }
 0x22e   :  { %v7819_v21 = vpop.permute.xlu0 %2138  ;;  %2692 = vmatpush1.msra.mxu1 %v1126_v28 }
 0x22f   :  { %1402 = vrot.lane.b32.xlu1 %v7596_v44, %s6483_s26  ;;  %2693 = vmatprep.subr.mxu1 %v1122_v48  ;;  %v1116_v61 = vsel %vm1110_vm10, %v6150_v20, %v7476_v14  ;;  %v2349_v14 = vsel %vm2333_vm11, %v7364_v54, %v7452_v0  ;;  %v2179_v54 = vsel %vm2168_vm12, %v7648_v53, %v7767_v52  ;;  %v10218_v48 = vld [vmem:[#allocation24_spill] sm:$0xff] }
 0x230   :  { %1810 = vrot.lane.b32.xlu0 %v7536_v26, %s6488_s11  ;;  %2694 = vmatpush1.msra.mxu1 %v1121_v18  ;;  %v2174_v53 = vsel %vm2168_vm12, %v7488_v38, %v7594_v49  ;;  %v2170_v52 = vsel %vm2168_vm12, %v7460_v19, %v7494_v4  ;;  %v10214_v49 = vld [vmem:[#allocation33_spill] sm:$0xff]  ;;  %v10219_v20 = vld [vmem:[#allocation20_spill] sm:$0xff] }
 0x231   :  { %v7833_v36 = vpop.permute.xlu1 %2160  ;;  %2695 = vmatprep.subr.mxu1 %v1117_v50  ;;  %v2340_v38 = vsel %vm2333_vm11, %v10214_v49, %v7612_v55  ;;  %v2339_v28 = vsel %vm2333_vm11, %v10215_v58, %v10214_v49  ;;  %v2335_v18 = vsel %vm2333_vm11, %v10219_v20, %v10218_v48  ;;  %v10220_v50 = vld [vmem:[#allocation35_spill] sm:$0xff] }
 0x232   :  { %v7835_v59 = vpop.permute.xlu0 %1983  ;;  %v2185_v22 = vsel %vm2168_vm12, %v7443_v37, %v7833_v36  ;;  %2696 = vmatpush1.msra.mxu1 %v1116_v61  ;;  %v2344_v37 = vsel %vm2333_vm11, %v7592_v30, %v7785_v12 }
 0x233   :  { %1798 = vrot.lane.b32.xlu1 %v7596_v44, %s6488_s11  ;;  %2697 = vmatprep.subr.mxu1 %v1112_v40  ;;  %v10223_v40 = vld [vmem:[#allocation34_spill] sm:$0xff] }
 0x234   :  { %1796 = vrot.lane.b32.xlu0 %v1745_v27, %s6488_s11  ;;  %2698 = vmatpush1.msra.mxu1 %v1111_v5  ;;  %v10217_v27 = vld [vmem:[#allocation43_spill] sm:$0xff] }
 0x235   :  { %v7850_v24 = vpop.permute.xlu1 %2325  ;;  %2699 = vmatprep.subr.mxu1 %v2185_v22  ;;  %v2014_v11 = vsel %vm2003_vm6, %v10220_v50, %v10217_v27  ;;  %v10235_v50 = vld [vmem:[#allocation41_spill] sm:$0xff] }
 0x236   :  { %v7852_v35 = vpop.permute.xlu0 %1818  ;;  %v2350_v17 = vsel %vm2333_vm11, %v7452_v0, %v7850_v24  ;;  %2700 = vmatpush2.msra.mxu1 %v2184_v3  ;;  %v2345_v0 = vsel %vm2333_vm11, %v7785_v12, %v7749_v45  ;;  %v2169_v12 = vsel %vm2168_vm12, %v7423_v42, %v7460_v19  ;;  %v10216_v42 = vld [vmem:[#allocation16_spill] sm:$0xff] }
 0x237   :  { %1261 = vrot.lane.b32.xlu1 %v7606_v13, %s6484_s27  ;;  %2780 = vmatprep.subr.mxu0 %v2350_v17  ;;  %v2019_v19 = vsel %vm2003_vm6, %v10216_v42, %v7472_v7  ;;  %v10222_v17 = vld [vmem:[#allocation37_spill] sm:$0xff] }
 0x238   :  { %1273 = vrot.lane.b32.xlu0 %v7624_v39, %s6484_s27  ;;  %2781 = vmatpush1.msra.mxu0 %v2349_v14  ;;  %v10225_v14 = vld [vmem:[#allocation23_spill] sm:$0xff]  ;;  %v7990_v42 = vld [vmem:[%s10036_s4 + $0x28] sm:$0xff] }
 0x239   :  { %v7875_v1 = vpop.permute.xlu1 %1995  ;;  %2701 = vmatprep.subr.mxu1 %v2180_v33  ;;  %2782 = vmatprep.subr.mxu0 %v2345_v0  ;;  %v2009_v3 = vsel %vm2003_vm6, %v10225_v14, %v10223_v40  ;;  %v10226_v33 = vld [vmem:[#allocation25_spill] sm:$0xff] }
 0x23a   :  { %v7877_v60 = vpop.permute.xlu0 %1257  ;;  %2702 = vmatpush2.msra.mxu1 %v2179_v54  ;;  %2783 = vmatpush1.msra.mxu0 %v2344_v37  ;;  %v2020_v30 = vsel %vm2003_vm6, %v7472_v7, %v7875_v1  ;;  %v10221_v7 = vld [vmem:[#allocation14_spill] sm:$0xff] }
 0x23b   :  { %1237 = vrot.lane.b32.xlu1 %v7596_v44, %s6484_s27  ;;  %2703 = vmatprep.subr.mxu1 %v2175_v47  ;;  %v2334_v61 = vsel %vm2333_vm11, %v10221_v7, %v10219_v20  ;;  %v10227_v54 = vld [vmem:[#allocation18_spill] sm:$0xff]  ;;  %v10228_v47 = vld [vmem:[#allocation47_spill] sm:$0xff] }
 0x23c   :  { %1249 = vrot.lane.b32.xlu0 %v7536_v26, %s6484_s27  ;;  %2704 = vmatpush2.msra.mxu1 %v2174_v53  ;;  %v2005_v0 = vsel %vm2003_vm6, %v10227_v54, %v10226_v33  ;;  %v10229_v37 = vld [vmem:[#allocation42_spill] sm:$0xff]  ;;  %v2558_v53 = vld [vmem:[#allocation3 + $0x480] sm:$0xff]  ;;  %v10238_v54 = vld [vmem:[#allocation29_spill] sm:$0xff] }
 0x23d   :  { %v7901_v29 = vpop.permute.xlu1 %1830  ;;  %2705 = vmatprep.subr.mxu1 %v2170_v52  ;;  %2784 = vmatprep.subr.mxu0 %v2340_v38  ;;  %v10230_v52 = vld [vmem:[#allocation21_spill] sm:$0xff] }
 0x23e   :  { %v7903_v51 = vpop.permute.xlu0 %1092  ;;  %2706 = vmatpush2.msra.mxu1 %v2169_v12  ;;  %2785 = vmatpush1.msra.mxu0 %v2339_v28  ;;  %v10231_v38 = vld [vmem:[#allocation17_spill] sm:$0xff]  ;;  %v7984_v28 = vld [vmem:[#allocation2] sm:$0xff] }
 0x23f   :  { %1096 = vrot.lane.b32.xlu1 %v7606_v13, %s6485_s28  ;;  %2707 = vmatprep.subr.mxu1 %v2020_v30  ;;  %v1855_v30 = vsel %vm1838_vm7, %v10230_v52, %v7901_v29  ;;  %v1854_v58 = vsel %vm1838_vm7, %v10231_v38, %v10230_v52  ;;  %v2534_v52 = vld [vmem:[#allocation3 + $0x3c0] sm:$0xff] }
 0x240   :  { %1108 = vrot.lane.b32.xlu0 %v7624_v39, %s6485_s28  ;;  %v2015_v39 = vsel %vm2003_vm6, %v10217_v27, %v7835_v59  ;;  %2708 = vmatpush2.msra.mxu1 %v2019_v19  ;;  %v10232_v19 = vld [vmem:[#allocation48_spill] sm:$0xff] }
 0x241   :  { %v7927_v56 = vpop.permute.xlu1 %2305  ;;  %2709 = vmatprep.subr.mxu1 %v2015_v39  ;;  %2786 = vmatprep.subr.mxu0 %v2335_v18  ;;  %v1850_v27 = vsel %vm1838_vm7, %v10232_v19, %v7852_v35  ;;  %v10233_v39 = vld [vmem:[#allocation39_spill] sm:$0xff]  ;;  %v10234_v18 = vld [vmem:[#allocation52_spill] sm:$0xff] }
 0x242   :  { %v7929_v13 = vpop.permute.xlu0 %1601  ;;  %2710 = vmatpush2.msra.mxu1 %v2014_v11  ;;  %2787 = vmatpush1.msra.mxu0 %v2334_v61  ;;  %v1849_v20 = vsel %vm1838_vm7, %v10233_v39, %v10232_v19  ;;  %v10236_v11 = vld [vmem:[#allocation38_spill] sm:$0xff]  ;;  %v10240_v39 = vld [vmem:[#allocation15_spill] sm:$0xff] }
 0x243   :  { %1072 = vrot.lane.b32.xlu1 %v7596_v44, %s6485_s28  ;;  %v2010_v44 = vsel %vm2003_vm6, %v10223_v40, %v10222_v17  ;;  %v1845_v7 = vsel %vm1838_vm7, %v10236_v11, %v10235_v50  ;;  %v2464_v50 = vld [vmem:[#allocation3 + $0x190] sm:$0xff] }
 0x244   :  { %1084 = vrot.lane.b32.xlu0 %v7536_v26, %s6485_s28  ;;  %2711 = vmatprep.subr.mxu1 %v2010_v44  ;;  %v7963_v26 = vld [vmem:[%s10036_s4 + $0x10] sm:$0xff]  ;;  %v10237_v44 = vld [vmem:[#allocation27_spill] sm:$0xff] }
 0x245   :  { %v7953_v22 = vpop.permute.xlu1 %2140  ;;  %2712 = vmatpush2.msra.mxu1 %v2009_v3  ;;  %6036 = vmatmul.mubr.msk.f32.vlgmr.msra.gmra.mxu0 %vm2654_vm13, %v7963_v26  ;;  %v1844_v14 = vsel %vm1838_vm7, %v10237_v44, %v10236_v11  ;;  %v8018_v3 = vld [vmem:[%s10036_s4 + $0x40] sm:$0xff] }
 0x246   :  { %v7955_v5 = vpop.permute.xlu0 %1424  ;;  %2713 = vmatprep.subr.mxu1 %v2005_v0  ;;  %2826 = vmatprep.mubr.f32.mxu0 %v7984_v28  ;;  %v10239_v0 = vld [vmem:[#allocation19_spill] sm:$0xff] }
 0x247   :  { %10224 = vst [vmem:[#allocation33_spill] sm:$0xff] %v7955_v5  ;;  %2154 = vrot.lane.b32.xlu1 %v10228_v47, %s6489_s12  ;;  %2714 = vmatpush2.msra.mxu1 %v2558_v53  ;;  %v1840_v53 = vsel %vm1838_vm7, %v10239_v0, %v10238_v54  ;;  %v1707_v11 = vld [vmem:[#allocation2 + $0x80] sm:$0xff]  ;;  %v1701_v0 = vld [vmem:[#allocation2 + $0x48] sm:$0xff] }
 0x248   :  { %2166 = vrot.lane.b32.xlu0 %v10229_v37, %s6489_s12  ;;  %2715 = vmatprep.subr.mxu1 %v1855_v30 }
 0x249   :  { %v7975_v12 = vpop.permute.xlu1 %1615  ;;  %2716 = vmatpush2.msra.mxu1 %v1854_v58  ;;  %6037 = vmatmul.mubr.msk.f32.gmra.mxu0 %vm2654_vm13, %v7990_v42  ;;  %v1713_v58 = vld [vmem:[#allocation2 + $0xb8] sm:$0xff] }
 0x24a   :  { %v7977_v49 = vpop.permute.xlu0 %2315  ;;  %2717 = vmatprep.subr.mxu1 %v1850_v27  ;;  %2832 = vmatprep.mubr.f32.mxu0 %v7984_v28  ;;  %v1712_v27 = vld [vmem:[#allocation2 + $0xb0] sm:$0xff] }
 0x24b   :  { %2130 = vrot.lane.b32.xlu1 %v7717_v2, %s6489_s12  ;;  %2718 = vmatpush2.msra.mxu1 %v1849_v20 }
 0x24c   :  { %2142 = vrot.lane.b32.xlu0 %v10234_v18, %s6489_s12  ;;  %2719 = vmatprep.subr.mxu1 %v1845_v7  ;;  %v1706_v7 = vld [vmem:[#allocation2 + $0x78] sm:$0xff] }
 0x24d   :  { %v8005_v61 = vpop.permute.xlu1 %1436  ;;  %2720 = vmatpush2.msra.mxu1 %v1844_v14  ;;  %6038 = vmatmul.mubr.msk.f32.gmra.mxu0 %vm2654_vm13, %v8018_v3 }
 0x24e   :  { %v8007_v40 = vpop.permute.xlu0 %2150  ;;  %2721 = vmatprep.subr.mxu1 %v1840_v53  ;;  %2838 = vmatprep.mubr.f32.mxu0 %v7984_v28  ;;  %v1700_v53 = vld [vmem:[#allocation2 + $0x40] sm:$0xff] }
 0x24f   :  { %1989 = vrot.lane.b32.xlu1 %v10228_v47, %s6487_s10  ;;  %2722 = vmatpush2.msra.mxu1 %v2534_v52  ;;  %v1695_v52 = vld [vmem:[#allocation2 + $0x10] sm:$0xff] }
 0x250   :  { %2001 = vrot.lane.b32.xlu0 %v10229_v37, %s6487_s10  ;;  %2723 = vmatprep.subr.mxu1 %v1713_v58  ;;  %v1637_v58 = vsel %vm1621_vm5, %v7765_v31, %v7929_v13 }
 0x251   :  { %v8027_v30 = vpop.permute.xlu1 %1271  ;;  %2724 = vmatpush2.msra.mxu1 %v1712_v27  ;;  %v8057_v27 = vld [vmem:[%s10036_s4 + $0x20] sm:$0xff] }
 0x252   :  { %v1614_v38 = vpop.permute.xlu0 %1613  ;;  %2725 = vmatprep.subr.mxu1 %v1707_v11  ;;  %10242 = vst [vmem:[#allocation16_spill] sm:$0xff] %v8057_v27 }
 0x253   :  { %v1643_v19 = vsel %vm1621_vm5, %v1614_v38, %v7975_v12  ;;  %v1642_v20 = vsel %vm1621_vm5, %v10240_v39, %v1614_v38  ;;  %1965 = vrot.lane.b32.xlu1 %v7717_v2, %s6487_s10  ;;  %2726 = vmatpush2.msra.mxu1 %v1706_v7  ;;  %v8047_v38 = vld [vmem:[%s10036_s4] sm:$0xff]  ;;  %v10243_v39 = vld [vmem:[#allocation54_spill] sm:$0xff] }
 0x254   :  { %1977 = vrot.lane.b32.xlu0 %v10234_v18, %s6487_s10  ;;  %2845 = vmatprep.subr.mxu0 %v1643_v19  ;;  %10241 = vst [vmem:[#allocation22_spill] sm:$0xff] %v8047_v38  ;;  %v1694_v19 = vld [vmem:[#allocation2 + $0x8] sm:$0xff] }
 0x255   :  { %v8040_v44 = vpop.permute.xlu1 %1106  ;;  %2727 = vmatprep.subr.mxu1 %v1701_v0  ;;  %2846 = vmatpush1.msra.mxu0 %v1642_v20  ;;  %v1636_v20 = vsel %vm1621_vm5, %v10243_v39, %v7765_v31  ;;  %v10244_v0 = vld [vmem:[#allocation45_spill] sm:$0xff]  ;;  %v8076_v31 = vld [vmem:[%s10036_s4 + $0x18] sm:$0xff]  ;;  %v10248_v39 = vld [vmem:[#allocation36_spill] sm:$0xff] }
 0x256   :  { %v1435_v14 = vpop.permute.xlu0 %1434  ;;  %2728 = vmatpush2.msra.mxu1 %v1700_v53  ;;  %2847 = vmatprep.subr.mxu0 %v1637_v58  ;;  %v10245_v53 = vld [vmem:[#allocation44_spill] sm:$0xff]  ;;  %10246 = vst [vmem:[#allocation43_spill] sm:$0xff] %v8076_v31 }
 0x257   :  { %1824 = vrot.lane.b32.xlu1 %v10228_v47, %s6488_s11  ;;  %2729 = vmatprep.subr.mxu1 %v1695_v52  ;;  %v1631_v52 = vsel %vm1621_vm5, %v10245_v53, %v10244_v0  ;;  %v1630_v58 = vsel %vm1621_vm5, %v7554_v43, %v10245_v53  ;;  %v8099_v43 = vld [vmem:[%s10036_s4 + $0x58] sm:$0xff]  ;;  %v2488_v53 = vld [vmem:[#allocation3 + $0x250] sm:$0xff] }
 0x258   :  { %1836 = vrot.lane.b32.xlu0 %v10229_v37, %s6488_s11  ;;  %2730 = vmatpush2.msra.mxu1 %v1694_v19  ;;  %v8086_v19 = vld [vmem:[%s10036_s4 + $0x38] sm:$0xff] }
 0x259   :  { %v8062_v11 = vpop.permute.xlu1 %2293  ;;  %2732 = vmatmul.mubr.f32.vlgmr.msra.gmra.mxu1 %v8047_v38  ;;  %2848 = vmatpush1.msra.mxu0 %v1636_v20  ;;  %10247 = vst [vmem:[#allocation24_spill] sm:$0xff] %v8086_v19  ;;  %v10249_v20 = vld [vmem:[#allocation26_spill] sm:$0xff] }
 0x25a   :  { %v8064_v7 = vpop.permute.xlu0 %1269  ;;  %2737 = vmatprep.mubr.f32.mxu1 %v8057_v27  ;;  %2849 = vmatprep.subr.mxu0 %v1631_v52  ;;  %v1625_v27 = vsel %vm1621_vm5, %v10249_v20, %v10248_v39  ;;  %v8107_v52 = vld [vmem:[%s10036_s4 + $0x30] sm:$0xff] }
 0x25b   :  { %1800 = vrot.lane.b32.xlu1 %v7717_v2, %s6488_s11  ;;  %2850 = vmatpush1.msra.mxu0 %v1630_v58  ;;  %10250 = vst [vmem:[#allocation20_spill] sm:$0xff] %v8107_v52  ;;  %v1459_v58 = vsel %vm1440_vm8, %v1435_v14, %v8005_v61 }
 0x25c   :  { %1812 = vrot.lane.b32.xlu0 %v10234_v18, %s6488_s11  ;;  %2851 = vmatprep.subr.mxu0 %v1625_v27  ;;  %v1458_v27 = vsel %vm1440_vm8, %v7400_v32, %v1435_v14  ;;  %v8133_v32 = vld [vmem:[%s10036_s4 + $0x48] sm:$0xff]  ;;  %v1453_v14 = vsel %vm1440_vm8, %v7715_v16, %v7783_v63  ;;  %v2633_v16 = vld [vmem:[%s10037_s5 + $0x18] sm:$0xff] }
 0x25d   :  { %v8091_v38 = vpop.permute.xlu1 %2317  ;;  %2738 = vmatmul.mubr.f32.gmra.mxu1 %v8076_v31  ;;  %2852 = vmatpush1.msra.mxu0 %v2488_v53  ;;  %v2632_v53 = vld [vmem:[%s10037_s5 + $0x10] sm:$0xff]  ;;  %v10256_v31 = vld [vmem:[#allocation40_spill] sm:$0xff] }
 0x25e   :  { %v8093_v54 = vpop.permute.xlu0 %1104  ;;  %2743 = vmatprep.mubr.f32.mxu1 %v8086_v19  ;;  %2853 = vmatprep.subr.mxu0 %v1459_v58  ;;  %v8120_v19 = vld [vmem:[%s10036_s4 + $0x50] sm:$0xff] }
 0x25f   :  { %2319 = vrot.lane.b32.xlu1 %v10228_v47, %s6486_s1  ;;  %10251 = vst [vmem:[#allocation35_spill] sm:$0xff] %v8120_v19  ;;  %6039 = vmatmul.mubr.msk.f32.gmra.mxu0 %vm2654_vm13, %v8099_v43  ;;  %v10253_v58 = vld [vmem:[#allocation46_spill] sm:$0xff] }
 0x260   :  { %2331 = vrot.lane.b32.xlu0 %v10229_v37, %s6486_s1  ;;  %v1454_v37 = vsel %vm1440_vm8, %v7783_v63, %v7955_v5  ;;  %2854 = vmatpush1.msra.mxu0 %v1458_v27  ;;  %v10255_v63 = vld [vmem:[#allocation32_spill] sm:$0xff] }
 0x261   :  { %v8115_v20 = vpop.permute.xlu1 %2152  ;;  %2744 = vmatmul.mubr.f32.gmra.mxu1 %v8107_v52  ;;  %2855 = vmatprep.subr.mxu0 %v1454_v37  ;;  %v2630_v5 = vld [vmem:[%s10037_s5] sm:$0xff] }
 0x262   :  { %v2328_v47 = vpop.permute.xlu0 %2327  ;;  %2749 = vmatprep.mubr.f32.mxu1 %v8120_v19  ;;  %2856 = vmatpush1.msra.mxu0 %v1453_v14 }
 0x263   :  { %2295 = vrot.lane.b32.xlu1 %v7717_v2, %s6486_s1  ;;  %v10252_v2 = vld [vmem:[#allocation50_spill] sm:$0xff]  ;;  %2909 = vmatprep.mubr.f32.mxu0 %v10255_v63 }
 0x264   :  { %2307 = vrot.lane.b32.xlu0 %v10234_v18, %s6486_s1  ;;  %v1449_v27 = vsel %vm1440_vm8, %v10253_v58, %v10252_v2  ;;  %v1448_v18 = vsel %vm1440_vm8, %v7564_v57, %v10253_v58  ;;  %v10257_v2 = vld [vmem:[#allocation28_spill] sm:$0xff]  ;;  %v1294_v57 = vsel %vm1275_vm9, %v8064_v7, %v8027_v30  ;;  %v2351_v58 = vsel %vm2333_vm11, %v7850_v24, %v2328_v47 }
 0x265   :  { %v8147_v37 = vpop.permute.xlu1 %2329  ;;  %2750 = vmatmul.mubr.f32.gmra.mxu1 %v8133_v32  ;;  %2857 = vmatprep.subr.mxu0 %v1449_v27  ;;  %v1444_v14 = vsel %vm1440_vm8, %v10257_v2, %v10256_v31  ;;  %v1293_v2 = vsel %vm1275_vm9, %v7412_v23, %v8064_v7  ;;  %v1288_v24 = vsel %vm1275_vm9, %v7733_v46, %v7877_v60  ;;  %v3347_v23 = vld [vmem:[%s10038_s6 + $0x10] sm:$0xff] }
 0x266   :  { %10254 = vst [vmem:[#allocation14_spill] sm:$0xff] %v8147_v37  ;;  %v8149_v52 = vpop.permute.xlu0 %2162  ;;  %v2352_v19 = vsel %vm2333_vm11, %v2328_v47, %v8147_v37  ;;  %2858 = vmatpush1.msra.mxu0 %v1448_v18  ;;  %v10258_v7 = vld [vmem:[#allocation53_spill] sm:$0xff]  ;;  %2998 = vmatprep.mubr.f32.mxu1 %v7984_v28 }
 0x267   :  { %2646 = vperm.xlu1 %6111, %v2632_v53   ;;  %2859 = vmatprep.subr.mxu0 %v1444_v14  ;;  %v2631_v53 = vld [vmem:[%s10037_s5 + $0x8] sm:$0xff] }
 0x268   :  { %2651 = vperm.xlu0 %6110, %v2633_v16   ;;  %2860 = vmatpush1.msra.mxu0 %v2464_v50  ;;  %v1289_v16 = vsel %vm1275_vm9, %v7877_v60, %v7799_v15  ;;  %v2347_v50 = vsel %vm2333_vm11, %v7977_v49, %v8091_v38  ;;  %v3348_v60 = vld [vmem:[%s10038_s6 + $0x18] sm:$0xff] }
 0x269   :  { %v8172_v27 = vpop.permute.xlu1 %2164  ;;  %2958 = vmatprep.subr.mxu1 %v2352_v19  ;;  %2861 = vmatprep.subr.mxu0 %v1294_v57  ;;  %v10259_v19 = vld [vmem:[#allocation49_spill] sm:$0xff]  ;;  %v2441_v57 = vld [vmem:[#allocation3 + $0xd8] sm:$0xff] }
 0x26a   :  { %v2292_v37 = vpop.permute.xlu0 %2291  ;;  %2959 = vmatpush1.msra.mxu1 %v2351_v58  ;;  %2862 = vmatpush1.msra.mxu0 %v1293_v2  ;;  %v1284_v47 = vsel %vm1275_vm9, %v10259_v19, %v10258_v7  ;;  %v1283_v14 = vsel %vm1275_vm9, %v7578_v8, %v10259_v19  ;;  %v3345_v58 = vld [vmem:[%s10038_s6] sm:$0xff]  ;;  %v2341_v8 = vsel %vm2333_vm11, %v7612_v55, %v7801_v34 }
 0x26b   :  { %2636 = vperm.xlu1 %6111, %v2630_v5   ;;  %2863 = vmatprep.subr.mxu0 %v1289_v16  ;;  %v2346_v5 = vsel %vm2333_vm11, %v7749_v45, %v7977_v49  ;;  %v2342_v45 = vsel %vm2333_vm11, %v7801_v34, %v7927_v56  ;;  %v2440_v49 = vld [vmem:[#allocation3 + $0xd0] sm:$0xff]  ;;  %v1124_v55 = vsel %vm1110_vm10, %v7903_v51, %v7817_v25 }
 0x26c   :  { %2641 = vperm.xlu0 %6110, %v2631_v53   ;;  %2864 = vmatpush1.msra.mxu0 %v1288_v24  ;;  %v1129_v53 = vsel %vm1110_vm10, %v8093_v54, %v8040_v44  ;;  %v3346_v24 = vld [vmem:[%s10038_s6 + $0x8] sm:$0xff]  ;;  %v1123_v34 = vsel %vm1110_vm10, %v7751_v6, %v7903_v51  ;;  %v2337_v19 = vsel %vm2333_vm11, %v2292_v37, %v8062_v11  ;;  %v2422_v6 = vld [vmem:[#allocation3 + $0x40] sm:$0xff]  ;;  %v2417_v51 = vld [vmem:[#allocation3 + $0x18] sm:$0xff] }
 0x26d   :  { %v8198_v18 = vpop.permute.xlu1 %2128  ;;  %2960 = vmatprep.subr.mxu1 %v2347_v50  ;;  %2865 = vmatprep.subr.mxu0 %v1284_v47  ;;  %v1128_v50 = vsel %vm1110_vm10, %v7427_v9, %v8093_v54  ;;  %v10260_v9 = vld [vmem:[#allocation51_spill] sm:$0xff]  ;;  %v2336_v47 = vsel %vm2333_vm11, %v10218_v48, %v2292_v37  ;;  %v2187_v48 = vsel %vm2168_vm12, %v8149_v52, %v8172_v27 }
 0x26e   :  { %v8200_v46 = vpop.permute.xlu0 %2126  ;;  %2961 = vmatpush1.msra.mxu1 %v2346_v5  ;;  %2866 = vmatpush1.msra.mxu0 %v1283_v14  ;;  %v1119_v54 = vsel %vm1110_vm10, %v10260_v9, %v7713_v41  ;;  %v2416_v14 = vld [vmem:[#allocation3 + $0x10] sm:$0xff] }
 0x26f   :  { %3361 = vperm.xlu1 %6111, %v3347_v23   ;;  %2867 = vmatprep.subr.mxu0 %v2441_v57 }
 0x270   :  { %3366 = vperm.xlu0 %6110, %v3348_v60   ;;  %2868 = vmatpush1.msra.mxu0 %v2440_v49 }
 0x271   :  { %v1620_v2 = vpop.permute.xlu1 %1619  ;;  %2962 = vmatprep.subr.mxu1 %v2342_v45  ;;  %2869 = vmatprep.subr.mxu0 %v1129_v53  ;;  %v2186_v45 = vsel %vm2168_vm12, %v7833_v36, %v8149_v52  ;;  %v2181_v53 = vsel %vm2168_vm12, %v7731_v10, %v8007_v40  ;;  %v2177_v36 = vsel %vm2168_vm12, %v7819_v21, %v7953_v22 }
 0x272   :  { %v1618_v16 = vpop.permute.xlu0 %1617  ;;  %2963 = vmatpush1.msra.mxu1 %v2341_v8  ;;  %2870 = vmatpush1.msra.mxu0 %v1128_v50  ;;  %v2172_v10 = vsel %vm2168_vm12, %v8200_v46, %v8198_v18 }
 0x273   :  { %v1645_v23 = vsel %vm1621_vm5, %v1618_v16, %v1620_v2  ;;  %3351 = vperm.xlu1 %6111, %v3345_v58   ;;  %2871 = vmatprep.subr.mxu0 %v1124_v55  ;;  %v1644_v8 = vsel %vm1621_vm5, %v7975_v12, %v1618_v16  ;;  %v2176_v12 = vsel %vm2168_vm12, %v7602_v62, %v7819_v21 }
 0x274   :  { %1693 = vst.msk [vmem:[#allocation3 + $0x2f8] sm:$0xff] %vm682_vm2, %v1645_v23  ;;  %3356 = vperm.xlu0 %6110, %v3346_v24   ;;  %2964 = vmatprep.subr.mxu1 %v2337_v19 }
 0x275   :  { %v8241_v5 = vpop.permute.xlu1 %1999  ;;  %2872 = vmatpush1.msra.mxu0 %v1123_v34  ;;  %2965 = vmatpush1.msra.mxu1 %v2336_v47 }
 0x276   :  { %v1998_v60 = vpop.permute.xlu0 %1997  ;;  %2873 = vmatprep.subr.mxu0 %v1119_v54  ;;  %6040 = vmatmul.mubr.msk.f32.vlgmr.msra.gmra.mxu1 %vm2654_vm13, %v7963_v26  ;;  %v2182_v26 = vsel %vm2168_vm12, %v8007_v40, %v8115_v20  ;;  %v2171_v40 = vsel %vm2168_vm12, %v7494_v4, %v8200_v46 }
 0x277   :  { %2874 = vmatpush1.msra.mxu0 %v2422_v6  ;;  %3004 = vmatprep.mubr.f32.mxu1 %v7984_v28  ;;  %v2022_v16 = vsel %vm2003_vm6, %v1998_v60, %v8241_v5  ;;  %v2021_v50 = vsel %vm2003_vm6, %v7875_v1, %v1998_v60 }
 0x278   :  { %2875 = vmatprep.subr.mxu0 %v2417_v51 }
 0x279   :  { %v1606_v37 = vpop.permute.xlu1 %1605  ;;  %2876 = vmatpush1.msra.mxu0 %v2416_v14 }
 0x27a   :  { %v1604_v57 = vpop.permute.xlu0 %1603  ;;  %2877 = vmatprep.subr.mxu0 %v2187_v48  ;;  %6041 = vmatmul.mubr.msk.f32.gmra.mxu1 %vm2654_vm13, %v7990_v42 }
 0x27b   :  { %v1639_v49 = vsel %vm1621_vm5, %v1604_v57, %v1606_v37  ;;  %v2509_v58 = vld [vmem:[#allocation3 + $0x2f8] sm:$0xff]  ;;  %2878 = vmatpush2.msra.mxu0 %v2186_v45  ;;  %3010 = vmatprep.mubr.f32.mxu1 %v7984_v28  ;;  %v1638_v55 = vsel %vm1621_vm5, %v7929_v13, %v1604_v57 }
 0x27c   :  { %1687 = vst.msk [vmem:[#allocation3 + $0x2c8] sm:$0xff] %vm682_vm2, %v1639_v49  ;;  %3023 = vmatprep.subr.mxu1 %v2509_v58  ;;  %2879 = vmatprep.subr.mxu0 %v2182_v26 }
 0x27d   :  { %3024 = vmatpush1.msra.mxu1 %v1644_v8  ;;  %v8266_v52 = vpop.permute.xlu1 %1987  ;;  %2880 = vmatpush2.msra.mxu0 %v2181_v53 }
 0x27e   :  { %v1986_v2 = vpop.permute.xlu0 %1985  ;;  %2881 = vmatprep.subr.mxu0 %v2177_v36  ;;  %6042 = vmatmul.mubr.msk.f32.gmra.mxu1 %vm2654_vm13, %v8018_v3 }
 0x27f   :  { %2882 = vmatpush2.msra.mxu0 %v2176_v12  ;;  %v2017_v24 = vsel %vm2003_vm6, %v1986_v2, %v8266_v52  ;;  %v2016_v23 = vsel %vm2003_vm6, %v7835_v59, %v1986_v2  ;;  %3016 = vmatprep.mubr.f32.mxu1 %v7984_v28 }
 0x280   :  { %2883 = vmatprep.subr.mxu0 %v2172_v10  ;;  %v10261_v10 = vld [vmem:[#allocation33_spill] sm:$0xff] }
 0x281   :  { %v1592_v62 = vpop.permute.xlu1 %1591  ;;  %2884 = vmatpush2.msra.mxu0 %v2171_v40 }
 0x282   :  { %v1590_v21 = vpop.permute.xlu0 %1589  ;;  %2885 = vmatprep.subr.mxu0 %v2022_v16  ;;  %6043 = vmatmul.mubr.msk.f32.gmra.mxu1 %vm2654_vm13, %v8099_v43 }
 0x283   :  { %v1633_v4 = vsel %vm1621_vm5, %v1590_v21, %v1592_v62  ;;  %v2503_v46 = vld [vmem:[#allocation3 + $0x2c8] sm:$0xff]  ;;  %2886 = vmatpush2.msra.mxu0 %v2021_v50  ;;  %3087 = vmatprep.mubr.f32.mxu1 %v10255_v63  ;;  %v1632_v60 = vsel %vm1621_vm5, %v10244_v0, %v1590_v21 }
 0x284   :  { %1681 = vst.msk [vmem:[#allocation3 + $0x298] sm:$0xff] %vm682_vm2, %v1633_v4  ;;  %3025 = vmatprep.subr.mxu1 %v2503_v46  ;;  %2887 = vmatprep.subr.mxu0 %v2017_v24  ;;  %v10262_v24 = vld [vmem:[#allocation41_spill] sm:$0xff]  ;;  %v10263_v4 = vld [vmem:[#allocation50_spill] sm:$0xff] }
 0x285   :  { %3026 = vmatpush1.msra.mxu1 %v1638_v55  ;;  %v8295_v34 = vpop.permute.xlu1 %1975  ;;  %2888 = vmatpush2.msra.mxu0 %v2016_v23  ;;  %v10264_v55 = vld [vmem:[#allocation29_spill] sm:$0xff] }
 0x286   :  { %v1974_v1 = vpop.permute.xlu0 %1973 }
 0x287   :  { %v2011_v59 = vsel %vm2003_vm6, %v10222_v17, %v1974_v1  ;;  %v2012_v19 = vsel %vm2003_vm6, %v1974_v1, %v8295_v34 }
 0x288   :  { %2889 = vmatprep.subr.mxu0 %v2012_v19  ;;  %v1715_v19 = vld [vmem:[#allocation2 + $0xc8] sm:$0xff] }
 0x289   :  { %2890 = vmatpush2.msra.mxu0 %v2011_v59  ;;  %v1578_v13 = vpop.permute.xlu1 %1577 }
 0x28a   :  { %v1576_v9 = vpop.permute.xlu0 %1575 }
 0x28b   :  { %v1627_v54 = vsel %vm1621_vm5, %v1576_v9, %v1578_v13  ;;  %v2497_v47 = vld [vmem:[#allocation3 + $0x298] sm:$0xff]  ;;  %v1626_v37 = vsel %vm1621_vm5, %v10248_v39, %v1576_v9 }
 0x28c   :  { %1675 = vst.msk [vmem:[#allocation3 + $0x268] sm:$0xff] %vm682_vm2, %v1627_v54  ;;  %3027 = vmatprep.subr.mxu1 %v2497_v47  ;;  %v1714_v54 = vld [vmem:[#allocation2 + $0xc0] sm:$0xff] }
 0x28d   :  { %3028 = vmatpush1.msra.mxu1 %v1632_v60  ;;  %v8308_v17 = vpop.permute.xlu1 %1963 }
 0x28e   :  { %v1962_v6 = vpop.permute.xlu0 %1961 }
 0x28f   :  { %v2006_v63 = vsel %vm2003_vm6, %v10226_v33, %v1962_v6  ;;  %v2007_v51 = vsel %vm2003_vm6, %v1962_v6, %v8308_v17  ;;  %v1709_v6 = vld [vmem:[#allocation2 + $0x90] sm:$0xff] }
 0x290   :  { %2891 = vmatprep.subr.mxu0 %v2007_v51  ;;  %v1703_v51 = vld [vmem:[#allocation2 + $0x58] sm:$0xff] }
 0x291   :  { %2892 = vmatpush2.msra.mxu0 %v2006_v63  ;;  %v1833_v14 = vpop.permute.xlu1 %1832  ;;  %v1708_v63 = vld [vmem:[#allocation2 + $0x88] sm:$0xff] }
 0x292   :  { %v1439_v48 = vpop.permute.xlu0 %1438  ;;  %v1856_v49 = vsel %vm1838_vm7, %v7901_v29, %v1833_v14 }
 0x293   :  { %1508 = vst.msk [vmem:[#allocation3 + $0x238] sm:$0xff] %vm682_vm2, %v1439_v48  ;;  %v2491_v0 = vld [vmem:[#allocation3 + $0x268] sm:$0xff]  ;;  %v1460_v39 = vsel %vm1440_vm8, %v8005_v61, %v1439_v48  ;;  %v1702_v48 = vld [vmem:[#allocation2 + $0x50] sm:$0xff] }
 0x294   :  { %3029 = vmatprep.subr.mxu1 %v2491_v0 }
 0x295   :  { %3030 = vmatpush1.msra.mxu1 %v1626_v37  ;;  %v1427_v57 = vpop.permute.xlu1 %1426  ;;  %v1696_v37 = vld [vmem:[#allocation2 + $0x18] sm:$0xff] }
 0x296   :  { %v8317_v45 = vpop.permute.xlu0 %1834  ;;  %1502 = vst.msk [vmem:[#allocation3 + $0x208] sm:$0xff] %vm682_vm2, %v1427_v57  ;;  %v1455_v40 = vsel %vm1440_vm8, %v10261_v10, %v1427_v57 }
 0x297   :  { %v1857_v33 = vsel %vm1838_vm7, %v1833_v14, %v8317_v45 }
 0x298   :  { %2893 = vmatprep.subr.mxu0 %v1857_v33  ;;  %v10265_v33 = vld [vmem:[#allocation22_spill] sm:$0xff] }
 0x299   :  { %2894 = vmatpush2.msra.mxu0 %v1856_v49  ;;  %v8324_v58 = vpop.permute.xlu1 %1822 }
 0x29a   :  { %v1821_v26 = vpop.permute.xlu0 %1820  ;;  %v2485_v8 = vld [vmem:[#allocation3 + $0x238] sm:$0xff] }
 0x29b   :  { %v1851_v53 = vsel %vm1838_vm7, %v7852_v35, %v1821_v26  ;;  %v1852_v36 = vsel %vm1838_vm7, %v1821_v26, %v8324_v58  ;;  %3031 = vmatprep.subr.mxu1 %v2485_v8  ;;  %v10266_v8 = vld [vmem:[#allocation16_spill] sm:$0xff] }
 0x29c   :  { %3032 = vmatpush1.msra.mxu1 %v1460_v39  ;;  %2895 = vmatprep.subr.mxu0 %v1852_v36 }
 0x29d   :  { %2896 = vmatpush2.msra.mxu0 %v1851_v53  ;;  %v1809_v29 = vpop.permute.xlu1 %1808  ;;  %v2479_v12 = vld [vmem:[#allocation3 + $0x208] sm:$0xff] }
 0x29e   :  { %v1415_v2 = vpop.permute.xlu0 %1414  ;;  %3033 = vmatprep.subr.mxu1 %v2479_v12  ;;  %v1846_v62 = vsel %vm1838_vm7, %v10262_v24, %v1809_v29 }
 0x29f   :  { %1496 = vst.msk [vmem:[#allocation3 + $0x1d8] sm:$0xff] %vm682_vm2, %v1415_v2  ;;  %3034 = vmatpush1.msra.mxu1 %v1455_v40  ;;  %v1450_v46 = vsel %vm1440_vm8, %v10263_v4, %v1415_v2  ;;  %v10267_v2 = vld [vmem:[#allocation43_spill] sm:$0xff]  ;;  %v10268_v40 = vld [vmem:[#allocation24_spill] sm:$0xff] }
 0x2a0   :  { %v10271_v4 = vld [vmem:[#allocation35_spill] sm:$0xff] }
 0x2a1   :  { %v1403_v61 = vpop.permute.xlu1 %1402 }
 0x2a2   :  { %v8335_v16 = vpop.permute.xlu0 %1810  ;;  %1490 = vst.msk [vmem:[#allocation3 + $0x1a8] sm:$0xff] %vm682_vm2, %v1403_v61  ;;  %v1445_v47 = vsel %vm1440_vm8, %v10256_v31, %v1403_v61  ;;  %v1697_v31 = vld [vmem:[#allocation2 + $0x20] sm:$0xff] }
 0x2a3   :  { %v1847_v35 = vsel %vm1838_vm7, %v1809_v29, %v8335_v16 }
 0x2a4   :  { %2897 = vmatprep.subr.mxu0 %v1847_v35 }
 0x2a5   :  { %2898 = vmatpush2.msra.mxu0 %v1846_v62  ;;  %v8342_v21 = vpop.permute.xlu1 %1798  ;;  %v10270_v62 = vld [vmem:[#allocation20_spill] sm:$0xff] }
 0x2a6   :  { %v1797_v50 = vpop.permute.xlu0 %1796  ;;  %v2473_v23 = vld [vmem:[#allocation3 + $0x1d8] sm:$0xff] }
 0x2a7   :  { %v1841_v1 = vsel %vm1838_vm7, %v10264_v55, %v1797_v50  ;;  %v1842_v59 = vsel %vm1838_vm7, %v1797_v50, %v8342_v21  ;;  %3035 = vmatprep.subr.mxu1 %v2473_v23 }
 0x2a8   :  { %3036 = vmatpush1.msra.mxu1 %v1450_v46  ;;  %2899 = vmatprep.subr.mxu0 %v1842_v59 }
 0x2a9   :  { %2900 = vmatpush2.msra.mxu0 %v1841_v1  ;;  %v1262_v13 = vpop.permute.xlu1 %1261  ;;  %v2467_v9 = vld [vmem:[#allocation3 + $0x1a8] sm:$0xff] }
 0x2aa   :  { %2901 = vmatprep.subr.mxu0 %v1715_v19  ;;  %1337 = vst.msk [vmem:[#allocation3 + $0x148] sm:$0xff] %vm682_vm2, %v1262_v13  ;;  %v1274_v60 = vpop.permute.xlu0 %1273  ;;  %3037 = vmatprep.subr.mxu1 %v2467_v9  ;;  %v1290_v36 = vsel %vm1275_vm9, %v7799_v15, %v1262_v13  ;;  %v10269_v15 = vld [vmem:[#allocation30_spill] sm:$0xff] }
 0x2ab   :  { %2902 = vmatpush2.msra.mxu0 %v1714_v54  ;;  %1343 = vst.msk [vmem:[#allocation3 + $0x178] sm:$0xff] %vm682_vm2, %v1274_v60  ;;  %3038 = vmatpush1.msra.mxu1 %v1445_v47  ;;  %v1295_v39 = vsel %vm1275_vm9, %v8027_v30, %v1274_v60 }
 0x2ac   :  { %2903 = vmatprep.subr.mxu0 %v1709_v6 }
 0x2ad   :  { %2904 = vmatpush2.msra.mxu0 %v1708_v63  ;;  %v1238_v14 = vpop.permute.xlu1 %1237 }
 0x2ae   :  { %2905 = vmatprep.subr.mxu0 %v1703_v51  ;;  %1325 = vst.msk [vmem:[#allocation3 + $0xe8] sm:$0xff] %vm682_vm2, %v1238_v14  ;;  %v1250_v0 = vpop.permute.xlu0 %1249  ;;  %v1280_v35 = vsel %vm1275_vm9, %v10269_v15, %v1238_v14 }
 0x2af   :  { %2906 = vmatpush2.msra.mxu0 %v1702_v48  ;;  %1331 = vst.msk [vmem:[#allocation3 + $0x118] sm:$0xff] %vm682_vm2, %v1250_v0  ;;  %v1285_v30 = vsel %vm1275_vm9, %v10258_v7, %v1250_v0 }
 0x2b0   :  { %2907 = vmatprep.subr.mxu0 %v1697_v31 }
 0x2b1   :  { %2908 = vmatpush2.msra.mxu0 %v1696_v37  ;;  %v1097_v57 = vpop.permute.xlu1 %1096  ;;  %v2455_v53 = vld [vmem:[#allocation3 + $0x148] sm:$0xff] }
 0x2b2   :  { %2910 = vmatmul.mubr.f32.vlgmr.msra.gmra.mxu0 %v10265_v33  ;;  %1172 = vst.msk [vmem:[#allocation3 + $0x88] sm:$0xff] %vm682_vm2, %v1097_v57  ;;  %v1109_v49 = vpop.permute.xlu0 %1108  ;;  %v2461_v26 = vld [vmem:[#allocation3 + $0x178] sm:$0xff]  ;;  %v1125_v55 = vsel %vm1110_vm10, %v7817_v25, %v1097_v57 }
 0x2b3   :  { %2915 = vmatprep.mubr.f32.mxu0 %v10266_v8  ;;  %1178 = vst.msk [vmem:[#allocation3 + $0xb8] sm:$0xff] %vm682_vm2, %v1109_v49  ;;  %3039 = vmatprep.subr.mxu1 %v2461_v26  ;;  %v1130_v7 = vsel %vm1110_vm10, %v8040_v44, %v1109_v49  ;;  %v10272_v25 = vld [vmem:[#allocation31_spill] sm:$0xff] }
 0x2b4   :  { %3040 = vmatpush1.msra.mxu1 %v1295_v39 }
 0x2b5   :  { %3041 = vmatprep.subr.mxu1 %v2455_v53  ;;  %v1073_v29 = vpop.permute.xlu1 %1072  ;;  %v2443_v61 = vld [vmem:[#allocation3 + $0xe8] sm:$0xff] }
 0x2b6   :  { %2916 = vmatmul.mubr.f32.gmra.mxu0 %v10267_v2  ;;  %1160 = vst.msk [vmem:[#allocation3 + $0x28] sm:$0xff] %vm682_vm2, %v1073_v29  ;;  %3042 = vmatpush1.msra.mxu1 %v1290_v36  ;;  %v1085_v12 = vpop.permute.xlu0 %1084  ;;  %v2449_v10 = vld [vmem:[#allocation3 + $0x118] sm:$0xff]  ;;  %v1115_v9 = vsel %vm1110_vm10, %v10272_v25, %v1073_v29 }
 0x2b7   :  { %2921 = vmatprep.mubr.f32.mxu0 %v10268_v40  ;;  %1166 = vst.msk [vmem:[#allocation3 + $0x58] sm:$0xff] %vm682_vm2, %v1085_v12  ;;  %3043 = vmatprep.subr.mxu1 %v2449_v10  ;;  %v1120_v44 = vsel %vm1110_vm10, %v7713_v41, %v1085_v12  ;;  %v8414_v12 = vpack.i.bf16 %v7984_v28, %v7984_v28 }
 0x2b8   :  { %3044 = vmatpush1.msra.mxu1 %v1285_v30 }
 0x2b9   :  { %3045 = vmatprep.subr.mxu1 %v2443_v61  ;;  %v2155_v24 = vpop.permute.xlu1 %2154  ;;  %v2431_v46 = vld [vmem:[#allocation3 + $0x88] sm:$0xff]  ;;  %6158 = vrot.lane.b32.xlu1 %v8414_v12, %s6482_s3 }
 0x2ba   :  { %2922 = vmatmul.mubr.f32.gmra.mxu0 %v10270_v62  ;;  %2230 = vst.msk [vmem:[#allocation3 + $0x5c8] sm:$0xff] %vm682_vm2, %v2155_v24  ;;  %3046 = vmatpush1.msra.mxu1 %v1280_v35  ;;  %v2167_v50 = vpop.permute.xlu0 %2166  ;;  %v2437_v23 = vld [vmem:[#allocation3 + $0xb8] sm:$0xff]  ;;  %v2183_v63 = vsel %vm2168_vm12, %v8115_v20, %v2155_v24 }
 0x2bb   :  { %2927 = vmatprep.mubr.f32.mxu0 %v10271_v4  ;;  %2236 = vst.msk [vmem:[#allocation3 + $0x5f8] sm:$0xff] %vm682_vm2, %v2167_v50  ;;  %3047 = vmatprep.subr.mxu1 %v2437_v23  ;;  %v2188_v6 = vsel %vm2168_vm12, %v8172_v27, %v2167_v50  ;;  %v2533_v23 = vld [vmem:[#allocation3 + $0x3b8] sm:$0xff] }
 0x2bc   :  { %3048 = vmatpush1.msra.mxu1 %v1130_v7  ;;  %6153 = vrot.lane.b32.xlu0 %v8414_v12, %s6482_s3 }
 0x2bd   :  { %3049 = vmatprep.subr.mxu1 %v2431_v46  ;;  %v2131_v1 = vpop.permute.xlu1 %2130  ;;  %v2419_v13 = vld [vmem:[#allocation3 + $0x28] sm:$0xff]  ;;  %6168 = vrot.lane.b32.xlu1 %v8414_v12, %s6483_s26  ;;  %v10273_v46 = vld [vmem:[#allocation14_spill] sm:$0xff] }
 0x2be   :  { %2928 = vmatmul.mubr.f32.gmra.mxu0 %v8133_v32  ;;  %2218 = vst.msk [vmem:[#allocation3 + $0x568] sm:$0xff] %vm682_vm2, %v2131_v1  ;;  %3050 = vmatpush1.msra.mxu1 %v1125_v55  ;;  %v2143_v59 = vpop.permute.xlu0 %2142  ;;  %v2425_v19 = vld [vmem:[#allocation3 + $0x58] sm:$0xff]  ;;  %v2173_v31 = vsel %vm2168_vm12, %v8198_v18, %v2131_v1  ;;  %v1716_v55 = vld [vmem:[#allocation2 + $0xd0] sm:$0xff]  ;;  %v2527_v1 = vld [vmem:[#allocation3 + $0x388] sm:$0xff] }
 0x2bf   :  { %3176 = vmatprep.mubr.f32.mxu0 %v7984_v28  ;;  %2224 = vst.msk [vmem:[#allocation3 + $0x598] sm:$0xff] %vm682_vm2, %v2143_v59  ;;  %3051 = vmatprep.subr.mxu1 %v2425_v19  ;;  %v2178_v0 = vsel %vm2168_vm12, %v7953_v22, %v2143_v59 }
 0x2c0   :  { %3052 = vmatpush1.msra.mxu1 %v1120_v44  ;;  %6163 = vrot.lane.b32.xlu0 %v8414_v12, %s6483_s26  ;;  %v2521_v44 = vld [vmem:[#allocation3 + $0x358] sm:$0xff] }
 0x2c1   :  { %3053 = vmatprep.subr.mxu1 %v2419_v13  ;;  %v1990_v54 = vpop.permute.xlu1 %1989  ;;  %v2599_v41 = vld [vmem:[#allocation3 + $0x5c8] sm:$0xff]  ;;  %6178 = vrot.lane.b32.xlu1 %v8414_v12, %s6484_s27 }
 0x2c2   :  { %2065 = vst.msk [vmem:[#allocation3 + $0x508] sm:$0xff] %vm682_vm2, %v1990_v54  ;;  %3054 = vmatpush1.msra.mxu1 %v1115_v9  ;;  %v2002_v47 = vpop.permute.xlu0 %2001  ;;  %v2605_v60 = vld [vmem:[#allocation3 + $0x5f8] sm:$0xff]  ;;  %v2018_v26 = vsel %vm2003_vm6, %v8266_v52, %v1990_v54  ;;  %v1704_v9 = vld [vmem:[#allocation2 + $0x60] sm:$0xff]  ;;  %v2515_v54 = vld [vmem:[#allocation3 + $0x328] sm:$0xff] }
 0x2c3   :  { %2071 = vst.msk [vmem:[#allocation3 + $0x538] sm:$0xff] %vm682_vm2, %v2002_v47  ;;  %3055 = vmatprep.subr.mxu1 %v2605_v60  ;;  %v2023_v49 = vsel %vm2003_vm6, %v8241_v5, %v2002_v47  ;;  %v1698_v60 = vld [vmem:[#allocation2 + $0x28] sm:$0xff] }
 0x2c4   :  { %3056 = vmatpush2.msra.mxu1 %v2188_v6  ;;  %6173 = vrot.lane.b32.xlu0 %v8414_v12, %s6484_s27 }
 0x2c5   :  { %3057 = vmatprep.subr.mxu1 %v2599_v41  ;;  %v1966_v51 = vpop.permute.xlu1 %1965  ;;  %v2587_v27 = vld [vmem:[#allocation3 + $0x568] sm:$0xff]  ;;  %6188 = vrot.lane.b32.xlu1 %v8414_v12, %s6485_s28 }
 0x2c6   :  { %2053 = vst.msk [vmem:[#allocation3 + $0x4a8] sm:$0xff] %vm682_vm2, %v1966_v51  ;;  %3058 = vmatpush2.msra.mxu1 %v2183_v63  ;;  %v1978_v14 = vpop.permute.xlu0 %1977  ;;  %v2593_v48 = vld [vmem:[#allocation3 + $0x598] sm:$0xff]  ;;  %v2008_v29 = vsel %vm2003_vm6, %v8308_v17, %v1966_v51 }
 0x2c7   :  { %2059 = vst.msk [vmem:[#allocation3 + $0x4d8] sm:$0xff] %vm682_vm2, %v1978_v14  ;;  %3059 = vmatprep.subr.mxu1 %v2593_v48  ;;  %v2013_v36 = vsel %vm2003_vm6, %v8295_v34, %v1978_v14 }
 0x2c8   :  { %3060 = vmatpush2.msra.mxu1 %v2178_v0  ;;  %6183 = vrot.lane.b32.xlu0 %v8414_v12, %s6485_s28 }
 0x2c9   :  { %3061 = vmatprep.subr.mxu1 %v2587_v27  ;;  %v1825_v20 = vpop.permute.xlu1 %1824  ;;  %v2575_v22 = vld [vmem:[#allocation3 + $0x508] sm:$0xff] }
 0x2ca   :  { %1900 = vst.msk [vmem:[#allocation3 + $0x448] sm:$0xff] %vm682_vm2, %v1825_v20  ;;  %3062 = vmatpush2.msra.mxu1 %v2173_v31  ;;  %v1837_v37 = vpop.permute.xlu0 %1836  ;;  %v2581_v57 = vld [vmem:[#allocation3 + $0x538] sm:$0xff]  ;;  %v1853_v61 = vsel %vm1838_vm7, %v8324_v58, %v1825_v20 }
 0x2cb   :  { %1906 = vst.msk [vmem:[#allocation3 + $0x478] sm:$0xff] %vm682_vm2, %v1837_v37  ;;  %3063 = vmatprep.subr.mxu1 %v2581_v57  ;;  %v1858_v34 = vsel %vm1838_vm7, %v8317_v45, %v1837_v37 }
 0x2cc   :  { %3064 = vmatpush2.msra.mxu1 %v2023_v49 }
 0x2cd   :  { %3065 = vmatprep.subr.mxu1 %v2575_v22  ;;  %v1801_v18 = vpop.permute.xlu1 %1800  ;;  %v2563_v5 = vld [vmem:[#allocation3 + $0x4a8] sm:$0xff] }
 0x2ce   :  { %1888 = vst.msk [vmem:[#allocation3 + $0x3e8] sm:$0xff] %vm682_vm2, %v1801_v18  ;;  %3066 = vmatpush2.msra.mxu1 %v2018_v26  ;;  %v1813_v39 = vpop.permute.xlu0 %1812  ;;  %v2569_v53 = vld [vmem:[#allocation3 + $0x4d8] sm:$0xff]  ;;  %v1843_v58 = vsel %vm1838_vm7, %v8342_v21, %v1801_v18 }
 0x2cf   :  { %1894 = vst.msk [vmem:[#allocation3 + $0x418] sm:$0xff] %vm682_vm2, %v1813_v39  ;;  %3067 = vmatprep.subr.mxu1 %v2569_v53  ;;  %v1848_v24 = vsel %vm1838_vm7, %v8335_v16, %v1813_v39  ;;  %v1710_v21 = vld [vmem:[#allocation2 + $0x98] sm:$0xff] }
 0x2d0   :  { %3068 = vmatpush2.msra.mxu1 %v2013_v36 }
 0x2d1   :  { %3069 = vmatprep.subr.mxu1 %v2563_v5  ;;  %v2320_v52 = vpop.permute.xlu1 %2319  ;;  %v2551_v17 = vld [vmem:[#allocation3 + $0x448] sm:$0xff] }
 0x2d2   :  { %2395 = vst.msk [vmem:[#allocation3 + $0x688] sm:$0xff] %vm682_vm2, %v2320_v52  ;;  %3070 = vmatpush2.msra.mxu1 %v2008_v29  ;;  %v2332_v10 = vpop.permute.xlu0 %2331  ;;  %v2557_v30 = vld [vmem:[#allocation3 + $0x478] sm:$0xff]  ;;  %v2348_v19 = vsel %vm2333_vm11, %v8091_v38, %v2320_v52 }
 0x2d3   :  { %2401 = vst.msk [vmem:[#allocation3 + $0x6b8] sm:$0xff] %vm682_vm2, %v2332_v10  ;;  %3071 = vmatprep.subr.mxu1 %v2557_v30  ;;  %v2353_v16 = vsel %vm2333_vm11, %v10273_v46, %v2332_v10 }
 0x2d4   :  { %3072 = vmatpush2.msra.mxu1 %v1858_v34 }
 0x2d5   :  { %3073 = vmatprep.subr.mxu1 %v2551_v17  ;;  %v2296_v15 = vpop.permute.xlu1 %2295  ;;  %v2539_v50 = vld [vmem:[#allocation3 + $0x3e8] sm:$0xff] }
 0x2d6   :  { %2383 = vst.msk [vmem:[#allocation3 + $0x628] sm:$0xff] %vm682_vm2, %v2296_v15  ;;  %3074 = vmatpush2.msra.mxu1 %v1853_v61  ;;  %v2308_v45 = vpop.permute.xlu0 %2307  ;;  %v2545_v35 = vld [vmem:[#allocation3 + $0x418] sm:$0xff]  ;;  %v2338_v38 = vsel %vm2333_vm11, %v8062_v11, %v2296_v15  ;;  %v6434_v11 = vld [vmem:[#allocation2] sm:$0xff] }
 0x2d7   :  { %2389 = vst.msk [vmem:[#allocation3 + $0x658] sm:$0xff] %vm682_vm2, %v2308_v45  ;;  %3075 = vmatprep.subr.mxu1 %v2545_v35  ;;  %v2343_v25 = vsel %vm2333_vm11, %v7927_v56, %v2308_v45  ;;  %v6433_v56 = vld [vmem:[%s10036_s4 + $0x10] sm:$0xff] }
 0x2d8   :  { %3076 = vmatpush2.msra.mxu1 %v1848_v24 }
 0x2d9   :  { %3077 = vmatprep.subr.mxu1 %v2539_v50  ;;  %v2623_v59 = vld [vmem:[#allocation3 + $0x688] sm:$0xff] }
 0x2da   :  { %3078 = vmatpush2.msra.mxu1 %v1843_v58  ;;  %v2629_v7 = vld [vmem:[#allocation3 + $0x6b8] sm:$0xff] }
 0x2db   :  { %3079 = vmatprep.subr.mxu1 %v2533_v23  ;;  %3136 = vmatprep.subr.mxu0 %v2629_v7 }
 0x2dc   :  { %3080 = vmatpush2.msra.mxu1 %v1716_v55  ;;  %3137 = vmatpush1.msra.mxu0 %v2353_v16 }
 0x2dd   :  { %3081 = vmatprep.subr.mxu1 %v2527_v1  ;;  %3138 = vmatprep.subr.mxu0 %v2623_v59  ;;  %v2611_v47 = vld [vmem:[#allocation3 + $0x628] sm:$0xff] }
 0x2de   :  { %3082 = vmatpush2.msra.mxu1 %v1710_v21  ;;  %3139 = vmatpush1.msra.mxu0 %v2348_v19  ;;  %v2617_v13 = vld [vmem:[#allocation3 + $0x658] sm:$0xff] }
 0x2df   :  { %3083 = vmatprep.subr.mxu1 %v2521_v44  ;;  %3140 = vmatprep.subr.mxu0 %v2617_v13 }
 0x2e0   :  { %3084 = vmatpush2.msra.mxu1 %v1704_v9  ;;  %3141 = vmatpush1.msra.mxu0 %v2343_v25 }
 0x2e1   :  { %3085 = vmatprep.subr.mxu1 %v2515_v54  ;;  %3142 = vmatprep.subr.mxu0 %v2611_v47 }
 0x2e2   :  { %3086 = vmatpush2.msra.mxu1 %v1698_v60  ;;  %3143 = vmatpush1.msra.mxu0 %v2338_v38 }
 0x2e3   :  { %3088 = vmatmul.mubr.f32.vlgmr.msra.gmra.mxu1 %v10265_v33  ;;  %6044 = vmatmul.mubr.msk.f32.vlgmr.msra.gmra.mxu0 %vm2654_vm13, %v6433_v56  ;;  %v8471_v33 = vpop.permute.xlu1 %2646 }
 0x2e4   :  { %3093 = vmatprep.mubr.f32.mxu1 %v10266_v8  ;;  %3182 = vmatprep.mubr.f32.mxu0 %v7984_v28 }
 0x2e7   :  { %3094 = vmatmul.mubr.f32.gmra.mxu1 %v10267_v2  ;;  %6045 = vmatmul.mubr.msk.f32.gmra.mxu0 %vm2654_vm13, %v7990_v42  ;;  %v8473_v2 = vpop.permute.xlu0 %2651 }
 0x2e8   :  { %3099 = vmatprep.mubr.f32.mxu1 %v10268_v40  ;;  %3188 = vmatprep.mubr.f32.mxu0 %v7984_v28 }
 0x2eb   :  { %3100 = vmatmul.mubr.f32.gmra.mxu1 %v10270_v62  ;;  %6046 = vmatmul.mubr.msk.f32.gmra.mxu0 %vm2654_vm13, %v8018_v3  ;;  %v8475_v62 = vpop.permute.xlu1 %2636 }
 0x2ec   :  { %3105 = vmatprep.mubr.f32.mxu1 %v10271_v4  ;;  %3194 = vmatprep.mubr.f32.mxu0 %v6434_v11 }
 0x2ef   :  { %3106 = vmatmul.mubr.f32.gmra.mxu1 %v8133_v32  ;;  %6047 = vmatmul.mubr.msk.f32.gmra.mxu0 %vm2654_vm13, %v8099_v43  ;;  %v8479_v43 = vpop.permute.xlu0 %2641  ;;  %v8487_v13 = vpop.permute.xlu1 %3361 }
 0x2f0   :  { %5214 = vmatprep.mubr.f32.mxu1 %v6434_v11 }
 0x2f3   :  { %v8489_v38 = vpop.permute.xlu0 %3366  ;;  %v8491_v11 = vpop.permute.xlu1 %3351 }
 0x305   :  { %v2822_v28 = vpop.f32.mrf.mxu0 }
 0x307   :  { %v2824_v42 = vpop.f32.mrf.mxu0 }
 0x309   :  { %v2828_v8 = vpop.f32.mrf.mxu0 }
 0x30b   :  { %v2830_v40 = vpop.f32.mrf.mxu0 }
 0x30d   :  { %v2834_v41 = vpop.f32.mrf.mxu0 }
 0x30f   :  { %v2836_v31 = vpop.f32.mrf.mxu0 }
 0x319   :  { %v2733_v3 = vpop.f32.mrf.mxu1 }
 0x31a   :  { %v2734_v4 = vadd.f32 %v2733_v3, %v8475_v62 }
 0x31b   :  { %v2735_v6 = vpop.f32.mrf.mxu1 }
 0x31c   :  { %v2823_v32 = vadd.f32 %v2822_v28, %v2734_v4  ;;  %v2736_v63 = vadd.f32 %v2735_v6, %v8475_v62  ;;  %v8496_v6 = vpop.permute.xlu0 %3356 }
 0x31d   :  { %v2739_v51 = vpop.f32.mrf.mxu1 }
 0x31e   :  { %v6048_v14 = vmul.f32 -1.442695, %v2823_v32  ;;  %v2825_v48 = vadd.f32 %v2824_v42, %v2736_v63  ;;  %v2740_v0 = vadd.f32 %v2739_v51, %v8479_v43 }
 0x31f   :  { %v2741_v27 = vpop.f32.mrf.mxu1  ;;  %v2840_v53 = vpop.f32.mrf.mxu0 }
 0x320   :  { %6336 = vpow2.f32 %v6048_v14  ;;  %v6049_v20 = vmul.f32 -1.442695, %v2825_v48  ;;  %v2742_v37 = vadd.f32 %v2741_v27, %v8479_v43  ;;  %v2829_v57 = vadd.f32 %v2828_v8, %v2740_v0  ;;  %v10274_v8 = vld [vmem:[#allocation8_spill] sm:$0xff] }
 0x321   :  { %v2745_v49 = vpop.f32.mrf.mxu1  ;;  %v2842_v17 = vpop.f32.mrf.mxu0 }
 0x322   :  { %6338 = vpow2.f32 %v6049_v20  ;;  %v6054_v22 = vmul.f32 -1.442695, %v2829_v57  ;;  %v2746_v26 = vadd.f32 %v2745_v49, %v8471_v33  ;;  %v2831_v18 = vadd.f32 %v2830_v40, %v2742_v37 }
 0x323   :  { %v2747_v39 = vpop.f32.mrf.mxu1 }
 0x324   :  { %6340 = vpow2.f32 %v6054_v22  ;;  %v6055_v36 = vmul.f32 -1.442695, %v2831_v18  ;;  %v2748_v5 = vadd.f32 %v2747_v39, %v8471_v33  ;;  %v2835_v29 = vadd.f32 %v2834_v41, %v2746_v26  ;;  %v10275_v41 = vld [vmem:[#allocation9_spill] sm:$0xff] }
 0x325   :  { %v2751_v52 = vpop.f32.mrf.mxu1 }
 0x326   :  { %6342 = vpow2.f32 %v6055_v36  ;;  %v6060_v12 = vmul.f32 -1.442695, %v2835_v29  ;;  %v2752_v10 = vadd.f32 %v2751_v52, %v8473_v2  ;;  %v2837_v30 = vadd.f32 %v2836_v31, %v2748_v5 }
 0x327   :  { %v2753_v34 = vpop.f32.mrf.mxu1 }
 0x328   :  { %6344 = vpow2.f32 %v6060_v12  ;;  %v6061_v61 = vmul.f32 -1.442695, %v2837_v30  ;;  %v2754_v15 = vadd.f32 %v2753_v34, %v8473_v2  ;;  %v2841_v45 = vadd.f32 %v2840_v53, %v2752_v10 }
 0x32a   :  { %6346 = vpow2.f32 %v6061_v61  ;;  %v6066_v35 = vmul.f32 -1.442695, %v2841_v45  ;;  %v2843_v24 = vadd.f32 %v2842_v17, %v2754_v15 }
 0x32c   :  { %6348 = vpow2.f32 %v6066_v35  ;;  %v6067_v50 = vmul.f32 -1.442695, %v2843_v24 }
 0x32d   :  { %v6337_v58 = vpop.eup %6336 }
 0x32e   :  { %v3273_v23 = vadd.f32 1.0, %v6337_v58  ;;  %6350 = vpow2.f32 %v6067_v50 }
 0x32f   :  { %v6339_v7 = vpop.eup %6338 }
 0x330   :  { %6352 = vrcp.f32 %v3273_v23  ;;  %v3274_v46 = vadd.f32 1.0, %v6339_v7 }
 0x331   :  { %v6341_v16 = vpop.eup %6340 }
 0x332   :  { %6354 = vrcp.f32 %v3274_v46  ;;  %v3279_v55 = vadd.f32 1.0, %v6341_v16 }
 0x333   :  { %v6343_v1 = vpop.eup %6342 }
 0x334   :  { %6356 = vrcp.f32 %v3279_v55  ;;  %v3280_v59 = vadd.f32 1.0, %v6343_v1 }
 0x335   :  { %v6345_v19 = vpop.eup %6344 }
 0x336   :  { %6358 = vrcp.f32 %v3280_v59  ;;  %v3285_v21 = vadd.f32 1.0, %v6345_v19  ;;  %v3000_v61 = vpop.f32.mrf.mxu1 }
 0x337   :  { %v6347_v44 = vpop.eup %6346 }
 0x338   :  { %6360 = vrcp.f32 %v3285_v21  ;;  %v3286_v25 = vadd.f32 1.0, %v6347_v44  ;;  %v3002_v15 = vpop.f32.mrf.mxu1 }
 0x339   :  { %v6349_v9 = vpop.eup %6348 }
 0x33a   :  { %6362 = vrcp.f32 %v3286_v25  ;;  %v3291_v54 = vadd.f32 1.0, %v6349_v9  ;;  %v3006_v45 = vpop.f32.mrf.mxu1 }
 0x33b   :  { %v6351_v47 = vpop.eup %6350 }
 0x33c   :  { %6364 = vrcp.f32 %v3291_v54  ;;  %v3292_v60 = vadd.f32 1.0, %v6351_v47  ;;  %v3008_v35 = vpop.f32.mrf.mxu1 }
 0x33d   :  { %v6353_v56 = vpop.eup %6352 }
 0x33e   :  { %v3369_v28 = vmul.f32 %v6353_v56, %v8491_v11  ;;  %6366 = vrcp.f32 %v3292_v60  ;;  %v3012_v23 = vpop.f32.mrf.mxu1 }
 0x33f   :  { %v6355_v42 = vpop.eup %6354 }
 0x340   :  { %v3393_v40 = vmul.f32 %v3369_v28, %v10274_v8  ;;  %v3370_v3 = vmul.f32 %v6355_v42, %v8491_v11  ;;  %v3014_v21 = vpop.f32.mrf.mxu1 }
 0x341   :  { %v6357_v4 = vpop.eup %6356 }
 0x342   :  { %3417 = vst [vmem:[#allocation2 + $0x8] sm:$0xff] %v3393_v40  ;;  %v8499_v32 = vmul.f32 %v3370_v3, %v10275_v41  ;;  %v3375_v63 = vmul.f32 %v6357_v4, %v8496_v6  ;;  %4541 = vrot.lane.b32.xlu1 %v3393_v40, %s6489_s12  ;;  %3991 = vrot.lane.b32.xlu0 %v3393_v40, %s6482_s3  ;;  %v3018_v42 = vpop.f32.mrf.mxu1 }
 0x343   :  { %v6359_v51 = vpop.eup %6358 }
 0x344   :  { %3418 = vst [vmem:[#allocation2 + $0x10] sm:$0xff] %v8499_v32  ;;  %v8506_v14 = vmul.f32 %v3375_v63, %v10274_v8  ;;  %v3376_v48 = vmul.f32 %v6359_v51, %v8496_v6 }
 0x345   :  { %v6361_v0 = vpop.eup %6360 }
 0x346   :  { %3423 = vst [vmem:[#allocation2 + $0x40] sm:$0xff] %v8506_v14  ;;  %v8511_v27 = vmul.f32 %v3376_v48, %v10275_v41  ;;  %v3381_v31 = vmul.f32 %v6361_v0, %v8487_v13  ;;  %4377 = vrot.lane.b32.xlu1 %v3393_v40, %s6487_s10  ;;  %3819 = vrot.lane.b32.xlu0 %v3393_v40, %s6483_s26  ;;  %v3020_v48 = vpop.f32.mrf.mxu1 }
 0x347   :  { %v6363_v20 = vpop.eup %6362 }
 0x348   :  { %3424 = vst [vmem:[#allocation2 + $0x48] sm:$0xff] %v8511_v27  ;;  %v8518_v37 = vmul.f32 %v3381_v31, %v10274_v8  ;;  %v3382_v57 = vmul.f32 %v6363_v20, %v8487_v13 }
 0x349   :  { %v6365_v49 = vpop.eup %6364  ;;  %v4117_v22 = vld [vmem:[#allocation2 + $0x8] sm:$0xff] }
 0x34a   :  { %3429 = vst [vmem:[#allocation2 + $0x78] sm:$0xff] %v8518_v37  ;;  %v8523_v26 = vmul.f32 %v3382_v57, %v10275_v41  ;;  %v3387_v18 = vmul.f32 %v6365_v49, %v8489_v38  ;;  %4213 = vrot.lane.b32.xlu1 %v3393_v40, %s6488_s11  ;;  %3655 = vrot.lane.b32.xlu0 %v3393_v40, %s6484_s27  ;;  %4141 = vst [vmem:[#allocation3 + $0x300] sm:$0xff] %v4117_v22 }
 0x34b   :  { %v6367_v39 = vpop.eup %6366  ;;  %v4118_v53 = vld [vmem:[#allocation2 + $0x10] sm:$0xff] }
 0x34c   :  { %3430 = vst [vmem:[#allocation2 + $0x80] sm:$0xff] %v8523_v26  ;;  %v8530_v36 = vmul.f32 %v3387_v18, %v10274_v8  ;;  %v3388_v5 = vmul.f32 %v6367_v39, %v8489_v38  ;;  %4142 = vst [vmem:[#allocation3 + $0x308] sm:$0xff] %v4118_v53 }
 0x34d   :  { %v4123_v29 = vld [vmem:[#allocation2 + $0x40] sm:$0xff] }
 0x34e   :  { %3435 = vst [vmem:[#allocation2 + $0xb0] sm:$0xff] %v8530_v36  ;;  %v8535_v52 = vmul.f32 %v3388_v5, %v10275_v41  ;;  %4705 = vrot.lane.b32.xlu1 %v3393_v40, %s6486_s1  ;;  %3491 = vrot.lane.b32.xlu0 %v3393_v40, %s6485_s28  ;;  %4147 = vst [vmem:[#allocation3 + $0x330] sm:$0xff] %v4123_v29 }
 0x34f   :  { %v4124_v12 = vld [vmem:[#allocation2 + $0x48] sm:$0xff] }
 0x350   :  { %3436 = vst [vmem:[#allocation2 + $0xb8] sm:$0xff] %v8535_v52  ;;  %4148 = vst [vmem:[#allocation3 + $0x338] sm:$0xff] %v4124_v12 }
 0x351   :  { %v4129_v10 = vld [vmem:[#allocation2 + $0x78] sm:$0xff] }
 0x352   :  { %3993 = vrot.lane.b32.xlu1 %v8499_v32, %s6482_s3  ;;  %4553 = vrot.lane.b32.xlu0 %v8506_v14, %s6489_s12  ;;  %4153 = vst [vmem:[#allocation3 + $0x360] sm:$0xff] %v4129_v10 }
 0x353   :  { %v4130_v30 = vld [vmem:[#allocation2 + $0x80] sm:$0xff] }
 0x354   :  { %4154 = vst [vmem:[#allocation3 + $0x368] sm:$0xff] %v4130_v30 }
 0x355   :  { %v4135_v34 = vld [vmem:[#allocation2 + $0xb0] sm:$0xff] }
 0x356   :  { %3821 = vrot.lane.b32.xlu1 %v8499_v32, %s6483_s26  ;;  %4389 = vrot.lane.b32.xlu0 %v8506_v14, %s6487_s10  ;;  %4159 = vst [vmem:[#allocation3 + $0x390] sm:$0xff] %v4135_v34 }
 0x357   :  { %v4136_v17 = vld [vmem:[#allocation2 + $0xb8] sm:$0xff] }
 0x358   :  { %4160 = vst [vmem:[#allocation3 + $0x398] sm:$0xff] %v4136_v17 }
 0x35a   :  { %3657 = vrot.lane.b32.xlu1 %v8499_v32, %s6484_s27  ;;  %4225 = vrot.lane.b32.xlu0 %v8506_v14, %s6488_s11 }
 0x35e   :  { %3493 = vrot.lane.b32.xlu1 %v8499_v32, %s6485_s28  ;;  %4717 = vrot.lane.b32.xlu0 %v8506_v14, %s6486_s1 }
 0x362   :  { %4543 = vrot.lane.b32.xlu1 %v8499_v32, %s6489_s12  ;;  %4007 = vrot.lane.b32.xlu0 %v8511_v27, %s6482_s3 }
 0x366   :  { %4379 = vrot.lane.b32.xlu1 %v8499_v32, %s6487_s10  ;;  %3833 = vrot.lane.b32.xlu0 %v8511_v27, %s6483_s26 }
 0x36a   :  { %4215 = vrot.lane.b32.xlu1 %v8499_v32, %s6488_s11  ;;  %3669 = vrot.lane.b32.xlu0 %v8511_v27, %s6484_s27 }
 0x36e   :  { %4707 = vrot.lane.b32.xlu1 %v8499_v32, %s6486_s1  ;;  %3505 = vrot.lane.b32.xlu0 %v8511_v27, %s6485_s28 }
 0x372   :  { %v2911_v24 = vpop.f32.mrf.mxu0  ;;  %4555 = vrot.lane.b32.xlu0 %v8511_v27, %s6489_s12  ;;  %4005 = vrot.lane.b32.xlu1 %v8506_v14, %s6482_s3 }
 0x373   :  { %v2912_v50 = vadd.f32 %v2911_v24, %v8475_v62 }
 0x374   :  { %v2913_v58 = vpop.f32.mrf.mxu0 }
 0x375   :  { %v2914_v7 = vadd.f32 %v2913_v58, %v8475_v62  ;;  %v3001_v46 = vadd.f32 %v3000_v61, %v2912_v50 }
 0x376   :  { %v2917_v16 = vpop.f32.mrf.mxu0  ;;  %4391 = vrot.lane.b32.xlu0 %v8511_v27, %s6487_s10  ;;  %3831 = vrot.lane.b32.xlu1 %v8506_v14, %s6483_s26 }
 0x377   :  { %v6050_v55 = vmul.f32 -1.442695, %v3001_v46  ;;  %v2918_v1 = vadd.f32 %v2917_v16, %v8479_v43  ;;  %v3003_v59 = vadd.f32 %v3002_v15, %v2914_v7 }
 0x378   :  { %v2919_v19 = vpop.f32.mrf.mxu0 }
 0x379   :  { %6368 = vpow2.f32 %v6050_v55  ;;  %v6051_v44 = vmul.f32 -1.442695, %v3003_v59  ;;  %v2920_v25 = vadd.f32 %v2919_v19, %v8479_v43  ;;  %v3007_v9 = vadd.f32 %v3006_v45, %v2918_v1  ;;  %v10277_v55 = vld [vmem:[#allocation11_spill] sm:$0xff] }
 0x37a   :  { %v2923_v54 = vpop.f32.mrf.mxu0  ;;  %4227 = vrot.lane.b32.xlu0 %v8511_v27, %s6488_s11  ;;  %3667 = vrot.lane.b32.xlu1 %v8506_v14, %s6484_s27 }
 0x37b   :  { %6370 = vpow2.f32 %v6051_v44  ;;  %v6056_v47 = vmul.f32 -1.442695, %v3007_v9  ;;  %v2924_v60 = vadd.f32 %v2923_v54, %v8471_v33  ;;  %v3009_v56 = vadd.f32 %v3008_v35, %v2920_v25  ;;  %v8639_v25 = vpop.permute.xlu1 %6158  ;;  %v8641_v9 = vpop.permute.xlu0 %6153 }
 0x37c   :  { %v2925_v28 = vpop.f32.mrf.mxu0 }
 0x37d   :  { %6372 = vpow2.f32 %v6056_v47  ;;  %v6057_v8 = vmul.f32 -1.442695, %v3009_v56  ;;  %v2926_v40 = vadd.f32 %v2925_v28, %v8471_v33  ;;  %v3013_v3 = vadd.f32 %v3012_v23, %v2924_v60  ;;  %v10276_v23 = vld [vmem:[#allocation10_spill] sm:$0xff] }
 0x37e   :  { %v2929_v4 = vpop.f32.mrf.mxu0  ;;  %4719 = vrot.lane.b32.xlu0 %v8511_v27, %s6486_s1  ;;  %3503 = vrot.lane.b32.xlu1 %v8506_v14, %s6485_s28 }
 0x37f   :  { %6374 = vpow2.f32 %v6057_v8  ;;  %v6062_v41 = vmul.f32 -1.442695, %v3013_v3  ;;  %v2930_v32 = vadd.f32 %v2929_v4, %v8473_v2  ;;  %v3015_v63 = vadd.f32 %v3014_v21, %v2926_v40 }
 0x380   :  { %v2931_v51 = vpop.f32.mrf.mxu0 }
 0x381   :  { %6376 = vpow2.f32 %v6062_v41  ;;  %v6063_v0 = vmul.f32 -1.442695, %v3015_v63  ;;  %v2932_v31 = vadd.f32 %v2931_v51, %v8473_v2  ;;  %v3019_v20 = vadd.f32 %v3018_v42, %v2930_v32  ;;  %v8662_v41 = vpop.permute.xlu1 %6168  ;;  %v8664_v32 = vpop.permute.xlu0 %6163 }
 0x382   :  { %4021 = vrot.lane.b32.xlu0 %v8523_v26, %s6482_s3  ;;  %4019 = vrot.lane.b32.xlu1 %v8518_v37, %s6482_s3 }
 0x383   :  { %6378 = vpow2.f32 %v6063_v0  ;;  %v6068_v57 = vmul.f32 -1.442695, %v3019_v20  ;;  %v3021_v49 = vadd.f32 %v3020_v48, %v2932_v31 }
 0x385   :  { %6380 = vpow2.f32 %v6068_v57  ;;  %v6069_v27 = vmul.f32 -1.442695, %v3021_v49 }
 0x386   :  { %v6369_v22 = vpop.eup %6368  ;;  %3845 = vrot.lane.b32.xlu0 %v8523_v26, %s6483_s26  ;;  %3843 = vrot.lane.b32.xlu1 %v8518_v37, %s6483_s26 }
 0x387   :  { %v3275_v18 = vadd.f32 1.0, %v6369_v22  ;;  %6382 = vpow2.f32 %v6069_v27 }
 0x388   :  { %v6371_v14 = vpop.eup %6370 }
 0x389   :  { %6384 = vrcp.f32 %v3275_v18  ;;  %v3276_v39 = vadd.f32 1.0, %v6371_v14 }
 0x38a   :  { %v6373_v53 = vpop.eup %6372  ;;  %3681 = vrot.lane.b32.xlu0 %v8523_v26, %s6484_s27  ;;  %3679 = vrot.lane.b32.xlu1 %v8518_v37, %s6484_s27 }
 0x38b   :  { %6386 = vrcp.f32 %v3276_v39  ;;  %v3281_v5 = vadd.f32 1.0, %v6373_v53 }
 0x38c   :  { %v6375_v29 = vpop.eup %6374 }
 0x38d   :  { %6388 = vrcp.f32 %v3281_v5  ;;  %v3282_v12 = vadd.f32 1.0, %v6375_v29 }
 0x38e   :  { %v6377_v10 = vpop.eup %6376  ;;  %3517 = vrot.lane.b32.xlu0 %v8523_v26, %s6485_s28  ;;  %3515 = vrot.lane.b32.xlu1 %v8518_v37, %s6485_s28 }
 0x38f   :  { %6390 = vrcp.f32 %v3282_v12  ;;  %v3287_v30 = vadd.f32 1.0, %v6377_v10 }
 0x390   :  { %v6379_v34 = vpop.eup %6378 }
 0x391   :  { %6392 = vrcp.f32 %v3287_v30  ;;  %v3288_v17 = vadd.f32 1.0, %v6379_v34  ;;  %v8687_v30 = vpop.permute.xlu1 %6178 }
 0x392   :  { %v6381_v61 = vpop.eup %6380  ;;  %4033 = vrot.lane.b32.xlu0 %v8530_v36, %s6482_s3  ;;  %4565 = vrot.lane.b32.xlu1 %v8518_v37, %s6489_s12 }
 0x393   :  { %6394 = vrcp.f32 %v3288_v17  ;;  %v3293_v15 = vadd.f32 1.0, %v6381_v61 }
 0x394   :  { %v6383_v45 = vpop.eup %6382 }
 0x395   :  { %6396 = vrcp.f32 %v3293_v15  ;;  %v3294_v35 = vadd.f32 1.0, %v6383_v45 }
 0x396   :  { %v6385_v24 = vpop.eup %6384  ;;  %3855 = vrot.lane.b32.xlu0 %v8530_v36, %s6483_s26  ;;  %4401 = vrot.lane.b32.xlu1 %v8518_v37, %s6487_s10 }
 0x397   :  { %v3371_v50 = vmul.f32 %v6385_v24, %v8491_v11  ;;  %6398 = vrcp.f32 %v3294_v35 }
 0x398   :  { %v6387_v58 = vpop.eup %6386 }
 0x399   :  { %v8622_v7 = vmul.f32 %v3371_v50, %v10276_v23  ;;  %v3372_v46 = vmul.f32 %v6387_v58, %v8491_v11 }
 0x39a   :  { %v6389_v16 = vpop.eup %6388  ;;  %3691 = vrot.lane.b32.xlu0 %v8530_v36, %s6484_s27  ;;  %4237 = vrot.lane.b32.xlu1 %v8518_v37, %s6488_s11 }
 0x39b   :  { %3419 = vst [vmem:[#allocation2 + $0x18] sm:$0xff] %v8622_v7  ;;  %v8627_v1 = vmul.f32 %v3372_v46, %v10277_v55  ;;  %v3377_v59 = vmul.f32 %v6389_v16, %v8496_v6 }
 0x39c   :  { %v6391_v19 = vpop.eup %6390 }
 0x39d   :  { %3420 = vst [vmem:[#allocation2 + $0x20] sm:$0xff] %v8627_v1  ;;  %v8636_v21 = vmul.f32 %v3377_v59, %v10276_v23  ;;  %v3378_v44 = vmul.f32 %v6391_v19, %v8496_v6 }
 0x39e   :  { %v6393_v54 = vpop.eup %6392  ;;  %3527 = vrot.lane.b32.xlu0 %v8530_v36, %s6485_s28  ;;  %4729 = vrot.lane.b32.xlu1 %v8518_v37, %s6486_s1 }
 0x39f   :  { %3425 = vst [vmem:[#allocation2 + $0x50] sm:$0xff] %v8636_v21  ;;  %v8645_v47 = vmul.f32 %v3378_v44, %v10277_v55  ;;  %v3383_v60 = vmul.f32 %v6393_v54, %v8487_v13 }
 0x3a0   :  { %v6395_v56 = vpop.eup %6394 }
 0x3a1   :  { %3426 = vst [vmem:[#allocation2 + $0x58] sm:$0xff] %v8645_v47  ;;  %v8654_v28 = vmul.f32 %v3383_v60, %v10276_v23  ;;  %v3384_v42 = vmul.f32 %v6395_v56, %v8487_v13  ;;  %v8698_v60 = vpop.permute.xlu1 %6188 }
 0x3a2   :  { %v6397_v8 = vpop.eup %6396  ;;  %v4119_v40 = vld [vmem:[#allocation2 + $0x18] sm:$0xff]  ;;  %4577 = vrot.lane.b32.xlu0 %v8530_v36, %s6489_s12  ;;  %4567 = vrot.lane.b32.xlu1 %v8523_v26, %s6489_s12 }
 0x3a3   :  { %3431 = vst [vmem:[#allocation2 + $0x88] sm:$0xff] %v8654_v28  ;;  %v8659_v3 = vmul.f32 %v3384_v42, %v10277_v55  ;;  %v3389_v4 = vmul.f32 %v6397_v8, %v8489_v38  ;;  %4143 = vst [vmem:[#allocation3 + $0x310] sm:$0xff] %v4119_v40  ;;  %v3089_v63 = vpop.f32.mrf.mxu1  ;;  %v3178_v51 = vpop.f32.mrf.mxu0 }
 0x3a4   :  { %v6399_v37 = vpop.eup %6398  ;;  %v4120_v48 = vld [vmem:[#allocation2 + $0x20] sm:$0xff]  ;;  %v3090_v20 = vadd.f32 %v3089_v63, %v8475_v62 }
 0x3a5   :  { %3432 = vst [vmem:[#allocation2 + $0x90] sm:$0xff] %v8659_v3  ;;  %v8672_v0 = vmul.f32 %v3389_v4, %v10276_v23  ;;  %v3390_v31 = vmul.f32 %v6399_v37, %v8489_v38  ;;  %4144 = vst [vmem:[#allocation3 + $0x318] sm:$0xff] %v4120_v48  ;;  %v3091_v57 = vpop.f32.mrf.mxu1  ;;  %v3180_v49 = vpop.f32.mrf.mxu0 }
 0x3a6   :  { %v4125_v27 = vld [vmem:[#allocation2 + $0x50] sm:$0xff]  ;;  %v3092_v18 = vadd.f32 %v3091_v57, %v8475_v62  ;;  %v3179_v14 = vadd.f32 %v3178_v51, %v3090_v20  ;;  %4413 = vrot.lane.b32.xlu0 %v8530_v36, %s6487_s10  ;;  %4403 = vrot.lane.b32.xlu1 %v8523_v26, %s6487_s10  ;;  %v8689_v62 = vpop.permute.xlu0 %6173 }
 0x3a7   :  { %3437 = vst [vmem:[#allocation2 + $0xc0] sm:$0xff] %v8672_v0  ;;  %v8678_v22 = vmul.f32 %v3390_v31, %v10277_v55  ;;  %4149 = vst [vmem:[#allocation3 + $0x340] sm:$0xff] %v4125_v27  ;;  %v3095_v39 = vpop.f32.mrf.mxu1  ;;  %v3184_v53 = vpop.f32.mrf.mxu0 }
 0x3a8   :  { %v4126_v5 = vld [vmem:[#allocation2 + $0x58] sm:$0xff]  ;;  %v6052_v29 = vmul.f32 -1.442695, %v3179_v14  ;;  %v3096_v12 = vadd.f32 %v3095_v39, %v8479_v43  ;;  %v3181_v10 = vadd.f32 %v3180_v49, %v3092_v18 }
 0x3a9   :  { %3438 = vst [vmem:[#allocation2 + $0xc8] sm:$0xff] %v8678_v22  ;;  %4150 = vst [vmem:[#allocation3 + $0x348] sm:$0xff] %v4126_v5  ;;  %v3097_v34 = vpop.f32.mrf.mxu1  ;;  %v3186_v17 = vpop.f32.mrf.mxu0 }
 0x3aa   :  { %v4131_v61 = vld [vmem:[#allocation2 + $0x88] sm:$0xff]  ;;  %6400 = vpow2.f32 %v6052_v29  ;;  %v6053_v15 = vmul.f32 -1.442695, %v3181_v10  ;;  %v3098_v45 = vadd.f32 %v3097_v34, %v8479_v43  ;;  %v3185_v35 = vadd.f32 %v3184_v53, %v3096_v12  ;;  %4249 = vrot.lane.b32.xlu0 %v8530_v36, %s6488_s11  ;;  %4239 = vrot.lane.b32.xlu1 %v8523_v26, %s6488_s11  ;;  %v8700_v56 = vpop.permute.xlu0 %6183 }
 0x3ab   :  { %4155 = vst [vmem:[#allocation3 + $0x370] sm:$0xff] %v4131_v61  ;;  %v3101_v24 = vpop.f32.mrf.mxu1  ;;  %v3190_v50 = vpop.f32.mrf.mxu0  ;;  %v6171_v53 = vunpack.i.h.bf16 %v8662_v41 }
 0x3ac   :  { %v4132_v58 = vld [vmem:[#allocation2 + $0x90] sm:$0xff]  ;;  %6402 = vpow2.f32 %v6053_v15  ;;  %v6058_v23 = vmul.f32 -1.442695, %v3185_v35  ;;  %v3102_v46 = vadd.f32 %v3101_v24, %v8471_v33  ;;  %v3187_v16 = vadd.f32 %v3186_v17, %v3098_v45 }
 0x3ad   :  { %4156 = vst [vmem:[#allocation3 + $0x378] sm:$0xff] %v4132_v58  ;;  %v3103_v55 = vpop.f32.mrf.mxu1  ;;  %v3192_v59 = vpop.f32.mrf.mxu0  ;;  %v6181_v15 = vunpack.i.h.bf16 %v8687_v30 }
 0x3ae   :  { %v4137_v43 = vld [vmem:[#allocation2 + $0xc0] sm:$0xff]  ;;  %6404 = vpow2.f32 %v6058_v23  ;;  %v6059_v19 = vmul.f32 -1.442695, %v3187_v16  ;;  %v3104_v44 = vadd.f32 %v3103_v55, %v8471_v33  ;;  %v3191_v54 = vadd.f32 %v3190_v50, %v3102_v46  ;;  %4741 = vrot.lane.b32.xlu0 %v8530_v36, %s6486_s1  ;;  %4731 = vrot.lane.b32.xlu1 %v8523_v26, %s6486_s1 }
 0x3af   :  { %4161 = vst [vmem:[#allocation3 + $0x3a0] sm:$0xff] %v4137_v43  ;;  %v3107_v42 = vpop.f32.mrf.mxu1  ;;  %v3196_v8 = vpop.f32.mrf.mxu0  ;;  %v6161_v26 = vunpack.i.h.bf16 %v8639_v25  ;;  %v6191_v16 = vunpack.i.h.bf16 %v8698_v60 }
 0x3b0   :  { %v4138_v40 = vld [vmem:[#allocation2 + $0xc8] sm:$0xff]  ;;  %6406 = vpow2.f32 %v6059_v19  ;;  %v6064_v4 = vmul.f32 -1.442695, %v3191_v54  ;;  %v3108_v37 = vadd.f32 %v3107_v42, %v8473_v2  ;;  %v3193_v33 = vadd.f32 %v3192_v59, %v3104_v44 }
 0x3b1   :  { %4162 = vst [vmem:[#allocation3 + $0x3a8] sm:$0xff] %v4138_v40  ;;  %v3109_v63 = vpop.f32.mrf.mxu1  ;;  %v3198_v51 = vpop.f32.mrf.mxu0 }
 0x3b2   :  { %6408 = vpow2.f32 %v6064_v4  ;;  %v6065_v48 = vmul.f32 -1.442695, %v3193_v33  ;;  %v3110_v31 = vadd.f32 %v3109_v63, %v8473_v2  ;;  %v3197_v20 = vadd.f32 %v3196_v8, %v3108_v37  ;;  %4579 = vrot.lane.b32.xlu0 %v8535_v52, %s6489_s12  ;;  %4035 = vrot.lane.b32.xlu1 %v8535_v52, %s6482_s3 }
 0x3b4   :  { %6410 = vpow2.f32 %v6065_v48  ;;  %v6070_v36 = vmul.f32 -1.442695, %v3197_v20  ;;  %v3199_v57 = vadd.f32 %v3198_v51, %v3110_v31  ;;  %v8713_v49 = vpop.permute.xlu1 %4541  ;;  %v3992_v27 = vpop.permute.xlu0 %3991  ;;  %v10278_v20 = vld [vmem:[#allocation12_spill] sm:$0xff] }
 0x3b5   :  { %v8716_v14 = vsel %vm1621_vm5, %v6161_v26, %v3992_v27 }
 0x3b6   :  { %6412 = vpow2.f32 %v6070_v36  ;;  %v6071_v18 = vmul.f32 -1.442695, %v3199_v57  ;;  %4415 = vrot.lane.b32.xlu0 %v8535_v52, %s6487_s10  ;;  %3857 = vrot.lane.b32.xlu1 %v8535_v52, %s6483_s26 }
 0x3b7   :  { %v6401_v2 = vpop.eup %6400 }
 0x3b8   :  { %v3277_v39 = vadd.f32 1.0, %v6401_v2  ;;  %6414 = vpow2.f32 %v6071_v18  ;;  %v8723_v29 = vpop.permute.xlu1 %4377  ;;  %v3820_v12 = vpop.permute.xlu0 %3819  ;;  %v10279_v18 = vld [vmem:[#allocation13_spill] sm:$0xff] }
 0x3b9   :  { %v6403_v5 = vpop.eup %6402  ;;  %v8726_v34 = vsel %vm1440_vm8, %v6171_v53, %v3820_v12 }
 0x3ba   :  { %6416 = vrcp.f32 %v3277_v39  ;;  %v3278_v10 = vadd.f32 1.0, %v6403_v5  ;;  %4251 = vrot.lane.b32.xlu0 %v8535_v52, %s6488_s11  ;;  %3693 = vrot.lane.b32.xlu1 %v8535_v52, %s6484_s27 }
 0x3bb   :  { %v6405_v17 = vpop.eup %6404 }
 0x3bc   :  { %6418 = vrcp.f32 %v3278_v10  ;;  %v3283_v61 = vadd.f32 1.0, %v6405_v17  ;;  %v8733_v35 = vpop.permute.xlu1 %4213  ;;  %v3656_v24 = vpop.permute.xlu0 %3655 }
 0x3bd   :  { %v6407_v45 = vpop.eup %6406  ;;  %v8736_v58 = vsel %vm1275_vm9, %v6181_v15, %v3656_v24 }
 0x3be   :  { %6420 = vrcp.f32 %v3283_v61  ;;  %v3284_v50 = vadd.f32 1.0, %v6407_v45  ;;  %4743 = vrot.lane.b32.xlu0 %v8535_v52, %s6486_s1  ;;  %3529 = vrot.lane.b32.xlu1 %v8535_v52, %s6485_s28 }
 0x3bf   :  { %v6409_v23 = vpop.eup %6408 }
 0x3c0   :  { %6422 = vrcp.f32 %v3284_v50  ;;  %v3289_v46 = vadd.f32 1.0, %v6409_v23  ;;  %v8743_v59 = vpop.permute.xlu1 %4705  ;;  %v3492_v43 = vpop.permute.xlu0 %3491 }
 0x3c1   :  { %v6411_v55 = vpop.eup %6410  ;;  %v8746_v44 = vsel %vm1110_vm10, %v6191_v16, %v3492_v43 }
 0x3c2   :  { %6424 = vrcp.f32 %v3289_v46  ;;  %v3290_v19 = vadd.f32 1.0, %v6411_v55  ;;  %4545 = vrot.lane.b32.xlu0 %v8622_v7, %s6489_s12  ;;  %3495 = vrot.lane.b32.xlu1 %v8622_v7, %s6485_s28 }
 0x3c3   :  { %v6413_v54 = vpop.eup %6412 }
 0x3c4   :  { %6426 = vrcp.f32 %v3290_v19  ;;  %v3295_v52 = vadd.f32 1.0, %v6413_v54  ;;  %v8752_v8 = vpop.permute.xlu1 %3993  ;;  %v8754_v40 = vpop.permute.xlu0 %4553 }
 0x3c5   :  { %v6415_v42 = vpop.eup %6414  ;;  %v8758_v37 = vsel %vm1621_vm5, %v3992_v27, %v8752_v8 }
 0x3c6   :  { %6428 = vrcp.f32 %v3295_v52  ;;  %v3296_v4 = vadd.f32 1.0, %v6415_v42  ;;  %4381 = vrot.lane.b32.xlu0 %v8622_v7, %s6487_s10  ;;  %3997 = vrot.lane.b32.xlu1 %v8627_v1, %s6482_s3 }
 0x3c7   :  { %v6417_v33 = vpop.eup %6416 }
 0x3c8   :  { %v3373_v63 = vmul.f32 %v6417_v33, %v8491_v11  ;;  %6430 = vrcp.f32 %v3296_v4  ;;  %v8765_v48 = vpop.permute.xlu1 %3821  ;;  %v8767_v31 = vpop.permute.xlu0 %4389 }
 0x3c9   :  { %v6419_v51 = vpop.eup %6418  ;;  %v8775_v57 = vsel %vm1440_vm8, %v3820_v12, %v8765_v48 }
 0x3ca   :  { %v8770_v26 = vmul.f32 %v3373_v63, %v10278_v20  ;;  %v3374_v36 = vmul.f32 %v6419_v51, %v8491_v11  ;;  %4217 = vrot.lane.b32.xlu0 %v8622_v7, %s6488_s11  ;;  %3825 = vrot.lane.b32.xlu1 %v8627_v1, %s6483_s26 }
 0x3cb   :  { %v6421_v27 = vpop.eup %6420 }
 0x3cc   :  { %3421 = vst [vmem:[#allocation2 + $0x28] sm:$0xff] %v8770_v26  ;;  %v3398_v2 = vmul.f32 %v3374_v36, %v10279_v18  ;;  %v3379_v39 = vmul.f32 %v6421_v27, %v8496_v6  ;;  %v8784_v5 = vpop.permute.xlu1 %3657  ;;  %v8786_v11 = vpop.permute.xlu0 %4225 }
 0x3cd   :  { %v6423_v53 = vpop.eup %6422  ;;  %v8795_v17 = vsel %vm1275_vm9, %v3656_v24, %v8784_v5 }
 0x3ce   :  { %3422 = vst.msk [vmem:[#allocation2 + $0x30] sm:$0xff] %vm682_vm2, %v3398_v2  ;;  %v8790_v12 = vmul.f32 %v3379_v39, %v10278_v20  ;;  %v3380_v10 = vmul.f32 %v6423_v53, %v8496_v6  ;;  %4709 = vrot.lane.b32.xlu0 %v8622_v7, %s6486_s1  ;;  %3661 = vrot.lane.b32.xlu1 %v8627_v1, %s6484_s27 }
 0x3cf   :  { %v6425_v61 = vpop.eup %6424 }
 0x3d0   :  { %3427 = vst [vmem:[#allocation2 + $0x60] sm:$0xff] %v8790_v12  ;;  %v3404_v15 = vmul.f32 %v3380_v10, %v10279_v18  ;;  %v3385_v45 = vmul.f32 %v6425_v61, %v8487_v13  ;;  %v8804_v23 = vpop.permute.xlu1 %3493  ;;  %v8806_v6 = vpop.permute.xlu0 %4717 }
 0x3d1   :  { %v6427_v50 = vpop.eup %6426  ;;  %v8815_v16 = vsel %vm1110_vm10, %v3492_v43, %v8804_v23 }
 0x3d2   :  { %3428 = vst.msk [vmem:[#allocation2 + $0x68] sm:$0xff] %vm682_vm2, %v3404_v15  ;;  %v8810_v24 = vmul.f32 %v3385_v45, %v10278_v20  ;;  %v3386_v46 = vmul.f32 %v6427_v50, %v8487_v13  ;;  %3995 = vrot.lane.b32.xlu0 %v8622_v7, %s6482_s3  ;;  %4547 = vrot.lane.b32.xlu1 %v8627_v1, %s6489_s12  ;;  %v6160_v50 = vunpack.i.l.bf16 %v8639_v25 }
 0x3d3   :  { %v6429_v55 = vpop.eup %6428  ;;  %v4121_v19 = vld [vmem:[#allocation2 + $0x28] sm:$0xff] }
 0x3d4   :  { %3433 = vst [vmem:[#allocation2 + $0x98] sm:$0xff] %v8810_v24  ;;  %v3410_v54 = vmul.f32 %v3386_v46, %v10279_v18  ;;  %v3391_v52 = vmul.f32 %v6429_v55, %v8489_v38  ;;  %4145 = vst [vmem:[#allocation3 + $0x320] sm:$0xff] %v4121_v19  ;;  %v8824_v42 = vpop.permute.xlu1 %4543  ;;  %v8826_v43 = vpop.permute.xlu0 %4007 }
 0x3d5   :  { %v6431_v13 = vpop.eup %6430  ;;  %v4122_v4 = vld [vmem:[#allocation2 + $0x30] sm:$0xff]  ;;  %v4589_v51 = vsel %vm2168_vm12, %v8713_v49, %v8824_v42 }
 0x3d6   :  { %3434 = vst.msk [vmem:[#allocation2 + $0xa0] sm:$0xff] %vm682_vm2, %v3410_v54  ;;  %v8830_v33 = vmul.f32 %v3391_v52, %v10278_v20  ;;  %v3392_v63 = vmul.f32 %v6431_v13, %v8489_v38  ;;  %4146 = vst.msk [vmem:[#allocation3 + $0x328] sm:$0xff] %vm682_vm2, %v4122_v4  ;;  %3823 = vrot.lane.b32.xlu0 %v8622_v7, %s6483_s26  ;;  %4557 = vrot.lane.b32.xlu1 %v8636_v21, %s6489_s12 }
 0x3d7   :  { %4633 = vst [vmem:[#allocation3 + $0x540] sm:$0xff] %v4589_v51  ;;  %v4127_v36 = vld [vmem:[#allocation2 + $0x60] sm:$0xff] }
 0x3d8   :  { %3439 = vst [vmem:[#allocation2 + $0xd0] sm:$0xff] %v8830_v33  ;;  %v3416_v20 = vmul.f32 %v3392_v63, %v10279_v18  ;;  %4151 = vst [vmem:[#allocation3 + $0x350] sm:$0xff] %v4127_v36  ;;  %v8843_v38 = vpop.permute.xlu1 %4379  ;;  %v8845_v27 = vpop.permute.xlu0 %3833 }
 0x3d9   :  { %v4128_v49 = vld [vmem:[#allocation2 + $0x68] sm:$0xff]  ;;  %v4425_v2 = vsel %vm2003_vm6, %v8723_v29, %v8843_v38 }
 0x3da   :  { %3440 = vst.msk [vmem:[#allocation2 + $0xd8] sm:$0xff] %vm682_vm2, %v3416_v20  ;;  %4152 = vst.msk [vmem:[#allocation3 + $0x358] sm:$0xff] %vm682_vm2, %v4128_v49  ;;  %3659 = vrot.lane.b32.xlu0 %v8622_v7, %s6484_s27  ;;  %4393 = vrot.lane.b32.xlu1 %v8636_v21, %s6487_s10 }
 0x3db   :  { %4469 = vst [vmem:[#allocation3 + $0x480] sm:$0xff] %v4425_v2  ;;  %v4133_v18 = vld [vmem:[#allocation2 + $0x98] sm:$0xff] }
 0x3dc   :  { %4157 = vst [vmem:[#allocation3 + $0x380] sm:$0xff] %v4133_v18  ;;  %v8856_v39 = vpop.permute.xlu1 %4215  ;;  %v8858_v53 = vpop.permute.xlu0 %3669 }
 0x3dd   :  { %10280 = vst [vmem:[#allocation37_spill] sm:$0xff] %v8858_v53  ;;  %v4134_v10 = vld [vmem:[#allocation2 + $0xa0] sm:$0xff]  ;;  %v4261_v29 = vsel %vm1838_vm7, %v8733_v35, %v8856_v39 }
 0x3de   :  { %4158 = vst.msk [vmem:[#allocation3 + $0x388] sm:$0xff] %vm682_vm2, %v4134_v10  ;;  %4305 = vst [vmem:[#allocation3 + $0x3c0] sm:$0xff] %v4261_v29  ;;  %4711 = vrot.lane.b32.xlu0 %v8627_v1, %s6486_s1  ;;  %4229 = vrot.lane.b32.xlu1 %v8636_v21, %s6488_s11 }
 0x3df   :  { %v4139_v7 = vld [vmem:[#allocation2 + $0xd0] sm:$0xff] }
 0x3e0   :  { %4163 = vst [vmem:[#allocation3 + $0x3b0] sm:$0xff] %v4139_v7  ;;  %v8868_v61 = vpop.permute.xlu1 %4707  ;;  %v8870_v15 = vpop.permute.xlu0 %3505 }
 0x3e1   :  { %10281 = vst [vmem:[#allocation34_spill] sm:$0xff] %v8870_v15  ;;  %v4140_v45 = vld [vmem:[#allocation2 + $0xd8] sm:$0xff]  ;;  %v4753_v35 = vsel %vm2333_vm11, %v8743_v59, %v8868_v61 }
 0x3e2   :  { %4164 = vst.msk [vmem:[#allocation3 + $0x3b8] sm:$0xff] %vm682_vm2, %v4140_v45  ;;  %4797 = vst [vmem:[#allocation3 + $0x600] sm:$0xff] %v4753_v35  ;;  %3497 = vrot.lane.b32.xlu0 %v8627_v1, %s6485_s28  ;;  %4721 = vrot.lane.b32.xlu1 %v8636_v21, %s6486_s1  ;;  %v6170_v1 = vunpack.i.l.bf16 %v8662_v41  ;;  %v6180_v41 = vunpack.i.l.bf16 %v8687_v30  ;;  %v6190_v30 = vunpack.i.l.bf16 %v8698_v60  ;;  %v6156_v60 = vunpack.i.h.bf16 %v8641_v9 }
 0x3e4   :  { %v4006_v46 = vpop.permute.xlu1 %4005  ;;  %v8881_v55 = vpop.permute.xlu0 %4555 }
 0x3e5   :  { %v8884_v19 = vsel %vm1621_vm5, %v6160_v50, %v4006_v46  ;;  %v8888_v59 = vsel %vm1621_vm5, %v4006_v46, %v8826_v43  ;;  %v8893_v54 = vsel %vm2168_vm12, %v8754_v40, %v8881_v55 }
 0x3e6   :  { %10282 = vst [vmem:[#allocation23_spill] sm:$0xff] %v8893_v54  ;;  %4009 = vrot.lane.b32.xlu0 %v8636_v21, %s6482_s3  ;;  %4011 = vrot.lane.b32.xlu1 %v8645_v47, %s6482_s3 }
 0x3e8   :  { %v3832_v25 = vpop.permute.xlu1 %3831  ;;  %v8900_v52 = vpop.permute.xlu0 %4391 }
 0x3e9   :  { %v8903_v13 = vsel %vm1440_vm8, %v6170_v1, %v3832_v25  ;;  %v8907_v4 = vsel %vm1440_vm8, %v3832_v25, %v8845_v27  ;;  %v4430_v40 = vsel %vm2003_vm6, %v8767_v31, %v8900_v52  ;;  %v6176_v25 = vunpack.i.h.bf16 %v8689_v62 }
 0x3ea   :  { %4475 = vst [vmem:[#allocation3 + $0x4b0] sm:$0xff] %v4430_v40  ;;  %3835 = vrot.lane.b32.xlu0 %v8636_v21, %s6483_s26  ;;  %3837 = vrot.lane.b32.xlu1 %v8645_v47, %s6483_s26 }
 0x3ec   :  { %v3668_v63 = vpop.permute.xlu1 %3667  ;;  %v8917_v51 = vpop.permute.xlu0 %4227 }
 0x3ed   :  { %v8920_v36 = vsel %vm1275_vm9, %v6180_v41, %v3668_v63  ;;  %v8924_v20 = vsel %vm1275_vm9, %v3668_v63, %v8858_v53  ;;  %v4266_v31 = vsel %vm1838_vm7, %v8786_v11, %v8917_v51 }
 0x3ee   :  { %4311 = vst [vmem:[#allocation3 + $0x3f0] sm:$0xff] %v4266_v31  ;;  %3671 = vrot.lane.b32.xlu0 %v8636_v21, %s6484_s27  ;;  %3673 = vrot.lane.b32.xlu1 %v8645_v47, %s6484_s27 }
 0x3f0   :  { %v3504_v49 = vpop.permute.xlu1 %3503  ;;  %v8934_v2 = vpop.permute.xlu0 %4719 }
 0x3f1   :  { %v8937_v18 = vsel %vm1110_vm10, %v6190_v30, %v3504_v49  ;;  %v8941_v10 = vsel %vm1110_vm10, %v3504_v49, %v8870_v15  ;;  %v4758_v11 = vsel %vm2333_vm11, %v8806_v6, %v8934_v2 }
 0x3f2   :  { %4803 = vst [vmem:[#allocation3 + $0x630] sm:$0xff] %v4758_v11  ;;  %3507 = vrot.lane.b32.xlu0 %v8636_v21, %s6485_s28  ;;  %3509 = vrot.lane.b32.xlu1 %v8645_v47, %s6485_s28  ;;  %v6166_v21 = vunpack.i.h.bf16 %v8664_v32 }
 0x3f4   :  { %v4020_v29 = vpop.permute.xlu1 %4019  ;;  %v8951_v7 = vpop.permute.xlu0 %4021 }
 0x3f5   :  { %10283 = vst [vmem:[#allocation25_spill] sm:$0xff] %v8951_v7  ;;  %v8954_v45 = vsel %vm1621_vm5, %v6156_v60, %v4020_v29  ;;  %v8958_v35 = vsel %vm1621_vm5, %v4020_v29, %v8951_v7  ;;  %v6155_v29 = vunpack.i.l.bf16 %v8641_v9  ;;  %v6175_v9 = vunpack.i.l.bf16 %v8689_v62 }
 0x3f6   :  { %3519 = vrot.lane.b32.xlu1 %v8654_v28, %s6485_s28  ;;  %4723 = vrot.lane.b32.xlu0 %v8645_v47, %s6486_s1 }
 0x3f8   :  { %v3844_v6 = vpop.permute.xlu1 %3843  ;;  %v8965_v50 = vpop.permute.xlu0 %3845 }
 0x3f9   :  { %10284 = vst [vmem:[#allocation18_spill] sm:$0xff] %v8965_v50  ;;  %v8968_v46 = vsel %vm1440_vm8, %v6166_v21, %v3844_v6  ;;  %v8972_v1 = vsel %vm1440_vm8, %v3844_v6, %v8965_v50 }
 0x3fa   :  { %4025 = vrot.lane.b32.xlu1 %v8659_v3, %s6482_s3  ;;  %4559 = vrot.lane.b32.xlu0 %v8645_v47, %s6489_s12  ;;  %v6186_v47 = vunpack.i.h.bf16 %v8700_v56 }
 0x3fc   :  { %v3680_v40 = vpop.permute.xlu1 %3679  ;;  %v8979_v41 = vpop.permute.xlu0 %3681 }
 0x3fd   :  { %10285 = vst [vmem:[#allocation47_spill] sm:$0xff] %v8979_v41  ;;  %v8982_v63 = vsel %vm1275_vm9, %v6176_v25, %v3680_v40  ;;  %v8986_v31 = vsel %vm1275_vm9, %v3680_v40, %v8979_v41  ;;  %v6165_v40 = vunpack.i.l.bf16 %v8664_v32  ;;  %v6185_v32 = vunpack.i.l.bf16 %v8700_v56 }
 0x3fe   :  { %3849 = vrot.lane.b32.xlu1 %v8659_v3, %s6483_s26  ;;  %4569 = vrot.lane.b32.xlu0 %v8654_v28, %s6489_s12 }
 0x400   :  { %v3516_v30 = vpop.permute.xlu1 %3515  ;;  %v8993_v49 = vpop.permute.xlu0 %3517 }
 0x401   :  { %10286 = vst [vmem:[#allocation42_spill] sm:$0xff] %v8993_v49  ;;  %v8996_v11 = vsel %vm1110_vm10, %v6186_v47, %v3516_v30  ;;  %v9000_v60 = vsel %vm1110_vm10, %v3516_v30, %v8993_v49 }
 0x402   :  { %3685 = vrot.lane.b32.xlu1 %v8659_v3, %s6484_s27  ;;  %4405 = vrot.lane.b32.xlu0 %v8654_v28, %s6487_s10 }
 0x404   :  { %v4566_v21 = vpop.permute.xlu1 %4565  ;;  %v4034_v6 = vpop.permute.xlu0 %4033 }
 0x405   :  { %v4063_v25 = vsel %vm1621_vm5, %v6155_v29, %v4034_v6 }
 0x406   :  { %4571 = vrot.lane.b32.xlu1 %v8659_v3, %s6489_s12  ;;  %4241 = vrot.lane.b32.xlu0 %v8654_v28, %s6488_s11 }
 0x408   :  { %v4402_v47 = vpop.permute.xlu1 %4401  ;;  %v3856_v30 = vpop.permute.xlu0 %3855 }
 0x409   :  { %v9014_v41 = vsel %vm1440_vm8, %v6165_v40, %v3856_v30 }
 0x40a   :  { %4407 = vrot.lane.b32.xlu1 %v8659_v3, %s6487_s10  ;;  %4733 = vrot.lane.b32.xlu0 %v8654_v28, %s6486_s1 }
 0x40c   :  { %v4238_v29 = vpop.permute.xlu1 %4237  ;;  %v3692_v54 = vpop.permute.xlu0 %3691 }
 0x40d   :  { %v9022_v50 = vsel %vm1275_vm9, %v6175_v9, %v3692_v54 }
 0x40e   :  { %4581 = vrot.lane.b32.xlu1 %v8672_v0, %s6489_s12  ;;  %4023 = vrot.lane.b32.xlu0 %v8654_v28, %s6482_s3 }
 0x410   :  { %v4730_v40 = vpop.permute.xlu1 %4729  ;;  %v3528_v7 = vpop.permute.xlu0 %3527 }
 0x411   :  { %v9030_v49 = vsel %vm1110_vm10, %v6185_v32, %v3528_v7 }
 0x412   :  { %4417 = vrot.lane.b32.xlu1 %v8672_v0, %s6487_s10  ;;  %3847 = vrot.lane.b32.xlu0 %v8654_v28, %s6483_s26 }
 0x414   :  { %v9036_v62 = vpop.permute.xlu1 %4567  ;;  %v4578_v9 = vpop.permute.xlu0 %4577 }
 0x415   :  { %10287 = vst [vmem:[#allocation21_spill] sm:$0xff] %v9036_v62  ;;  %v9040_v15 = vsel %vm2168_vm12, %v4566_v21, %v9036_v62 }
 0x416   :  { %10288 = vst [vmem:[#allocation17_spill] sm:$0xff] %v9040_v15  ;;  %4253 = vrot.lane.b32.xlu1 %v8672_v0, %s6488_s11  ;;  %3683 = vrot.lane.b32.xlu0 %v8654_v28, %s6484_s27 }
 0x418   :  { %v9046_v56 = vpop.permute.xlu1 %4403  ;;  %v4414_v32 = vpop.permute.xlu0 %4413 }
 0x419   :  { %v9050_v53 = vsel %vm2003_vm6, %v4402_v47, %v9046_v56 }
 0x41a   :  { %10289 = vst [vmem:[#allocation48_spill] sm:$0xff] %v9050_v53  ;;  %4745 = vrot.lane.b32.xlu1 %v8672_v0, %s6486_s1  ;;  %4735 = vrot.lane.b32.xlu0 %v8659_v3, %s6486_s1 }
 0x41c   :  { %v9056_v21 = vpop.permute.xlu1 %4239  ;;  %v4250_v15 = vpop.permute.xlu0 %4249 }
 0x41d   :  { %10290 = vst [vmem:[#allocation39_spill] sm:$0xff] %v9056_v21  ;;  %v9060_v62 = vsel %vm1838_vm7, %v4238_v29, %v9056_v21 }
 0x41e   :  { %10291 = vst [vmem:[#allocation52_spill] sm:$0xff] %v9060_v62  ;;  %4039 = vrot.lane.b32.xlu1 %v8678_v22, %s6482_s3  ;;  %3521 = vrot.lane.b32.xlu0 %v8659_v3, %s6485_s28 }
 0x420   :  { %v9066_v28 = vpop.permute.xlu1 %4731  ;;  %v4742_v47 = vpop.permute.xlu0 %4741 }
 0x421   :  { %10292 = vst [vmem:[#allocation38_spill] sm:$0xff] %v9066_v28  ;;  %v9070_v53 = vsel %vm2333_vm11, %v4730_v40, %v9066_v28 }
 0x422   :  { %10293 = vst [vmem:[#allocation27_spill] sm:$0xff] %v9070_v53  ;;  %3861 = vrot.lane.b32.xlu1 %v8678_v22, %s6483_s26  ;;  %4037 = vrot.lane.b32.xlu0 %v8672_v0, %s6482_s3 }
 0x424   :  { %v9076_v29 = vpop.permute.xlu1 %4035  ;;  %v9078_v62 = vpop.permute.xlu0 %4579 }
 0x425   :  { %v4064_v3 = vsel %vm1621_vm5, %v4034_v6, %v9076_v29  ;;  %v9084_v21 = vsel %vm2168_vm12, %v4578_v9, %v9078_v62  ;;  %v9108_v9 = vld [vmem:[%s10039_s7 + $0x8] sm:$0xff] }
 0x426   :  { %3697 = vrot.lane.b32.xlu1 %v8678_v22, %s6484_s27  ;;  %3859 = vrot.lane.b32.xlu0 %v8672_v0, %s6483_s26  ;;  %10294 = vst [vmem:[#allocation19_spill] sm:$0xff] %v9108_v9 }
 0x427   :  { %5061 = vmatprep.subr.mxu0 %v4064_v3  ;;  %5125 = vmatprep.mubr.f32.mxu0 %v9108_v9 }
 0x428   :  { %v9090_v40 = vpop.permute.xlu1 %3857  ;;  %v9092_v53 = vpop.permute.xlu0 %4415  ;;  %5062 = vmatpush1.msra.mxu0 %v4063_v25 }
 0x429   :  { %v3881_v28 = vsel %vm1440_vm8, %v3856_v30, %v9090_v40  ;;  %v9098_v6 = vsel %vm2003_vm6, %v4414_v32, %v9092_v53  ;;  %5063 = vmatprep.subr.mxu0 %v8958_v35 }
 0x42a   :  { %3533 = vrot.lane.b32.xlu1 %v8678_v22, %s6485_s28  ;;  %3695 = vrot.lane.b32.xlu0 %v8672_v0, %s6484_s27 }
 0x42b   :  { %5064 = vmatpush1.msra.mxu0 %v8954_v45 }
 0x42c   :  { %v9112_v25 = vpop.permute.xlu1 %3693  ;;  %v9114_v30 = vpop.permute.xlu0 %4251  ;;  %5065 = vmatprep.subr.mxu0 %v8888_v59 }
 0x42d   :  { %v3717_v35 = vsel %vm1275_vm9, %v3692_v54, %v9112_v25  ;;  %v9121_v32 = vsel %vm1838_vm7, %v4250_v15, %v9114_v30  ;;  %5066 = vmatpush1.msra.mxu0 %v8884_v19 }
 0x42e   :  { %4713 = vrot.lane.b32.xlu1 %v8770_v26, %s6486_s1  ;;  %3531 = vrot.lane.b32.xlu0 %v8672_v0, %s6485_s28 }
 0x42f   :  { %5067 = vmatprep.subr.mxu0 %v8758_v37 }
 0x430   :  { %v9129_v45 = vpop.permute.xlu1 %3529  ;;  %v9131_v59 = vpop.permute.xlu0 %4743  ;;  %5068 = vmatpush1.msra.mxu0 %v8716_v14 }
 0x431   :  { %v3553_v15 = vsel %vm1110_vm10, %v3528_v7, %v9129_v45  ;;  %v9138_v19 = vsel %vm2333_vm11, %v4742_v47, %v9131_v59  ;;  %5069 = vmatprep.subr.mxu0 %v3881_v28 }
 0x432   :  { %3827 = vrot.lane.b32.xlu1 %v8770_v26, %s6483_s26  ;;  %4747 = vrot.lane.b32.xlu0 %v8678_v22, %s6486_s1 }
 0x433   :  { %5070 = vmatpush1.msra.mxu0 %v9014_v41 }
 0x434   :  { %v9145_v0 = vpop.permute.xlu1 %3495  ;;  %v4546_v37 = vpop.permute.xlu0 %4545  ;;  %5071 = vmatprep.subr.mxu0 %v8972_v1 }
 0x435   :  { %v3539_v14 = vsel %vm1110_vm10, %v8804_v23, %v9145_v0  ;;  %v9153_v54 = vsel %vm2168_vm12, %v8824_v42, %v4546_v37  ;;  %5072 = vmatpush1.msra.mxu0 %v8968_v46  ;;  %v9171_v42 = vld [vmem:[#allocation2 + $0x30] sm:$0xff] }
 0x436   :  { %3583 = vst [vmem:[#allocation3 + $0x10] sm:$0xff] %v3539_v14  ;;  %3663 = vrot.lane.b32.xlu1 %v8770_v26, %s6484_s27  ;;  %4583 = vrot.lane.b32.xlu0 %v8678_v22, %s6489_s12 }
 0x437   :  { %5073 = vmatprep.subr.mxu0 %v8907_v4 }
 0x438   :  { %v9161_v7 = vpop.permute.xlu1 %3997  ;;  %v9163_v1 = vpop.permute.xlu0 %4381  ;;  %5074 = vmatpush1.msra.mxu0 %v8903_v13 }
 0x439   :  { %10295 = vst [vmem:[#allocation15_spill] sm:$0xff] %v9163_v1  ;;  %v9169_v23 = vsel %vm2003_vm6, %v8843_v38, %v9163_v1  ;;  %5075 = vmatprep.subr.mxu0 %v8775_v57 }
 0x43a   :  { %4001 = vrot.lane.b32.xlu1 %v9171_v42, %s6482_s3  ;;  %4419 = vrot.lane.b32.xlu0 %v8678_v22, %s6487_s10 }
 0x43b   :  { %5076 = vmatpush1.msra.mxu0 %v8726_v34 }
 0x43c   :  { %v9179_v4 = vpop.permute.xlu1 %3825  ;;  %v9181_v13 = vpop.permute.xlu0 %4217  ;;  %5077 = vmatprep.subr.mxu0 %v3717_v35 }
 0x43d   :  { %10296 = vst [vmem:[#allocation54_spill] sm:$0xff] %v9181_v13  ;;  %v9186_v38 = vsel %vm1838_vm7, %v8856_v39, %v9181_v13  ;;  %5078 = vmatpush1.msra.mxu0 %v9022_v50 }
 0x43e   :  { %4725 = vrot.lane.b32.xlu1 %v8790_v12, %s6486_s1  ;;  %3999 = vrot.lane.b32.xlu0 %v8770_v26, %s6482_s3 }
 0x43f   :  { %5079 = vmatprep.subr.mxu0 %v8986_v31 }
 0x440   :  { %v9194_v22 = vpop.permute.xlu1 %3661  ;;  %v4710_v34 = vpop.permute.xlu0 %4709  ;;  %5080 = vmatpush1.msra.mxu0 %v8982_v63 }
 0x441   :  { %v9199_v57 = vsel %vm2333_vm11, %v8868_v61, %v4710_v34  ;;  %5081 = vmatprep.subr.mxu0 %v8924_v20 }
 0x442   :  { %4561 = vrot.lane.b32.xlu1 %v8790_v12, %s6489_s12  ;;  %4549 = vrot.lane.b32.xlu0 %v8770_v26, %s6489_s12  ;;  %v9221_v26 = vld [vmem:[#allocation2 + $0x68] sm:$0xff] }
 0x443   :  { %5082 = vmatpush1.msra.mxu0 %v8920_v36 }
 0x444   :  { %v9207_v39 = vpop.permute.xlu1 %4547  ;;  %v3996_v50 = vpop.permute.xlu0 %3995  ;;  %5083 = vmatprep.subr.mxu0 %v8795_v17 }
 0x445   :  { %10297 = vst [vmem:[#allocation45_spill] sm:$0xff] %v9207_v39  ;;  %v4591_v46 = vsel %vm2168_vm12, %v4546_v37, %v9207_v39  ;;  %v9214_v61 = vsel %vm1621_vm5, %v8752_v8, %v3996_v50  ;;  %v9218_v20 = vsel %vm1621_vm5, %v3996_v50, %v9161_v7  ;;  %5084 = vmatpush1.msra.mxu0 %v8736_v58 }
 0x446   :  { %4635 = vst [vmem:[#allocation3 + $0x550] sm:$0xff] %v4591_v46  ;;  %4095 = vst [vmem:[#allocation3 + $0x250] sm:$0xff] %v9214_v61  ;;  %4015 = vrot.lane.b32.xlu1 %v9221_v26, %s6482_s3  ;;  %4013 = vrot.lane.b32.xlu0 %v8790_v12, %s6482_s3  ;;  %v3792_v46 = vld [vmem:[#allocation2 + $0xd0] sm:$0xff] }
 0x447   :  { %5085 = vmatprep.subr.mxu0 %v3553_v15 }
 0x448   :  { %5086 = vmatpush1.msra.mxu0 %v9030_v49  ;;  %v9229_v8 = vpop.permute.xlu1 %4557  ;;  %v3824_v17 = vpop.permute.xlu0 %3823 }
 0x449   :  { %v9234_v58 = vsel %vm2168_vm12, %v8881_v55, %v9229_v8  ;;  %v9238_v36 = vsel %vm1440_vm8, %v8765_v48, %v3824_v17  ;;  %v9242_v41 = vsel %vm1440_vm8, %v3824_v17, %v9179_v4  ;;  %5087 = vmatprep.subr.mxu0 %v9000_v60  ;;  %v9304_v60 = vld [vmem:[#allocation2 + $0xa0] sm:$0xff] }
 0x44a   :  { %3911 = vst [vmem:[#allocation3 + $0x190] sm:$0xff] %v9238_v36  ;;  %5088 = vmatpush1.msra.mxu0 %v8996_v11  ;;  %4737 = vrot.lane.b32.xlu1 %v8810_v24, %s6486_s1 }
 0x44b   :  { %3839 = vrot.lane.b32.xlu0 %v8790_v12, %s6483_s26  ;;  %5089 = vmatprep.subr.mxu0 %v8941_v10  ;;  %v9274_v12 = vld [vmem:[#allocation2 + $0x60] sm:$0xff] }
 0x44c   :  { %5090 = vmatpush1.msra.mxu0 %v8937_v18  ;;  %v9253_v48 = vpop.permute.xlu1 %4393  ;;  %v3660_v55 = vpop.permute.xlu0 %3659 }
 0x44d   :  { %10298 = vst [vmem:[#allocation44_spill] sm:$0xff] %v9253_v48  ;;  %v9258_v63 = vsel %vm2003_vm6, %v8900_v52, %v9253_v48  ;;  %v9262_v31 = vsel %vm1275_vm9, %v8784_v5, %v3660_v55  ;;  %v9266_v49 = vsel %vm1275_vm9, %v3660_v55, %v9194_v22  ;;  %5091 = vmatprep.subr.mxu0 %v8815_v16  ;;  %v10316_v48 = vld [vmem:[#allocation21_spill] sm:$0xff] }
 0x44e   :  { %10299 = vst [vmem:[#allocation36_spill] sm:$0xff] %v9262_v31  ;;  %3747 = vst [vmem:[#allocation3 + $0xd0] sm:$0xff] %v9262_v31  ;;  %5092 = vmatpush1.msra.mxu0 %v8746_v44  ;;  %3851 = vrot.lane.b32.xlu1 %v8810_v24, %s6483_s26  ;;  %v10321_v31 = vld [vmem:[#allocation38_spill] sm:$0xff] }
 0x44f   :  { %3748 = vst [vmem:[#allocation3 + $0xd8] sm:$0xff] %v9266_v49  ;;  %3675 = vrot.lane.b32.xlu0 %v9274_v12, %s6484_s27 }
 0x450   :  { %v9278_v5 = vpop.permute.xlu1 %4229  ;;  %v9280_v52 = vpop.permute.xlu0 %4711 }
 0x451   :  { %10300 = vst [vmem:[#allocation26_spill] sm:$0xff] %v9278_v5  ;;  %v9285_v16 = vsel %vm1838_vm7, %v8917_v51, %v9278_v5  ;;  %v4755_v44 = vsel %vm2333_vm11, %v4710_v34, %v9280_v52  ;;  %v10306_v34 = vld [vmem:[#allocation37_spill] sm:$0xff] }
 0x452   :  { %4799 = vst [vmem:[#allocation3 + $0x610] sm:$0xff] %v4755_v44  ;;  %3687 = vrot.lane.b32.xlu1 %v8810_v24, %s6484_s27  ;;  %v10308_v44 = vld [vmem:[#allocation34_spill] sm:$0xff] }
 0x453   :  { %4027 = vrot.lane.b32.xlu0 %v8810_v24, %s6482_s3  ;;  %v9309_v24 = vld [vmem:[#allocation2 + $0x98] sm:$0xff] }
 0x454   :  { %v4722_v18 = vpop.permute.xlu1 %4721  ;;  %v9293_v10 = vpop.permute.xlu0 %3497 }
 0x455   :  { %10301 = vst [vmem:[#allocation46_spill] sm:$0xff] %v9293_v10  ;;  %v9297_v11 = vsel %vm2333_vm11, %v8934_v2, %v4722_v18  ;;  %v9302_v51 = vsel %vm1110_vm10, %v9145_v0, %v9293_v10 }
 0x456   :  { %10302 = vst [vmem:[#allocation32_spill] sm:$0xff] %v9302_v51  ;;  %3584 = vst [vmem:[#allocation3 + $0x18] sm:$0xff] %v9302_v51  ;;  %4029 = vrot.lane.b32.xlu1 %v9304_v60, %s6482_s3  ;;  %v3446_v51 = vld [vmem:[#allocation2 + $0x28] sm:$0xff] }
 0x457   :  { %4573 = vrot.lane.b32.xlu0 %v9309_v24, %s6489_s12 }
 0x458   :  { %v9313_v28 = vpop.permute.xlu1 %4011  ;;  %v4010_v2 = vpop.permute.xlu0 %4009 }
 0x459   :  { %10303 = vst [vmem:[#allocation40_spill] sm:$0xff] %v9313_v28  ;;  %v9317_v47 = vsel %vm1621_vm5, %v8826_v43, %v4010_v2  ;;  %v9321_v3 = vsel %vm1621_vm5, %v4010_v2, %v9313_v28  ;;  %v10319_v28 = vld [vmem:[#allocation39_spill] sm:$0xff] }
 0x45a   :  { %4749 = vrot.lane.b32.xlu1 %v8830_v33, %s6486_s1 }
 0x45b   :  { %4409 = vrot.lane.b32.xlu0 %v9309_v24, %s6487_s10 }
 0x45c   :  { %v9327_v35 = vpop.permute.xlu1 %3837  ;;  %v3836_v15 = vpop.permute.xlu0 %3835 }
 0x45d   :  { %10304 = vst [vmem:[#allocation28_spill] sm:$0xff] %v9327_v35  ;;  %v9331_v0 = vsel %vm1440_vm8, %v8845_v27, %v3836_v15  ;;  %v9335_v43 = vsel %vm1440_vm8, %v3836_v15, %v9327_v35 }
 0x45e   :  { %4585 = vrot.lane.b32.xlu1 %v8830_v33, %s6489_s12 }
 0x45f   :  { %4041 = vrot.lane.b32.xlu0 %v8830_v33, %s6482_s3 }
 0x460   :  { %v9341_v37 = vpop.permute.xlu1 %3673  ;;  %v3672_v14 = vpop.permute.xlu0 %3671 }
 0x461   :  { %10305 = vst [vmem:[#allocation53_spill] sm:$0xff] %v9341_v37  ;;  %v9345_v50 = vsel %vm1275_vm9, %v10306_v34, %v3672_v14  ;;  %v9349_v27 = vsel %vm1275_vm9, %v3672_v14, %v9341_v37  ;;  %v9364_v34 = vld [vmem:[#allocation2 + $0xd8] sm:$0xff]  ;;  %v4332_v37 = vld [vmem:[#allocation2 + $0x20] sm:$0xff] }
 0x462   :  { %4421 = vrot.lane.b32.xlu1 %v8830_v33, %s6487_s10 }
 0x463   :  { %3863 = vrot.lane.b32.xlu0 %v3792_v46, %s6483_s26 }
 0x464   :  { %v9354_v17 = vpop.permute.xlu1 %3509  ;;  %v3508_v55 = vpop.permute.xlu0 %3507 }
 0x465   :  { %10307 = vst [vmem:[#allocation49_spill] sm:$0xff] %v9354_v17  ;;  %v9358_v2 = vsel %vm1110_vm10, %v10308_v44, %v3508_v55  ;;  %v9362_v15 = vsel %vm1110_vm10, %v3508_v55, %v9354_v17  ;;  %v10311_v44 = vld [vmem:[#allocation42_spill] sm:$0xff] }
 0x466   :  { %10309 = vst [vmem:[#allocation51_spill] sm:$0xff] %v9358_v2  ;;  %10310 = vst [vmem:[#allocation33_spill] sm:$0xff] %v9362_v15  ;;  %4043 = vrot.lane.b32.xlu1 %v9364_v34, %s6482_s3 }
 0x467   :  { %3589 = vst [vmem:[#allocation3 + $0x40] sm:$0xff] %v9358_v2  ;;  %3699 = vrot.lane.b32.xlu0 %v3792_v46, %s6484_s27 }
 0x468   :  { %v9370_v33 = vpop.permute.xlu1 %3519  ;;  %v9372_v14 = vpop.permute.xlu0 %4723 }
 0x469   :  { %v9377_v13 = vsel %vm1110_vm10, %v10311_v44, %v9370_v33  ;;  %v9381_v55 = vsel %vm2333_vm11, %v4722_v18, %v9372_v14  ;;  %v4338_v44 = vld [vmem:[#allocation2 + $0x58] sm:$0xff] }
 0x46a   :  { %10312 = vst [vmem:[#allocation41_spill] sm:$0xff] %v9377_v13  ;;  %10313 = vst [vmem:[#allocation50_spill] sm:$0xff] %v9381_v55  ;;  %3523 = vrot.lane.b32.xlu1 %v9309_v24, %s6485_s28 }
 0x46b   :  { %3535 = vrot.lane.b32.xlu0 %v3792_v46, %s6485_s28 }
 0x46c   :  { %v9386_v5 = vpop.permute.xlu1 %4025  ;;  %v9388_v10 = vpop.permute.xlu0 %4559 }
 0x46d   :  { %10314 = vst [vmem:[#allocation29_spill] sm:$0xff] %v9388_v10  ;;  %v9393_v17 = vsel %vm2168_vm12, %v9229_v8, %v9388_v10 }
 0x46e   :  { %10315 = vst [vmem:[#allocation22_spill] sm:$0xff] %v9393_v17  ;;  %4397 = vrot.lane.b32.xlu1 %v9274_v12, %s6487_s10 }
 0x46f   :  { %4395 = vrot.lane.b32.xlu0 %v4338_v44, %s6487_s10 }
 0x470   :  { %v9398_v18 = vpop.permute.xlu1 %3849  ;;  %v4570_v1 = vpop.permute.xlu0 %4569 }
 0x471   :  { %v4600_v55 = vsel %vm2168_vm12, %v10316_v48, %v4570_v1 }
 0x472   :  { %4383 = vrot.lane.b32.xlu1 %v4332_v37, %s6487_s10 }
 0x473   :  { %3511 = vrot.lane.b32.xlu0 %v9274_v12, %s6485_s28 }
 0x474   :  { %v9405_v8 = vpop.permute.xlu1 %3685  ;;  %v4406_v17 = vpop.permute.xlu0 %4405 }
 0x475   :  { %v4436_v35 = vsel %vm2003_vm6, %v9046_v56, %v4406_v17  ;;  %v4186_v56 = vld [vmem:[#allocation2 + $0xc8] sm:$0xff] }
 0x476   :  { %3499 = vrot.lane.b32.xlu1 %v3446_v51, %s6485_s28 }
 0x477   :  { %4385 = vrot.lane.b32.xlu0 %v3446_v51, %s6487_s10 }
 0x478   :  { %v9411_v2 = vpop.permute.xlu1 %4571  ;;  %v9413_v48 = vpop.permute.xlu0 %4241 }
 0x479   :  { %10317 = vst [vmem:[#allocation16_spill] sm:$0xff] %v9413_v48  ;;  %v9417_v15 = vsel %vm2168_vm12, %v4570_v1, %v9411_v2  ;;  %v9422_v9 = vsel %vm1838_vm7, %v10319_v28, %v9413_v48  ;;  %v10322_v48 = vld [vmem:[#allocation25_spill] sm:$0xff] }
 0x47a   :  { %10318 = vst [vmem:[#allocation43_spill] sm:$0xff] %v9417_v15  ;;  %4257 = vrot.lane.b32.xlu1 %v3792_v46, %s6488_s11  ;;  %v4180_v15 = vld [vmem:[#allocation2 + $0x90] sm:$0xff] }
 0x47b   :  { %4255 = vrot.lane.b32.xlu0 %v4186_v56, %s6488_s11 }
 0x47c   :  { %v9426_v13 = vpop.permute.xlu1 %4407  ;;  %v4734_v39 = vpop.permute.xlu0 %4733 }
 0x47d   :  { %v9430_v10 = vsel %vm2003_vm6, %v4406_v17, %v9426_v13  ;;  %v4764_v1 = vsel %vm2333_vm11, %v10321_v31, %v4734_v39 }
 0x47e   :  { %10320 = vst [vmem:[#allocation24_spill] sm:$0xff] %v9430_v10  ;;  %4243 = vrot.lane.b32.xlu1 %v4180_v15, %s6488_s11 }
 0x47f   :  { %4245 = vrot.lane.b32.xlu0 %v9309_v24, %s6488_s11 }
 0x480   :  { %v9437_v28 = vpop.permute.xlu1 %4581  ;;  %v4024_v46 = vpop.permute.xlu0 %4023 }
 0x481   :  { %v4605_v56 = vsel %vm2168_vm12, %v9078_v62, %v9437_v28  ;;  %v9444_v17 = vsel %vm1621_vm5, %v10322_v48, %v4024_v46  ;;  %v9448_v31 = vsel %vm1621_vm5, %v4024_v46, %v9386_v5  ;;  %v10323_v48 = vld [vmem:[#allocation18_spill] sm:$0xff] }
 0x482   :  { %4575 = vrot.lane.b32.xlu1 %v9304_v60, %s6489_s12  ;;  %5093 = vmatprep.subr.mxu0 %v4605_v56  ;;  %v10324_v56 = vld [vmem:[#allocation17_spill] sm:$0xff] }
 0x483   :  { %4231 = vrot.lane.b32.xlu0 %v4338_v44, %s6488_s11  ;;  %5094 = vmatpush2.msra.mxu0 %v9084_v21  ;;  %v10325_v21 = vld [vmem:[#allocation23_spill] sm:$0xff] }
 0x484   :  { %v9454_v24 = vpop.permute.xlu1 %4417  ;;  %v3848_v15 = vpop.permute.xlu0 %3847  ;;  %5095 = vmatprep.subr.mxu0 %v4600_v55  ;;  %v5001_v44 = vld [vmem:[#allocation3 + $0x540] sm:$0xff] }
 0x485   :  { %v4441_v62 = vsel %vm2003_vm6, %v9092_v53, %v9454_v24  ;;  %v9461_v46 = vsel %vm1440_vm8, %v10323_v48, %v3848_v15  ;;  %v9465_v10 = vsel %vm1440_vm8, %v3848_v15, %v9398_v18  ;;  %5096 = vmatpush2.msra.mxu0 %v10324_v56  ;;  %v10326_v48 = vld [vmem:[#allocation47_spill] sm:$0xff] }
 0x486   :  { %4233 = vrot.lane.b32.xlu1 %v9274_v12, %s6488_s11  ;;  %5097 = vmatprep.subr.mxu0 %v9234_v58 }
 0x487   :  { %4563 = vrot.lane.b32.xlu0 %v9221_v26, %s6489_s12  ;;  %5098 = vmatpush2.msra.mxu0 %v10325_v21 }
 0x488   :  { %v9474_v53 = vpop.permute.xlu1 %4253  ;;  %v3684_v55 = vpop.permute.xlu0 %3683  ;;  %5099 = vmatprep.subr.mxu0 %v9153_v54 }
 0x489   :  { %v4277_v15 = vsel %vm1838_vm7, %v9114_v30, %v9474_v53  ;;  %v9482_v12 = vsel %vm1275_vm9, %v10326_v48, %v3684_v55  ;;  %v9486_v58 = vsel %vm1275_vm9, %v3684_v55, %v9405_v8  ;;  %5100 = vmatpush2.msra.mxu0 %v5001_v44  ;;  %v10329_v44 = vld [vmem:[#allocation52_spill] sm:$0xff] }
 0x48a   :  { %4219 = vrot.lane.b32.xlu1 %v4332_v37, %s6488_s11  ;;  %5101 = vmatprep.subr.mxu0 %v4441_v62  ;;  %v10327_v37 = vld [vmem:[#allocation48_spill] sm:$0xff] }
 0x48b   :  { %4587 = vrot.lane.b32.xlu0 %v9364_v34, %s6489_s12  ;;  %5102 = vmatpush2.msra.mxu0 %v9098_v6  ;;  %v4983_v6 = vld [vmem:[#allocation3 + $0x4b0] sm:$0xff] }
 0x48c   :  { %v9492_v54 = vpop.permute.xlu1 %4745  ;;  %v9494_v30 = vpop.permute.xlu0 %4735  ;;  %5103 = vmatprep.subr.mxu0 %v4436_v35 }
 0x48d   :  { %v4769_v56 = vsel %vm2333_vm11, %v9131_v59, %v9492_v54  ;;  %v9501_v21 = vsel %vm2333_vm11, %v4734_v39, %v9494_v30  ;;  %5104 = vmatpush2.msra.mxu0 %v10327_v37  ;;  %v4977_v39 = vld [vmem:[#allocation3 + $0x480] sm:$0xff] }
 0x48e   :  { %4551 = vrot.lane.b32.xlu1 %v9171_v42, %s6489_s12  ;;  %5174 = vmatprep.subr.mxu1 %v4769_v56  ;;  %v4953_v56 = vld [vmem:[#allocation3 + $0x3c0] sm:$0xff] }
 0x48f   :  { %4221 = vrot.lane.b32.xlu0 %v3446_v51, %s6488_s11  ;;  %5105 = vmatprep.subr.mxu0 %v9258_v63  ;;  %v10328_v63 = vld [vmem:[#allocation27_spill] sm:$0xff] }
 0x490   :  { %v9508_v35 = vpop.permute.xlu1 %4039  ;;  %v9510_v62 = vpop.permute.xlu0 %3521  ;;  %5106 = vmatpush2.msra.mxu0 %v4983_v6  ;;  %5175 = vmatpush1.msra.mxu1 %v9138_v19 }
 0x491   :  { %v9516_v59 = vsel %vm1110_vm10, %v9370_v33, %v9510_v62  ;;  %5176 = vmatprep.subr.mxu1 %v4764_v1  ;;  %5107 = vmatprep.subr.mxu0 %v9169_v23  ;;  %v5031_v33 = vld [vmem:[#allocation3 + $0x630] sm:$0xff] }
 0x492   :  { %4411 = vrot.lane.b32.xlu1 %v9304_v60, %s6487_s10  ;;  %5108 = vmatpush2.msra.mxu0 %v4977_v39  ;;  %v6436_v39 = vld [vmem:[#allocation3 + $0x390] sm:$0xff] }
 0x493   :  { %4423 = vrot.lane.b32.xlu0 %v9364_v34, %s6487_s10  ;;  %5177 = vmatpush1.msra.mxu1 %v10328_v63 }
 0x494   :  { %v9524_v51 = vpop.permute.xlu1 %3861  ;;  %v4038_v19 = vpop.permute.xlu0 %4037  ;;  %5109 = vmatprep.subr.mxu0 %v4277_v15  ;;  %5178 = vmatprep.subr.mxu1 %v9297_v11  ;;  %v5025_v11 = vld [vmem:[#allocation3 + $0x600] sm:$0xff] }
 0x495   :  { %v4065_v23 = vsel %vm1621_vm5, %v9076_v29, %v4038_v19  ;;  %v4066_v1 = vsel %vm1621_vm5, %v4038_v19, %v9508_v35  ;;  %5110 = vmatpush2.msra.mxu0 %v9121_v32  ;;  %5179 = vmatpush1.msra.mxu1 %v5031_v33  ;;  %v9544_v32 = vld [vmem:[%s10039_s7 + $0x10] sm:$0xff]  ;;  %v6437_v19 = vld [vmem:[#allocation3 + $0x368] sm:$0xff]  ;;  %v6439_v33 = vld [vmem:[#allocation3 + $0x338] sm:$0xff] }
 0x496   :  { %4387 = vrot.lane.b32.xlu1 %v9171_v42, %s6487_s10  ;;  %5180 = vmatprep.subr.mxu1 %v9199_v57 }
 0x497   :  { %4399 = vrot.lane.b32.xlu0 %v9221_v26, %s6487_s10  ;;  %5111 = vmatprep.subr.mxu0 %v9422_v9  ;;  %v4959_v9 = vld [vmem:[#allocation3 + $0x3f0] sm:$0xff] }
 0x498   :  { %v9538_v55 = vpop.permute.xlu1 %3697  ;;  %v3860_v29 = vpop.permute.xlu0 %3859  ;;  %5112 = vmatpush2.msra.mxu0 %v10329_v44  ;;  %5181 = vmatpush1.msra.mxu1 %v5025_v11  ;;  %v9692_v44 = vld [vmem:[%s10039_s7 + $0x50] sm:$0xff] }
 0x499   :  { %v3882_v57 = vsel %vm1440_vm8, %v9090_v40, %v3860_v29  ;;  %v3883_v15 = vsel %vm1440_vm8, %v3860_v29, %v9524_v51  ;;  %5113 = vmatprep.subr.mxu0 %v9285_v16  ;;  %5239 = vmatprep.subr.mxu1 %v4066_v1  ;;  %v9654_v1 = vld [vmem:[#allocation2] sm:$0xff] }
 0x49a   :  { %4247 = vrot.lane.b32.xlu1 %v9304_v60, %s6488_s11  ;;  %5114 = vmatpush2.msra.mxu0 %v4959_v9  ;;  %v10331_v9 = vld [vmem:[#allocation29_spill] sm:$0xff] }
 0x49b   :  { %4259 = vrot.lane.b32.xlu0 %v9364_v34, %s6488_s11  ;;  %6072 = vmatmul.mubr.msk.f32.vlgmr.msra.gmra.mxu1 %vm2654_vm13, %v9544_v32 }
 0x49c   :  { %v9557_v48 = vpop.permute.xlu1 %3533  ;;  %v3696_v40 = vpop.permute.xlu0 %3695  ;;  %5240 = vmatpush1.msra.mxu1 %v4065_v23  ;;  %5115 = vmatprep.subr.mxu0 %v9186_v38  ;;  %v6435_v38 = vld [vmem:[#allocation3 + $0x398] sm:$0xff]  ;;  %v6442_v23 = vld [vmem:[#allocation3 + $0x300] sm:$0xff] }
 0x49d   :  { %v9562_v16 = vsel %vm1275_vm9, %v9112_v25, %v3696_v40  ;;  %v9566_v37 = vsel %vm1275_vm9, %v3696_v40, %v9538_v55  ;;  %5241 = vmatprep.subr.mxu1 %v9448_v31  ;;  %5116 = vmatpush2.msra.mxu0 %v4953_v56 }
 0x49e   :  { %4223 = vrot.lane.b32.xlu1 %v9171_v42, %s6488_s11  ;;  %5242 = vmatpush1.msra.mxu1 %v9444_v17 }
 0x49f   :  { %4235 = vrot.lane.b32.xlu0 %v9221_v26, %s6488_s11  ;;  %5117 = vmatprep.subr.mxu0 %v6435_v38  ;;  %v10333_v38 = vld [vmem:[#allocation41_spill] sm:$0xff]  ;;  %s6491_s11 = smov 36  }
 0x4a0   :  { %v9574_v6 = vpop.permute.xlu1 %4713  ;;  %v3532_v25 = vpop.permute.xlu0 %3531  ;;  %5243 = vmatprep.subr.mxu1 %v9321_v3  ;;  %5118 = vmatpush2.msra.mxu0 %v6436_v39  ;;  %v10335_v39 = vld [vmem:[#allocation40_spill] sm:$0xff] }
 0x4a1   :  { %v9580_v31 = vsel %vm2333_vm11, %v9280_v52, %v9574_v6  ;;  %v9584_v17 = vsel %vm1110_vm10, %v9129_v45, %v3532_v25  ;;  %v9588_v63 = vsel %vm1110_vm10, %v3532_v25, %v9557_v48  ;;  %5244 = vmatpush1.msra.mxu1 %v9317_v47  ;;  %5119 = vmatprep.subr.mxu0 %v6437_v19  ;;  %v6438_v52 = vld [vmem:[#allocation3 + $0x360] sm:$0xff] }
 0x4a2   :  { %4739 = vrot.lane.b32.xlu1 %v9304_v60, %s6486_s1  ;;  %5245 = vmatprep.subr.mxu1 %v9218_v20  ;;  %v6440_v60 = vld [vmem:[#allocation3 + $0x330] sm:$0xff]  ;;  %v10334_v25 = vld [vmem:[#allocation19_spill] sm:$0xff] }
 0x4a3   :  { %4751 = vrot.lane.b32.xlu0 %v9364_v34, %s6486_s1  ;;  %5120 = vmatpush2.msra.mxu0 %v6438_v52  ;;  %v10336_v52 = vld [vmem:[#allocation33_spill] sm:$0xff] }
 0x4a4   :  { %v3828_v45 = vpop.permute.xlu1 %3827  ;;  %v9596_v3 = vpop.permute.xlu0 %4747  ;;  %5246 = vmatpush1.msra.mxu1 %v9214_v61  ;;  %5121 = vmatprep.subr.mxu0 %v6439_v33 }
 0x4a5   :  { %v9601_v47 = vsel %vm1440_vm8, %v9179_v4, %v3828_v45  ;;  %3914 = vst.msk [vmem:[#allocation3 + $0x1a8] sm:$0xff] %vm682_vm2, %v3828_v45  ;;  %v9607_v20 = vsel %vm2333_vm11, %v9492_v54, %v9596_v3  ;;  %5247 = vmatprep.subr.mxu1 %v3883_v15  ;;  %5122 = vmatpush2.msra.mxu0 %v6440_v60  ;;  %v9617_v4 = vld [vmem:[%s10039_s7] sm:$0xff]  ;;  %v6441_v54 = vld [vmem:[#allocation3 + $0x308] sm:$0xff]  ;;  %v4835_v45 = vld [vmem:[#allocation3 + $0x10] sm:$0xff] }
 0x4a6   :  { %4715 = vrot.lane.b32.xlu1 %v9171_v42, %s6486_s1  ;;  %5248 = vmatpush1.msra.mxu1 %v3882_v57  ;;  %v9625_v42 = vld [vmem:[%s10039_s7 + $0x20] sm:$0xff] }
 0x4a7   :  { %4727 = vrot.lane.b32.xlu0 %v9221_v26, %s6486_s1  ;;  %5249 = vmatprep.subr.mxu1 %v9465_v10 }
 0x4a8   :  { %v3664_v61 = vpop.permute.xlu1 %3663  ;;  %v9619_v34 = vpop.permute.xlu0 %4583  ;;  %5123 = vmatprep.subr.mxu0 %v6441_v54  ;;  %5250 = vmatpush1.msra.mxu1 %v9461_v46  ;;  %v10339_v54 = vld [vmem:[#allocation28_spill] sm:$0xff] }
 0x4a9   :  { %v9629_v26 = vsel %vm1275_vm9, %v9194_v22, %v3664_v61  ;;  %3750 = vst.msk [vmem:[#allocation3 + $0xe8] sm:$0xff] %vm682_vm2, %v3664_v61  ;;  %v9635_v10 = vsel %vm2168_vm12, %v9437_v28, %v9619_v34  ;;  %5124 = vmatpush2.msra.mxu0 %v6442_v23  ;;  %5251 = vmatprep.subr.mxu1 %v9335_v43  ;;  %v9643_v22 = vld [vmem:[%s10039_s7 + $0x28] sm:$0xff]  ;;  %v9650_v28 = vld [vmem:[%s10039_s7 + $0x18] sm:$0xff] }
 0x4aa   :  { %5126 = vmatmul.mubr.f32.vlgmr.msra.gmra.mxu0 %v9617_v4  ;;  %5252 = vmatpush1.msra.mxu1 %v9331_v0 }
 0x4ab   :  { %5253 = vmatprep.subr.mxu1 %v9242_v41  ;;  %5131 = vmatprep.mubr.f32.mxu0 %v9625_v42  ;;  %v9661_v41 = vld [vmem:[%s10039_s7 + $0x38] sm:$0xff] }
 0x4ac   :  { %v4002_v46 = vpop.permute.xlu1 %4001  ;;  %v9652_v43 = vpop.permute.xlu0 %4419  ;;  %5220 = vmatprep.mubr.f32.mxu1 %v9654_v1  ;;  %5254 = vmatpush1.msra.mxu1 %v9238_v36  ;;  %v9676_v36 = vld [vmem:[%s10039_s7 + $0x40] sm:$0xff] }
 0x4ad   :  { %v9666_v0 = vsel %vm2003_vm6, %v9454_v24, %v9652_v43  ;;  %6073 = vmatmul.mubr.msk.f32.gmra.mxu1 %vm2654_vm13, %v9643_v22  ;;  %5255 = vmatprep.subr.mxu1 %v9566_v37  ;;  %v9683_v24 = vld [vmem:[%s10039_s7 + $0x30] sm:$0xff] }
 0x4ae   :  { %5132 = vmatmul.mubr.f32.gmra.mxu0 %v9650_v28  ;;  %5256 = vmatpush1.msra.mxu1 %v9562_v16 }
 0x4af   :  { %5257 = vmatprep.subr.mxu1 %v9486_v58  ;;  %5137 = vmatprep.mubr.f32.mxu0 %v9661_v41 }
 0x4b0   :  { %v9685_v11 = vpop.permute.xlu1 %4725  ;;  %v4000_v29 = vpop.permute.xlu0 %3999  ;;  %5226 = vmatprep.mubr.f32.mxu1 %v9654_v1  ;;  %5258 = vmatpush1.msra.mxu1 %v9482_v12 }
 0x4b1   :  { %v9697_v58 = vsel %vm2333_vm11, %v9372_v14, %v9685_v11  ;;  %v9701_v57 = vsel %vm1621_vm5, %v9161_v7, %v4000_v29  ;;  %v4050_v15 = vsel %vm1621_vm5, %v4000_v29, %v4002_v46  ;;  %6074 = vmatmul.mubr.msk.f32.gmra.mxu1 %vm2654_vm13, %v9676_v36  ;;  %5259 = vmatprep.subr.mxu1 %v9349_v27  ;;  %v9713_v14 = vld [vmem:[%s10039_s7 + $0x58] sm:$0xff]  ;;  %v9720_v7 = vld [vmem:[%s10039_s7 + $0x48] sm:$0xff] }
 0x4b2   :  { %4098 = vst.msk [vmem:[#allocation3 + $0x268] sm:$0xff] %vm682_vm2, %v4050_v15  ;;  %5138 = vmatmul.mubr.f32.gmra.mxu0 %v9683_v24  ;;  %5260 = vmatpush1.msra.mxu1 %v9345_v50  ;;  %v10330_v50 = vld [vmem:[#allocation36_spill] sm:$0xff] }
 0x4b3   :  { %5261 = vmatprep.subr.mxu1 %v9266_v49  ;;  %5143 = vmatprep.mubr.f32.mxu0 %v9692_v44  ;;  %v10332_v49 = vld [vmem:[#allocation45_spill] sm:$0xff] }
 0x4b4   :  { %v9722_v27 = vpop.permute.xlu1 %4561  ;;  %v9724_v12 = vpop.permute.xlu0 %4549  ;;  %5232 = vmatprep.mubr.f32.mxu1 %v9654_v1  ;;  %5262 = vmatpush1.msra.mxu1 %v10330_v50  ;;  %v10340_v50 = vld [vmem:[#allocation53_spill] sm:$0xff] }
 0x4b5   :  { %v9731_v40 = vsel %vm2168_vm12, %v10331_v9, %v9722_v27  ;;  %v9736_v56 = vsel %vm2168_vm12, %v10332_v49, %v9724_v12  ;;  %6075 = vmatmul.mubr.msk.f32.gmra.mxu1 %vm2654_vm13, %v9713_v14  ;;  %5263 = vmatprep.subr.mxu1 %v9588_v63 }
 0x4b6   :  { %5144 = vmatmul.mubr.f32.gmra.mxu0 %v9720_v7  ;;  %5264 = vmatpush1.msra.mxu1 %v9584_v17  ;;  %v10337_v17 = vld [vmem:[#allocation51_spill] sm:$0xff] }
 0x4b7   :  { %5265 = vmatprep.subr.mxu1 %v9516_v59  ;;  %5392 = vmatprep.mubr.f32.mxu0 %v9654_v1  ;;  %v10338_v59 = vld [vmem:[#allocation32_spill] sm:$0xff] }
 0x4b8   :  { %v4016_v16 = vpop.permute.xlu1 %4015  ;;  %v4014_v37 = vpop.permute.xlu0 %4013  ;;  %5266 = vmatpush1.msra.mxu1 %v10333_v38  ;;  %5303 = vmatprep.mubr.f32.mxu1 %v10334_v25 }
 0x4b9   :  { %v9749_v19 = vsel %vm1621_vm5, %v10335_v39, %v4014_v37  ;;  %v4056_v63 = vsel %vm1621_vm5, %v4014_v37, %v4016_v16  ;;  %5267 = vmatprep.subr.mxu1 %v10336_v52 }
 0x4ba   :  { %4104 = vst.msk [vmem:[#allocation3 + $0x298] sm:$0xff] %vm682_vm2, %v4056_v63  ;;  %5268 = vmatpush1.msra.mxu1 %v10337_v17 }
 0x4bb   :  { %5269 = vmatprep.subr.mxu1 %v10338_v59 }
 0x4bc   :  { %v9756_v33 = vpop.permute.xlu1 %4737  ;;  %5270 = vmatpush1.msra.mxu1 %v4835_v45  ;;  %v5027_v45 = vld [vmem:[#allocation3 + $0x610] sm:$0xff] }
 0x4bd   :  { %v4766_v60 = vsel %vm2333_vm11, %v9494_v30, %v9756_v33  ;;  %v3840_v61 = vpop.permute.xlu0 %3839 }
 0x4be   :  { %v9763_v23 = vsel %vm1440_vm8, %v10339_v54, %v3840_v61  ;;  %3920 = vst.msk [vmem:[#allocation3 + $0x1d8] sm:$0xff] %vm682_vm2, %v3840_v61  ;;  %v10344_v54 = vld [vmem:[#allocation24_spill] sm:$0xff] }
 0x4c0   :  { %v3852_v46 = vpop.permute.xlu1 %3851 }
 0x4c1   :  { %v9768_v29 = vsel %vm1440_vm8, %v9398_v18, %v3852_v46  ;;  %3926 = vst.msk [vmem:[#allocation3 + $0x208] sm:$0xff] %vm682_vm2, %v3852_v46  ;;  %v3676_v15 = vpop.permute.xlu0 %3675 }
 0x4c2   :  { %v9773_v9 = vsel %vm1275_vm9, %v10340_v50, %v3676_v15  ;;  %3756 = vst.msk [vmem:[#allocation3 + $0x118] sm:$0xff] %vm682_vm2, %v3676_v15  ;;  %v10345_v50 = vld [vmem:[#allocation44_spill] sm:$0xff] }
 0x4c4   :  { %v3688_v30 = vpop.permute.xlu1 %3687 }
 0x4c5   :  { %v9778_v49 = vsel %vm1275_vm9, %v9405_v8, %v3688_v30  ;;  %3762 = vst.msk [vmem:[#allocation3 + $0x148] sm:$0xff] %vm682_vm2, %v3688_v30  ;;  %v4028_v16 = vpop.permute.xlu0 %4027 }
 0x4c6   :  { %v9783_v18 = vsel %vm1621_vm5, %v9386_v5, %v4028_v16 }
 0x4c8   :  { %v4030_v37 = vpop.permute.xlu1 %4029 }
 0x4c9   :  { %v4062_v38 = vsel %vm1621_vm5, %v4028_v16, %v4030_v37  ;;  %v9786_v25 = vpop.permute.xlu0 %4573 }
 0x4ca   :  { %4110 = vst.msk [vmem:[#allocation3 + $0x2c8] sm:$0xff] %vm682_vm2, %v4062_v38  ;;  %v4602_v39 = vsel %vm2168_vm12, %v9411_v2, %v9786_v25  ;;  %v10346_v38 = vld [vmem:[#allocation15_spill] sm:$0xff] }
 0x4cc   :  { %v9792_v8 = vpop.permute.xlu1 %4749 }
 0x4cd   :  { %v4771_v63 = vsel %vm2333_vm11, %v9596_v3, %v9792_v8  ;;  %v9797_v52 = vpop.permute.xlu0 %4409 }
 0x4ce   :  { %v4438_v5 = vsel %vm2003_vm6, %v9426_v13, %v9797_v52  ;;  %5352 = vmatprep.subr.mxu0 %v4771_v63  ;;  %v10341_v13 = vld [vmem:[#allocation50_spill] sm:$0xff] }
 0x4cf   :  { %5353 = vmatpush1.msra.mxu0 %v9607_v20 }
 0x4d0   :  { %v9803_v17 = vpop.permute.xlu1 %4585  ;;  %5354 = vmatprep.subr.mxu0 %v4766_v60  ;;  %v10342_v60 = vld [vmem:[#allocation43_spill] sm:$0xff] }
 0x4d1   :  { %v4607_v2 = vsel %vm2168_vm12, %v9619_v34, %v9803_v17  ;;  %v4042_v59 = vpop.permute.xlu0 %4041  ;;  %5355 = vmatpush1.msra.mxu0 %v9501_v21 }
 0x4d2   :  { %v4067_v3 = vsel %vm1621_vm5, %v9508_v35, %v4042_v59  ;;  %5271 = vmatprep.subr.mxu1 %v4607_v2  ;;  %5356 = vmatprep.subr.mxu0 %v9697_v58  ;;  %v6444_v2 = vld [vmem:[%s10039_s7 + $0x8] sm:$0xff] }
 0x4d3   :  { %5272 = vmatpush2.msra.mxu1 %v9635_v10  ;;  %5357 = vmatpush1.msra.mxu0 %v10341_v13  ;;  %v4910_v13 = vld [vmem:[#allocation3 + $0x268] sm:$0xff] }
 0x4d4   :  { %v9814_v20 = vpop.permute.xlu1 %4421  ;;  %5273 = vmatprep.subr.mxu1 %v4602_v39  ;;  %5358 = vmatprep.subr.mxu0 %v9580_v31  ;;  %v10343_v31 = vld [vmem:[#allocation22_spill] sm:$0xff] }
 0x4d5   :  { %v4443_v21 = vsel %vm2003_vm6, %v9652_v43, %v9814_v20  ;;  %v3864_v34 = vpop.permute.xlu0 %3863  ;;  %5274 = vmatpush2.msra.mxu1 %v10342_v60  ;;  %5359 = vmatpush1.msra.mxu0 %v5027_v45  ;;  %v5003_v43 = vld [vmem:[#allocation3 + $0x550] sm:$0xff] }
 0x4d6   :  { %v3884_v35 = vsel %vm1440_vm8, %v9524_v51, %v3864_v34  ;;  %3932 = vst.msk [vmem:[#allocation3 + $0x238] sm:$0xff] %vm682_vm2, %v3864_v34  ;;  %5275 = vmatprep.subr.mxu1 %v9731_v40  ;;  %6076 = vmatmul.mubr.msk.f32.vlgmr.msra.gmra.mxu0 %vm2654_vm13, %v9544_v32 }
 0x4d7   :  { %5276 = vmatpush2.msra.mxu1 %v10343_v31  ;;  %5398 = vmatprep.mubr.f32.mxu0 %v9654_v1 }
 0x4d8   :  { %v4044_v10 = vpop.permute.xlu1 %4043  ;;  %5277 = vmatprep.subr.mxu1 %v9736_v56 }
 0x4d9   :  { %v4068_v58 = vsel %vm1621_vm5, %v4042_v59, %v4044_v10  ;;  %v3700_v61 = vpop.permute.xlu0 %3699  ;;  %5278 = vmatpush2.msra.mxu1 %v5003_v43  ;;  %v10347_v59 = vld [vmem:[#allocation49_spill] sm:$0xff] }
 0x4da   :  { %4116 = vst.msk [vmem:[#allocation3 + $0x2f8] sm:$0xff] %vm682_vm2, %v4068_v58  ;;  %v9834_v51 = vsel %vm1275_vm9, %v9538_v55, %v3700_v61  ;;  %3768 = vst.msk [vmem:[#allocation3 + $0x178] sm:$0xff] %vm682_vm2, %v3700_v61  ;;  %5279 = vmatprep.subr.mxu1 %v4443_v21  ;;  %6077 = vmatmul.mubr.msk.f32.gmra.mxu0 %vm2654_vm13, %v9643_v22  ;;  %v10348_v21 = vld [vmem:[#allocation46_spill] sm:$0xff] }
 0x4db   :  { %5280 = vmatpush2.msra.mxu1 %v9666_v0  ;;  %5404 = vmatprep.mubr.f32.mxu0 %v9654_v1  ;;  %v4892_v58 = vld [vmem:[#allocation3 + $0x1d8] sm:$0xff] }
 0x4dc   :  { %v3524_v40 = vpop.permute.xlu1 %3523  ;;  %5281 = vmatprep.subr.mxu1 %v4438_v5  ;;  %v4916_v5 = vld [vmem:[#allocation3 + $0x298] sm:$0xff] }
 0x4dd   :  { %v9843_v56 = vsel %vm1110_vm10, %v9510_v62, %v3524_v40  ;;  %3598 = vst.msk [vmem:[#allocation3 + $0x88] sm:$0xff] %vm682_vm2, %v3524_v40  ;;  %v3536_v55 = vpop.permute.xlu0 %3535  ;;  %5282 = vmatpush2.msra.mxu1 %v10344_v54  ;;  %v4904_v60 = vld [vmem:[#allocation3 + $0x238] sm:$0xff] }
 0x4de   :  { %v9849_v46 = vsel %vm1110_vm10, %v9557_v48, %v3536_v55  ;;  %3604 = vst.msk [vmem:[#allocation3 + $0xb8] sm:$0xff] %vm682_vm2, %v3536_v55  ;;  %6078 = vmatmul.mubr.msk.f32.gmra.mxu0 %vm2654_vm13, %v9676_v36  ;;  %v4922_v48 = vld [vmem:[#allocation3 + $0x2c8] sm:$0xff] }
 0x4df   :  { %5410 = vmatprep.mubr.f32.mxu0 %v9654_v1  ;;  %v10349_v55 = vld [vmem:[#allocation16_spill] sm:$0xff] }
 0x4e0   :  { %v9855_v0 = vpop.permute.xlu1 %4397 }
 0x4e1   :  { %v4396_v62 = vpop.permute.xlu0 %4395  ;;  %v4928_v15 = vld [vmem:[#allocation3 + $0x2f8] sm:$0xff] }
 0x4e2   :  { %v4432_v30 = vsel %vm2003_vm6, %v10345_v50, %v4396_v62  ;;  %v4433_v16 = vsel %vm2003_vm6, %v4396_v62, %v9855_v0  ;;  %5417 = vmatprep.subr.mxu0 %v4928_v15  ;;  %6079 = vmatmul.mubr.msk.f32.gmra.mxu0 %vm2654_vm13, %v9713_v14 }
 0x4e3   :  { %5418 = vmatpush1.msra.mxu0 %v4067_v3  ;;  %5283 = vmatprep.subr.mxu1 %v4433_v16  ;;  %v10350_v16 = vld [vmem:[#allocation26_spill] sm:$0xff] }
 0x4e4   :  { %v4384_v37 = vpop.permute.xlu1 %4383  ;;  %5419 = vmatprep.subr.mxu0 %v4922_v48  ;;  %5284 = vmatpush2.msra.mxu1 %v4432_v30 }
 0x4e5   :  { %v4427_v39 = vsel %vm2003_vm6, %v10346_v38, %v4384_v37  ;;  %v3512_v63 = vpop.permute.xlu0 %3511  ;;  %5420 = vmatpush1.msra.mxu0 %v9783_v18  ;;  %5481 = vmatprep.mubr.f32.mxu0 %v6444_v2 }
 0x4e6   :  { %v9871_v3 = vsel %vm1110_vm10, %v10347_v59, %v3512_v63  ;;  %3592 = vst.msk [vmem:[#allocation3 + $0x58] sm:$0xff] %vm682_vm2, %v3512_v63  ;;  %5421 = vmatprep.subr.mxu0 %v4916_v5  ;;  %v10351_v5 = vld [vmem:[#allocation54_spill] sm:$0xff] }
 0x4e7   :  { %5422 = vmatpush1.msra.mxu0 %v9749_v19  ;;  %v4898_v19 = vld [vmem:[#allocation3 + $0x208] sm:$0xff] }
 0x4e8   :  { %v3500_v45 = vpop.permute.xlu1 %3499  ;;  %5423 = vmatprep.subr.mxu0 %v4910_v13 }
 0x4e9   :  { %v9877_v18 = vsel %vm1110_vm10, %v10348_v21, %v3500_v45  ;;  %3586 = vst.msk [vmem:[#allocation3 + $0x28] sm:$0xff] %vm682_vm2, %v3500_v45  ;;  %v9880_v34 = vpop.permute.xlu0 %4385  ;;  %5424 = vmatpush1.msra.mxu0 %v9701_v57 }
 0x4ea   :  { %v4428_v31 = vsel %vm2003_vm6, %v4384_v37, %v9880_v34  ;;  %5425 = vmatprep.subr.mxu0 %v4904_v60 }
 0x4eb   :  { %5426 = vmatpush1.msra.mxu0 %v3884_v35  ;;  %5285 = vmatprep.subr.mxu1 %v4428_v31  ;;  %v4886_v35 = vld [vmem:[#allocation3 + $0x1a8] sm:$0xff] }
 0x4ec   :  { %v9885_v10 = vpop.permute.xlu1 %4257  ;;  %5427 = vmatprep.subr.mxu0 %v4898_v19  ;;  %5286 = vmatpush2.msra.mxu1 %v4427_v39  ;;  %v4856_v39 = vld [vmem:[#allocation3 + $0xb8] sm:$0xff]  ;;  %v6445_v19 = vld [vmem:[#allocation3 + $0x3a8] sm:$0xff] }
 0x4ed   :  { %v4256_v43 = vpop.permute.xlu0 %4255  ;;  %5428 = vmatpush1.msra.mxu0 %v9768_v29  ;;  %v4880_v29 = vld [vmem:[#allocation3 + $0x178] sm:$0xff] }
 0x4ee   :  { %v4278_v61 = vsel %vm1838_vm7, %v9474_v53, %v4256_v43  ;;  %v4279_v57 = vsel %vm1838_vm7, %v4256_v43, %v9885_v10  ;;  %5429 = vmatprep.subr.mxu0 %v4892_v58  ;;  %v6447_v58 = vld [vmem:[#allocation3 + $0x378] sm:$0xff] }
 0x4ef   :  { %5430 = vmatpush1.msra.mxu0 %v9763_v23  ;;  %5287 = vmatprep.subr.mxu1 %v4279_v57  ;;  %v4874_v23 = vld [vmem:[#allocation3 + $0x148] sm:$0xff] }
 0x4f0   :  { %v4244_v40 = vpop.permute.xlu1 %4243  ;;  %5431 = vmatprep.subr.mxu0 %v4886_v35  ;;  %5288 = vmatpush2.msra.mxu1 %v4278_v61  ;;  %v6448_v61 = vld [vmem:[#allocation3 + $0x370] sm:$0xff] }
 0x4f1   :  { %v4273_v54 = vsel %vm1838_vm7, %v10349_v55, %v4244_v40  ;;  %v9895_v62 = vpop.permute.xlu0 %4245  ;;  %5432 = vmatpush1.msra.mxu0 %v9601_v47  ;;  %v4868_v47 = vld [vmem:[#allocation3 + $0x118] sm:$0xff] }
 0x4f2   :  { %v4274_v53 = vsel %vm1838_vm7, %v4244_v40, %v9895_v62  ;;  %5433 = vmatprep.subr.mxu0 %v4880_v29  ;;  %v6449_v40 = vld [vmem:[#allocation3 + $0x348] sm:$0xff] }
 0x4f3   :  { %5434 = vmatpush1.msra.mxu0 %v9834_v51  ;;  %5289 = vmatprep.subr.mxu1 %v4274_v53  ;;  %v4862_v51 = vld [vmem:[#allocation3 + $0xe8] sm:$0xff]  ;;  %v6451_v53 = vld [vmem:[#allocation3 + $0x318] sm:$0xff] }
 0x4f4   :  { %v4576_v15 = vpop.permute.xlu1 %4575  ;;  %5435 = vmatprep.subr.mxu0 %v4874_v23  ;;  %5290 = vmatpush2.msra.mxu1 %v4273_v54  ;;  %v6450_v54 = vld [vmem:[#allocation3 + $0x340] sm:$0xff]  ;;  %v6452_v23 = vld [vmem:[#allocation3 + $0x310] sm:$0xff] }
 0x4f5   :  { %v9903_v50 = vsel %vm2168_vm12, %v9786_v25, %v4576_v15  ;;  %4650 = vst.msk [vmem:[#allocation3 + $0x5c8] sm:$0xff] %vm682_vm2, %v4576_v15  ;;  %v4232_v30 = vpop.permute.xlu0 %4231  ;;  %5436 = vmatpush1.msra.mxu0 %v9778_v49 }
 0x4f6   :  { %v4268_v48 = vsel %vm1838_vm7, %v10350_v16, %v4232_v30  ;;  %5437 = vmatprep.subr.mxu0 %v4868_v47 }
 0x4f7   :  { %5438 = vmatpush1.msra.mxu0 %v9773_v9  ;;  %v4850_v9 = vld [vmem:[#allocation3 + $0x88] sm:$0xff] }
 0x4f8   :  { %v9910_v37 = vpop.permute.xlu1 %4233  ;;  %5439 = vmatprep.subr.mxu0 %v4862_v51 }
 0x4f9   :  { %v4269_v25 = vsel %vm1838_vm7, %v4232_v30, %v9910_v37  ;;  %v4564_v38 = vpop.permute.xlu0 %4563  ;;  %5440 = vmatpush1.msra.mxu0 %v9629_v26  ;;  %v4844_v26 = vld [vmem:[#allocation3 + $0x58] sm:$0xff] }
 0x4fa   :  { %v4598_v49 = vsel %vm2168_vm12, %v9722_v27, %v4564_v38  ;;  %4644 = vst.msk [vmem:[#allocation3 + $0x598] sm:$0xff] %vm682_vm2, %v4564_v38  ;;  %5441 = vmatprep.subr.mxu0 %v4856_v39  ;;  %5291 = vmatprep.subr.mxu1 %v4269_v25 }
 0x4fb   :  { %5442 = vmatpush1.msra.mxu0 %v9849_v46  ;;  %5292 = vmatpush2.msra.mxu1 %v4268_v48  ;;  %v4838_v46 = vld [vmem:[#allocation3 + $0x28] sm:$0xff] }
 0x4fc   :  { %v4220_v63 = vpop.permute.xlu1 %4219  ;;  %5443 = vmatprep.subr.mxu0 %v4850_v9  ;;  %v5018_v43 = vld [vmem:[#allocation3 + $0x5c8] sm:$0xff] }
 0x4fd   :  { %v4263_v2 = vsel %vm1838_vm7, %v10351_v5, %v4220_v63  ;;  %v4588_v59 = vpop.permute.xlu0 %4587  ;;  %5444 = vmatpush1.msra.mxu0 %v9843_v56 }
 0x4fe   :  { %v4608_v27 = vsel %vm2168_vm12, %v9803_v17, %v4588_v59  ;;  %4656 = vst.msk [vmem:[#allocation3 + $0x5f8] sm:$0xff] %vm682_vm2, %v4588_v59  ;;  %5445 = vmatprep.subr.mxu0 %v4844_v26 }
 0x4ff   :  { %5446 = vmatpush1.msra.mxu0 %v9871_v3 }
 0x500   :  { %v4552_v13 = vpop.permute.xlu1 %4551  ;;  %5447 = vmatprep.subr.mxu0 %v4838_v46  ;;  %v6453_v46 = vld [vmem:[#allocation3 + $0x3b0] sm:$0xff] }
 0x501   :  { %v4593_v45 = vsel %vm2168_vm12, %v9724_v12, %v4552_v13  ;;  %4638 = vst.msk [vmem:[#allocation3 + $0x568] sm:$0xff] %vm682_vm2, %v4552_v13  ;;  %v4222_v21 = vpop.permute.xlu0 %4221  ;;  %5448 = vmatpush1.msra.mxu0 %v9877_v18  ;;  %v6446_v18 = vld [vmem:[#allocation3 + $0x3a0] sm:$0xff]  ;;  %v4946_v13 = vld [vmem:[#allocation3 + $0x388] sm:$0xff] }
 0x502   :  { %v4264_v56 = vsel %vm1838_vm7, %v4220_v63, %v4222_v21 }
 0x503   :  { %5293 = vmatprep.subr.mxu1 %v4264_v56 }
 0x504   :  { %v4412_v17 = vpop.permute.xlu1 %4411  ;;  %5294 = vmatpush2.msra.mxu1 %v4263_v2 }
 0x505   :  { %v4439_v60 = vsel %vm2003_vm6, %v9797_v52, %v4412_v17  ;;  %4486 = vst.msk [vmem:[#allocation3 + $0x508] sm:$0xff] %vm682_vm2, %v4412_v17  ;;  %v4424_v3 = vpop.permute.xlu0 %4423  ;;  %v5024_v31 = vld [vmem:[#allocation3 + $0x5f8] sm:$0xff]  ;;  %5295 = vmatprep.subr.mxu1 %v6445_v19  ;;  %v6455_v17 = vld [vmem:[#allocation3 + $0x350] sm:$0xff] }
 0x506   :  { %v4444_v12 = vsel %vm2003_vm6, %v9814_v20, %v4424_v3  ;;  %4492 = vst.msk [vmem:[#allocation3 + $0x538] sm:$0xff] %vm682_vm2, %v4424_v3  ;;  %5449 = vmatprep.subr.mxu0 %v5024_v31  ;;  %5296 = vmatpush2.msra.mxu1 %v6446_v18  ;;  %v5012_v20 = vld [vmem:[#allocation3 + $0x598] sm:$0xff]  ;;  %v6456_v31 = vld [vmem:[#allocation3 + $0x320] sm:$0xff] }
 0x507   :  { %5450 = vmatpush2.msra.mxu0 %v4608_v27  ;;  %5297 = vmatprep.subr.mxu1 %v6447_v58 }
 0x508   :  { %5451 = vmatprep.subr.mxu0 %v5018_v43  ;;  %v4388_v52 = vpop.permute.xlu1 %4387  ;;  %5298 = vmatpush2.msra.mxu1 %v6448_v61  ;;  %v5006_v29 = vld [vmem:[#allocation3 + $0x568] sm:$0xff] }
 0x509   :  { %v4429_v57 = vsel %vm2003_vm6, %v9880_v34, %v4388_v52  ;;  %4474 = vst.msk [vmem:[#allocation3 + $0x4a8] sm:$0xff] %vm682_vm2, %v4388_v52  ;;  %v4400_v35 = vpop.permute.xlu0 %4399  ;;  %5452 = vmatpush2.msra.mxu0 %v9903_v50  ;;  %5299 = vmatprep.subr.mxu1 %v6449_v40 }
 0x50a   :  { %v4434_v55 = vsel %vm2003_vm6, %v9855_v0, %v4400_v35  ;;  %4480 = vst.msk [vmem:[#allocation3 + $0x4d8] sm:$0xff] %vm682_vm2, %v4400_v35  ;;  %5453 = vmatprep.subr.mxu0 %v5012_v20  ;;  %5300 = vmatpush2.msra.mxu1 %v6450_v54  ;;  %v5614_v20 = vld [vmem:[#allocation4 + $0x98] sm:$0xff] }
 0x50b   :  { %5454 = vmatpush2.msra.mxu0 %v4598_v49  ;;  %5301 = vmatprep.subr.mxu1 %v6451_v53  ;;  %v5608_v53 = vld [vmem:[#allocation4 + $0x68] sm:$0xff] }
 0x50c   :  { %5455 = vmatprep.subr.mxu0 %v5006_v29  ;;  %v4248_v34 = vpop.permute.xlu1 %4247  ;;  %5302 = vmatpush2.msra.mxu1 %v6452_v23  ;;  %v4994_v47 = vld [vmem:[#allocation3 + $0x508] sm:$0xff] }
 0x50d   :  { %v4275_v15 = vsel %vm1838_vm7, %v9895_v62, %v4248_v34  ;;  %4322 = vst.msk [vmem:[#allocation3 + $0x448] sm:$0xff] %vm682_vm2, %v4248_v34  ;;  %v4260_v50 = vpop.permute.xlu0 %4259  ;;  %5456 = vmatpush2.msra.mxu0 %v4593_v45  ;;  %v5000_v0 = vld [vmem:[#allocation3 + $0x538] sm:$0xff]  ;;  %5304 = vmatmul.mubr.f32.vlgmr.msra.gmra.mxu1 %v9617_v4 }
 0x50e   :  { %v4280_v30 = vsel %vm1838_vm7, %v9885_v10, %v4260_v50  ;;  %4328 = vst.msk [vmem:[#allocation3 + $0x478] sm:$0xff] %vm682_vm2, %v4260_v50  ;;  %5457 = vmatprep.subr.mxu0 %v5000_v0  ;;  %5309 = vmatprep.mubr.f32.mxu1 %v9625_v42 }
 0x50f   :  { %5458 = vmatpush2.msra.mxu0 %v4444_v12 }
 0x510   :  { %5459 = vmatprep.subr.mxu0 %v4994_v47  ;;  %v4224_v16 = vpop.permute.xlu1 %4223  ;;  %v4982_v25 = vld [vmem:[#allocation3 + $0x4a8] sm:$0xff] }
 0x511   :  { %v4265_v62 = vsel %vm1838_vm7, %v4222_v21, %v4224_v16  ;;  %4310 = vst.msk [vmem:[#allocation3 + $0x3e8] sm:$0xff] %vm682_vm2, %v4224_v16  ;;  %v4236_v48 = vpop.permute.xlu0 %4235  ;;  %5460 = vmatpush2.msra.mxu0 %v4439_v60  ;;  %v4988_v51 = vld [vmem:[#allocation3 + $0x4d8] sm:$0xff]  ;;  %5310 = vmatmul.mubr.f32.gmra.mxu1 %v9650_v28  ;;  %v4934_v60 = vld [vmem:[#allocation3 + $0x328] sm:$0xff]  ;;  %v5601_v16 = vld [vmem:[#allocation4 + $0x30] sm:$0xff] }
 0x512   :  { %v4270_v10 = vsel %vm1838_vm7, %v9910_v37, %v4236_v48  ;;  %4316 = vst.msk [vmem:[#allocation3 + $0x418] sm:$0xff] %vm682_vm2, %v4236_v48  ;;  %5461 = vmatprep.subr.mxu0 %v4988_v51  ;;  %5315 = vmatprep.mubr.f32.mxu1 %v9661_v41  ;;  %v4940_v21 = vld [vmem:[#allocation3 + $0x358] sm:$0xff]  ;;  %v5596_v48 = vld [vmem:[#allocation4 + $0x8] sm:$0xff] }
 0x513   :  { %5462 = vmatpush2.msra.mxu0 %v4434_v55  ;;  %v5613_v55 = vld [vmem:[#allocation4 + $0x90] sm:$0xff] }
 0x514   :  { %5463 = vmatprep.subr.mxu0 %v4982_v25  ;;  %v4740_v38 = vpop.permute.xlu1 %4739  ;;  %v4970_v63 = vld [vmem:[#allocation3 + $0x448] sm:$0xff] }
 0x515   :  { %v4767_v39 = vsel %vm2333_vm11, %v9756_v33, %v4740_v38  ;;  %4814 = vst.msk [vmem:[#allocation3 + $0x688] sm:$0xff] %vm682_vm2, %v4740_v38  ;;  %v4752_v49 = vpop.permute.xlu0 %4751  ;;  %5464 = vmatpush2.msra.mxu0 %v4429_v57  ;;  %v4976_v9 = vld [vmem:[#allocation3 + $0x478] sm:$0xff]  ;;  %5316 = vmatmul.mubr.f32.gmra.mxu1 %v9683_v24 }
 0x516   :  { %v4772_v37 = vsel %vm2333_vm11, %v9792_v8, %v4752_v49  ;;  %4820 = vst.msk [vmem:[#allocation3 + $0x6b8] sm:$0xff] %vm682_vm2, %v4752_v49  ;;  %5465 = vmatprep.subr.mxu0 %v4976_v9  ;;  %5321 = vmatprep.mubr.f32.mxu1 %v9692_v44  ;;  %v10006_v49 = vld [vmem:[%s10040_s8 + $0x8] sm:$0x1] }
 0x517   :  { %5466 = vmatpush2.msra.mxu0 %v4280_v30  ;;  %v5602_v30 = vld [vmem:[#allocation4 + $0x38] sm:$0xff] }
 0x518   :  { %5467 = vmatprep.subr.mxu0 %v4970_v63  ;;  %v4716_v5 = vpop.permute.xlu1 %4715  ;;  %v4958_v26 = vld [vmem:[#allocation3 + $0x3e8] sm:$0xff] }
 0x519   :  { %v4757_v33 = vsel %vm2333_vm11, %v9574_v6, %v4716_v5  ;;  %4802 = vst.msk [vmem:[#allocation3 + $0x628] sm:$0xff] %vm682_vm2, %v4716_v5  ;;  %v4728_v2 = vpop.permute.xlu0 %4727  ;;  %5468 = vmatpush2.msra.mxu0 %v4275_v15  ;;  %v4964_v59 = vld [vmem:[#allocation3 + $0x418] sm:$0xff]  ;;  %5322 = vmatmul.mubr.f32.gmra.mxu1 %v9720_v7  ;;  %v5607_v15 = vld [vmem:[#allocation4 + $0x60] sm:$0xff] }
 0x51a   :  { %v4762_v8 = vsel %vm2333_vm11, %v9685_v11, %v4728_v2  ;;  %4808 = vst.msk [vmem:[#allocation3 + $0x658] sm:$0xff] %vm682_vm2, %v4728_v2  ;;  %5469 = vmatprep.subr.mxu0 %v4964_v59  ;;  %5570 = vmatprep.mubr.f32.mxu1 %v9654_v1  ;;  %v4952_v6 = vld [vmem:[#allocation3 + $0x3b8] sm:$0xff]  ;;  %v6454_v11 = vld [vmem:[#allocation3 + $0x380] sm:$0xff] }
 0x51b   :  { %5470 = vmatpush2.msra.mxu0 %v4270_v10  ;;  %v5595_v10 = vld [vmem:[#allocation4] sm:$0xff] }
 0x51c   :  { %5471 = vmatprep.subr.mxu0 %v4958_v26  ;;  %v5042_v45 = vld [vmem:[#allocation3 + $0x688] sm:$0xff] }
 0x51d   :  { %5472 = vmatpush2.msra.mxu0 %v4265_v62  ;;  %v5048_v27 = vld [vmem:[#allocation3 + $0x6b8] sm:$0xff] }
 0x51e   :  { %5473 = vmatprep.subr.mxu0 %v4952_v6  ;;  %5530 = vmatprep.subr.mxu1 %v5048_v27 }
 0x51f   :  { %5474 = vmatpush2.msra.mxu0 %v6453_v46  ;;  %5531 = vmatpush1.msra.mxu1 %v4772_v37 }
 0x520   :  { %5475 = vmatprep.subr.mxu0 %v4946_v13  ;;  %5532 = vmatprep.subr.mxu1 %v5042_v45  ;;  %v5030_v3 = vld [vmem:[#allocation3 + $0x628] sm:$0xff] }
 0x521   :  { %5476 = vmatpush2.msra.mxu0 %v6454_v11  ;;  %5533 = vmatpush1.msra.mxu1 %v4767_v39  ;;  %v5036_v56 = vld [vmem:[#allocation3 + $0x658] sm:$0xff]  ;;  %v9998_v39 = vld [vmem:[%s10040_s8] sm:$0xff]  ;;  %s6490_s8 = smov 2  }
 0x522   :  { %5477 = vmatprep.subr.mxu0 %v4940_v21  ;;  %5534 = vmatprep.subr.mxu1 %v5036_v56 }
 0x523   :  { %5478 = vmatpush2.msra.mxu0 %v6455_v17  ;;  %5535 = vmatpush1.msra.mxu1 %v4762_v8 }
 0x524   :  { %5479 = vmatprep.subr.mxu0 %v4934_v60  ;;  %5536 = vmatprep.subr.mxu1 %v5030_v3  ;;  %v5616_v3 = vld [vmem:[#allocation4 + $0xa8] sm:$0xff] }
 0x525   :  { %5480 = vmatpush2.msra.mxu0 %v6456_v31  ;;  %5537 = vmatpush1.msra.mxu1 %v4757_v33 }
 0x526   :  { %5482 = vmatmul.mubr.f32.vlgmr.msra.gmra.mxu0 %v9617_v4  ;;  %6080 = vmatmul.mubr.msk.f32.vlgmr.msra.gmra.mxu1 %vm2654_vm13, %v9544_v32 }
 0x527   :  { %5487 = vmatprep.mubr.f32.mxu0 %v9625_v42  ;;  %5576 = vmatprep.mubr.f32.mxu1 %v9654_v1 }
 0x52a   :  { %5488 = vmatmul.mubr.f32.gmra.mxu0 %v9650_v28  ;;  %6081 = vmatmul.mubr.msk.f32.gmra.mxu1 %vm2654_vm13, %v9643_v22 }
 0x52b   :  { %5493 = vmatprep.mubr.f32.mxu0 %v9661_v41  ;;  %5582 = vmatprep.mubr.f32.mxu1 %v9654_v1 }
 0x52e   :  { %5494 = vmatmul.mubr.f32.gmra.mxu0 %v9683_v24  ;;  %6082 = vmatmul.mubr.msk.f32.gmra.mxu1 %vm2654_vm13, %v9676_v36 }
 0x52f   :  { %5499 = vmatprep.mubr.f32.mxu0 %v9692_v44  ;;  %5588 = vmatprep.mubr.f32.mxu1 %v9654_v1 }
 0x532   :  { %5500 = vmatmul.mubr.f32.gmra.mxu0 %v9720_v7  ;;  %6083 = vmatmul.mubr.msk.f32.gmra.mxu1 %vm2654_vm13, %v9713_v14 }
 0x533   :  { %5715 = vmatprep.mubr.f32.mxu1 %v9654_v1  ;;  %5869 = vmatprep.mubr.f32.mxu0 %v9654_v1 }
 0x55b   :  { %v5216_v32 = vpop.f32.mrf.mxu1 }
 0x55d   :  { %v5218_v4 = vpop.f32.mrf.mxu1 }
 0x56a   :  { %v5127_v42 = vpop.f32.mrf.mxu0 }
 0x56b   :  { %v5217_v0 = vadd.f32 %v5216_v32, %v5127_v42  ;;  %v5615_v32 = vld [vmem:[#allocation4 + $0xa0] sm:$0xff] }
 0x56c   :  { %v5129_v22 = vpop.f32.mrf.mxu0 }
 0x56d   :  { %v5222_v28 = vpop.f32.mrf.mxu1  ;;  %v5219_v23 = vadd.f32 %v5218_v4, %v5129_v22  ;;  %v5619_v38 = vmul.f32 %v5595_v10, %v5217_v0  ;;  %v5610_v22 = vld [vmem:[#allocation4 + $0x78] sm:$0xff] }
 0x56e   :  { %v5133_v41 = vpop.f32.mrf.mxu0 }
 0x56f   :  { %v5224_v36 = vpop.f32.mrf.mxu1  ;;  %v5223_v29 = vadd.f32 %v5222_v28, %v5133_v41  ;;  %v5620_v25 = vmul.f32 %v5596_v48, %v5219_v23 }
 0x570   :  { %v5135_v24 = vpop.f32.mrf.mxu0 }
 0x571   :  { %v5228_v44 = vpop.f32.mrf.mxu1  ;;  %v5225_v40 = vadd.f32 %v5224_v36, %v5135_v24  ;;  %v5625_v51 = vmul.f32 %v5601_v16, %v5223_v29  ;;  %v5609_v36 = vld [vmem:[#allocation4 + $0x70] sm:$0xff] }
 0x572   :  { %v5139_v19 = vpop.f32.mrf.mxu0 }
 0x573   :  { %v5230_v12 = vpop.f32.mrf.mxu1  ;;  %v5229_v35 = vadd.f32 %v5228_v44, %v5139_v19  ;;  %v5626_v62 = vmul.f32 %v5602_v30, %v5225_v40  ;;  %v5604_v19 = vld [vmem:[#allocation4 + $0x48] sm:$0xff] }
 0x574   :  { %v5141_v18 = vpop.f32.mrf.mxu0 }
 0x575   :  { %v5234_v7 = vpop.f32.mrf.mxu1  ;;  %v5231_v61 = vadd.f32 %v5230_v12, %v5141_v18  ;;  %v5631_v47 = vmul.f32 %v5607_v15, %v5229_v35  ;;  %v5603_v18 = vld [vmem:[#allocation4 + $0x40] sm:$0xff] }
 0x576   :  { %v5145_v43 = vpop.f32.mrf.mxu0 }
 0x577   :  { %v5236_v58 = vpop.f32.mrf.mxu1  ;;  %v5235_v14 = vadd.f32 %v5234_v7, %v5145_v43  ;;  %v5632_v50 = vmul.f32 %v5608_v53, %v5231_v61  ;;  %v5598_v43 = vld [vmem:[#allocation4 + $0x18] sm:$0xff] }
 0x578   :  { %v5147_v52 = vpop.f32.mrf.mxu0 }
 0x579   :  { %v5237_v57 = vadd.f32 %v5236_v58, %v5147_v52  ;;  %v5637_v34 = vmul.f32 %v5613_v55, %v5235_v14  ;;  %v5597_v14 = vld [vmem:[#allocation4 + $0x10] sm:$0xff]  ;;  %v6457_v55 = vld [vmem:[#allocation2] sm:$0xff] }
 0x57b   :  { %v5638_v54 = vmul.f32 %v5614_v20, %v5237_v57 }
 0x57d   :  { %5675 = vmatprep.subr.mxu1 %v5638_v54 }
 0x57e   :  { %5676 = vmatpush1.msra.mxu1 %v5637_v34 }
 0x57f   :  { %5677 = vmatprep.subr.mxu1 %v5632_v50 }
 0x580   :  { %5678 = vmatpush1.msra.mxu1 %v5631_v47 }
 0x581   :  { %5679 = vmatprep.subr.mxu1 %v5626_v62 }
 0x582   :  { %5680 = vmatpush1.msra.mxu1 %v5625_v51 }
 0x583   :  { %5681 = vmatprep.subr.mxu1 %v5620_v25 }
 0x584   :  { %5682 = vmatpush1.msra.mxu1 %v5619_v38  ;;  %v5618_v38 = vld [vmem:[#allocation4 + $0xb8] sm:$0xff] }
 0x585   :  { %6084 = vmatmul.mubr.msk.f32.vlgmr.msra.gmra.mxu1 %vm2654_vm13, %v9998_v39 }
 0x586   :  { %5721 = vmatprep.mubr.f32.mxu1 %v9654_v1 }
 0x589   :  { %6085 = vmatmul.mubr.msk.f32.gmra.mxu1 %vm2654_vm13, %v10006_v49 }
 0x58a   :  { %5792 = vmatprep.mubr.f32.mxu1 %v9654_v1 }
 0x596   :  { %v5394_v9 = vpop.f32.mrf.mxu0 }
 0x598   :  { %v5396_v37 = vpop.f32.mrf.mxu0 }
 0x59a   :  { %v5400_v63 = vpop.f32.mrf.mxu0 }
 0x59c   :  { %v5402_v5 = vpop.f32.mrf.mxu0 }
 0x59e   :  { %v5406_v2 = vpop.f32.mrf.mxu0 }
 0x5a0   :  { %v5408_v26 = vpop.f32.mrf.mxu0 }
 0x5a2   :  { %v5412_v46 = vpop.f32.mrf.mxu0 }
 0x5a4   :  { %v5414_v11 = vpop.f32.mrf.mxu0 }
 0x5cd   :  { %v5305_v33 = vpop.f32.mrf.mxu1 }
 0x5ce   :  { %v5395_v44 = vadd.f32 %v5394_v9, %v5305_v33  ;;  %v5612_v33 = vld [vmem:[#allocation4 + $0x88] sm:$0xff] }
 0x5cf   :  { %v5307_v59 = vpop.f32.mrf.mxu1 }
 0x5d0   :  { %v5397_v41 = vadd.f32 %v5396_v37, %v5307_v59  ;;  %v5621_v61 = vmul.f32 %v5597_v14, %v5395_v44  ;;  %v5617_v37 = vld [vmem:[#allocation4 + $0xb0] sm:$0xff] }
 0x5d1   :  { %v5311_v8 = vpop.f32.mrf.mxu1 }
 0x5d2   :  { %v5401_v42 = vadd.f32 %v5400_v63, %v5311_v8  ;;  %v5622_v52 = vmul.f32 %v5598_v43, %v5397_v41  ;;  %v5611_v8 = vld [vmem:[#allocation4 + $0x80] sm:$0xff] }
 0x5d3   :  { %v5313_v6 = vpop.f32.mrf.mxu1 }
 0x5d4   :  { %v5403_v31 = vadd.f32 %v5402_v5, %v5313_v6  ;;  %v5627_v58 = vmul.f32 %v5603_v18, %v5401_v42 }
 0x5d5   :  { %v5317_v27 = vpop.f32.mrf.mxu1 }
 0x5d6   :  { %v5407_v1 = vadd.f32 %v5406_v2, %v5317_v27  ;;  %v5628_v7 = vmul.f32 %v5604_v19, %v5403_v31  ;;  %v5606_v27 = vld [vmem:[#allocation4 + $0x58] sm:$0xff] }
 0x5d7   :  { %v5319_v13 = vpop.f32.mrf.mxu1 }
 0x5d8   :  { %v5409_v17 = vadd.f32 %v5408_v26, %v5319_v13  ;;  %v5633_v12 = vmul.f32 %v5609_v36, %v5407_v1  ;;  %v5605_v13 = vld [vmem:[#allocation4 + $0x50] sm:$0xff] }
 0x5d9   :  { %v5323_v45 = vpop.f32.mrf.mxu1 }
 0x5da   :  { %v5413_v21 = vadd.f32 %v5412_v46, %v5323_v45  ;;  %v5634_v24 = vmul.f32 %v5610_v22, %v5409_v17 }
 0x5db   :  { %v5325_v56 = vpop.f32.mrf.mxu1 }
 0x5dc   :  { %v5415_v60 = vadd.f32 %v5414_v11, %v5325_v56  ;;  %v5639_v28 = vmul.f32 %v5615_v32, %v5413_v21  ;;  %v5600_v11 = vld [vmem:[#allocation4 + $0x28] sm:$0xff]  ;;  %v5599_v56 = vld [vmem:[#allocation4 + $0x20] sm:$0xff] }
 0x5de   :  { %v5640_v4 = vmul.f32 %v5616_v3, %v5415_v60 }
 0x5e0   :  { %5752 = vmatprep.subr.mxu1 %v5640_v4 }
 0x5e1   :  { %5753 = vmatpush1.msra.mxu1 %v5639_v28 }
 0x5e2   :  { %5754 = vmatprep.subr.mxu1 %v5634_v24 }
 0x5e3   :  { %5755 = vmatpush1.msra.mxu1 %v5633_v12 }
 0x5e4   :  { %5756 = vmatprep.subr.mxu1 %v5628_v7 }
 0x5e5   :  { %5757 = vmatpush1.msra.mxu1 %v5627_v58 }
 0x5e6   :  { %v5483_v57 = vpop.f32.mrf.mxu0  ;;  %v5572_v35 = vpop.f32.mrf.mxu1  ;;  %5758 = vmatprep.subr.mxu1 %v5622_v52 }
 0x5e7   :  { %5759 = vmatpush1.msra.mxu1 %v5621_v61  ;;  %v5573_v6 = vadd.f32 %v5572_v35, %v5483_v57 }
 0x5e8   :  { %v5485_v20 = vpop.f32.mrf.mxu0  ;;  %v5574_v40 = vpop.f32.mrf.mxu1  ;;  %6086 = vmatmul.mubr.msk.f32.vlgmr.msra.gmra.mxu1 %vm2654_vm13, %v9998_v39 }
 0x5e9   :  { %5798 = vmatprep.mubr.f32.mxu1 %v6457_v55  ;;  %v5575_v59 = vadd.f32 %v5574_v40, %v5485_v20  ;;  %v5623_v60 = vmul.f32 %v5599_v56, %v5573_v6 }
 0x5ea   :  { %v5489_v54 = vpop.f32.mrf.mxu0  ;;  %v5578_v29 = vpop.f32.mrf.mxu1 }
 0x5eb   :  { %v5579_v5 = vadd.f32 %v5578_v29, %v5489_v54  ;;  %v5624_v17 = vmul.f32 %v5600_v11, %v5575_v59 }
 0x5ec   :  { %v5491_v53 = vpop.f32.mrf.mxu0  ;;  %v5580_v34 = vpop.f32.mrf.mxu1  ;;  %6087 = vmatmul.mubr.msk.f32.gmra.mxu1 %vm2654_vm13, %v10006_v49 }
 0x5ed   :  { %v5581_v9 = vadd.f32 %v5580_v34, %v5491_v53  ;;  %v5629_v21 = vmul.f32 %v5605_v13, %v5579_v5 }
 0x5ee   :  { %v5495_v23 = vpop.f32.mrf.mxu0  ;;  %v5584_v15 = vpop.f32.mrf.mxu1 }
 0x5ef   :  { %v5585_v25 = vadd.f32 %v5584_v15, %v5495_v23  ;;  %v5630_v45 = vmul.f32 %v5606_v27, %v5581_v9 }
 0x5f0   :  { %v5497_v50 = vpop.f32.mrf.mxu0  ;;  %v5586_v0 = vpop.f32.mrf.mxu1 }
 0x5f1   :  { %v5587_v51 = vadd.f32 %v5586_v0, %v5497_v50  ;;  %v5635_v46 = vmul.f32 %v5611_v8, %v5585_v25 }
 0x5f2   :  { %v5501_v30 = vpop.f32.mrf.mxu0  ;;  %v5590_v47 = vpop.f32.mrf.mxu1 }
 0x5f3   :  { %v5591_v16 = vadd.f32 %v5590_v47, %v5501_v30  ;;  %v5636_v26 = vmul.f32 %v5612_v33, %v5587_v51 }
 0x5f4   :  { %v5503_v62 = vpop.f32.mrf.mxu0  ;;  %v5592_v48 = vpop.f32.mrf.mxu1 }
 0x5f5   :  { %v5593_v10 = vadd.f32 %v5592_v48, %v5503_v62  ;;  %v5641_v2 = vmul.f32 %v5617_v37, %v5591_v16 }
 0x5f7   :  { %v5642_v63 = vmul.f32 %v5618_v38, %v5593_v10 }
 0x5f9   :  { %5829 = vmatprep.subr.mxu0 %v5642_v63 }
 0x5fa   :  { %5830 = vmatpush1.msra.mxu0 %v5641_v2 }
 0x5fb   :  { %5831 = vmatprep.subr.mxu0 %v5636_v26 }
 0x5fc   :  { %5832 = vmatpush1.msra.mxu0 %v5635_v46 }
 0x5fd   :  { %5833 = vmatprep.subr.mxu0 %v5630_v45 }
 0x5fe   :  { %5834 = vmatpush1.msra.mxu0 %v5629_v21 }
 0x5ff   :  { %5835 = vmatprep.subr.mxu0 %v5624_v17 }
 0x600   :  { %5836 = vmatpush1.msra.mxu0 %v5623_v60 }
 0x601   :  { %6088 = vmatmul.mubr.msk.f32.vlgmr.msra.gmra.mxu0 %vm2654_vm13, %v9998_v39 }
 0x602   :  { %5875 = vmatprep.mubr.f32.mxu0 %v6457_v55 }
 0x605   :  { %6089 = vmatmul.mubr.msk.f32.gmra.mxu0 %vm2654_vm13, %v10006_v49 }
 0x645   :  { %v5717_v1 = vpop.f32.mrf.mxu1 }
 0x646   :  { %5882 = vst [vmem:[#allocation2 + $0x8] sm:$0xff] %v5717_v1 }
 0x647   :  { %v5719_v3 = vpop.f32.mrf.mxu1 }
 0x648   :  { %5883 = vst [vmem:[#allocation2 + $0x10] sm:$0xff] %v5719_v3 }
 0x649   :  { %v5723_v31 = vpop.f32.mrf.mxu1 }
 0x64a   :  { %5888 = vst [vmem:[#allocation2 + $0x40] sm:$0x1] %v5723_v31 }
 0x64b   :  { %v5725_v32 = vpop.f32.mrf.mxu1 }
 0x64c   :  { %5889 = vst [vmem:[#allocation2 + $0x48] sm:$0x1] %v5725_v32 }
 0x6a8   :  { %v5794_v4 = vpop.f32.mrf.mxu1 }
 0x6a9   :  { %5884 = vst [vmem:[#allocation2 + $0x18] sm:$0xff] %v5794_v4 }
 0x6aa   :  { %v5796_v42 = vpop.f32.mrf.mxu1 }
 0x6ab   :  { %5885 = vst [vmem:[#allocation2 + $0x20] sm:$0xff] %v5796_v42 }
 0x6ac   :  { %v5800_v22 = vpop.f32.mrf.mxu1 }
 0x6ad   :  { %5890 = vst [vmem:[#allocation2 + $0x50] sm:$0x1] %v5800_v22 }
 0x6ae   :  { %v5802_v28 = vpop.f32.mrf.mxu1 }
 0x6af   :  { %5891 = vst [vmem:[#allocation2 + $0x58] sm:$0x1] %v5802_v28 }
 0x6b0   :  { %v5958_v40 = vld [vmem:[#allocation2 + $0x6] ss:$8 sm:$0xf]  ;;  %v5946_v55 = vld [vmem:[#allocation2 + $0x5] ss:$8 sm:$0xf] }
 0x6b1   :  { %v5970_v23 = vld [vmem:[#allocation2 + $0x7] ss:$8 sm:$0xf] }
 0x6b2   :  { %v5912_v24 = vld [vmem:[#allocation2 + $0xa] ss:$8 sm:$0xf]  ;;  %v5901_v44 = vld [vmem:[#allocation2 + $0x9] ss:$8 sm:$0xf] }
 0x6b3   :  { %v5935_v14 = vld [vmem:[#allocation2 + $0xc] ss:$8 sm:$0xf]  ;;  %v5924_v52 = vld [vmem:[#allocation2 + $0xb] ss:$8 sm:$0xf] }
 0x6b4   :  { %v5982_v15 = vld [vmem:[#allocation2 + $0x38] ss:$8 sm:$0xf] }
 0x6b5   :  { %v5896_v48 = vld [vmem:[#allocation2 + $0x8] ss:$8 sm:$0xf] }
 0x6c1   :  { %v5871_v39 = vpop.f32.mrf.mxu0 }
 0x6c2   :  { %5886 = vst [vmem:[#allocation2 + $0x28] sm:$0xff] %v5871_v39 }
 0x6c3   :  { %v5873_v41 = vpop.f32.mrf.mxu0 }
 0x6c4   :  { %5887 = vst.msk [vmem:[#allocation2 + $0x30] sm:$0xff] %vm682_vm2, %v5873_v41  ;;  %vm5919_vm2 = vcmask 15360   ;;  %v10352_v41 = vlaneseq }
 0x6c5   :  { %v5877_v49 = vpop.f32.mrf.mxu0 }
 0x6c6   :  { %5892 = vst [vmem:[#allocation2 + $0x60] sm:$0x1] %v5877_v49  ;;  %vm6001_vm4 = vcmp.lt.s32.totalorder %v10352_v41, 648 }
 0x6c7   :  { %v5879_v36 = vpop.f32.mrf.mxu0 }
 0x6c8   :  { %5894 = vst.msk [vmem:[#allocation2 + $0x68] sm:$0x1] %vm5893_vm14, %v5879_v36 }
 0x6c9   :  { %v5959_v35 = vld [vmem:[#allocation2 + $0x6] ss:$8 sm:$0x30]  ;;  %v5971_v53 = vld [vmem:[#allocation2 + $0x7] ss:$8 sm:$0x30] }
 0x6ca   :  { %v5960_v54 = vor.u32 %v5959_v35, %v5958_v40  ;;  %v5972_v50 = vor.u32 %v5971_v53, %v5970_v23 }
 0x6cb   :  { %v5913_v19 = vld [vmem:[#allocation2 + $0xa] ss:$8 sm:$0x30]  ;;  %v5902_v12 = vld [vmem:[#allocation2 + $0x9] ss:$8 sm:$0x30] }
 0x6cc   :  { %v5914_v18 = vor.u32 %v5913_v19, %v5912_v24  ;;  %v5903_v7 = vor.u32 %v5902_v12, %v5901_v44  ;;  %v5936_v43 = vld [vmem:[#allocation2 + $0xc] ss:$8 sm:$0x30]  ;;  %v5925_v58 = vld [vmem:[#allocation2 + $0xb] ss:$8 sm:$0x30] }
 0x6cd   :  { %v5937_v61 = vor.u32 %v5936_v43, %v5935_v14  ;;  %v5926_v57 = vor.u32 %v5925_v58, %v5924_v52  ;;  %v5947_v20 = vld [vmem:[#allocation2 + $0x5] ss:$8 sm:$0x70]  ;;  %v5983_v34 = vld [vmem:[#allocation2 + $0x38] ss:$8 sm:$0x30] }
 0x6ce   :  { %5916 = vrot.lane.b32.xlu1 %v5914_v18, %s6490_s8  ;;  %5905 = vrot.lane.b32.xlu0 %v5903_v7, %s6482_s3  ;;  %v5948_v29 = vor.u32 %v5947_v20, %v5946_v55  ;;  %v5984_v0 = vor.u32 %v5983_v34, %v5982_v15  ;;  %s6493_s3 = smov 37   ;;  %v5897_v30 = vld [vmem:[#allocation2 + $0x8] ss:$8 sm:$0x30] }
 0x6cf   :  { %v5898_v10 = vor.u32 %v5897_v30, %v5896_v48 }
 0x6d2   :  { %5939 = vrot.lane.b32.xlu1 %v5937_v61, %s6485_s28  ;;  %5928 = vrot.lane.b32.xlu0 %v5926_v57, %s6484_s27  ;;  %s6495_s27 = smov [#allocation5]  }
 0x6d3   :  { %s6010_s28 = sshll.u32 %s6495_s27, 4  ;;  %s6011_s28 = int_to_ptr.vmem [resolvable:$true] %s6010_s28 }
 0x6d4   :  { %s6458_s22 = scalar_lea.vmem %s6011_s28, 96  ;;  %p6463_p1 = scmp.lt.s32.totalorder %s6011_s28, %s6011_s28 }
 0x6d5   :  { %p6459_p0 = scmp.ne.s32.totalorder %s6011_s28, %s6458_s22  ;;  %p6464_p2 = scmp.lt.s32.totalorder %s6458_s22, %s6458_s22 }
 0x6d6   :  { %5962 = vrot.lane.b32.xlu1 %v5960_v54, %s6491_s11  ;;  %5950 = vrot.lane.b32.xlu0 %v5948_v29, %s6492_s20 }
 0x6d7   :  { %p6465_p3 = por %p6464_p2, %p6463_p1 }
 0x6d9   :  { %p6466_p4 = pnand %p6465_p3, %p6459_p0 }
 0x6da   :  { %5974 = vrot.lane.b32.xlu0 %v5972_v50, %s6493_s3  ;;  %5986 = vrot.lane.b32.xlu1 %v5984_v0, %s6494_s21 }
 0x740   :  { %v5917_v47 = vpop.permute.xlu1 %5916  ;;  %v5906_v16 = vpop.permute.xlu0 %5905 }
 0x741   :  { %v5918_v62 = vrot.slane %v5917_v47, 7  ;;  %v5907_v51 = vrot.slane %v5906_v16, 7 }
 0x743   :  { %v5908_v25 = vsel %vm1621_vm5, %v5907_v51, %v5906_v16  ;;  %v5920_v63 = vsel %vm5919_vm2, %v5918_v62, %v5917_v47 }
 0x744   :  { %v5910_v38 = vadd.f32 %v5908_v25, %v5898_v10  ;;  %v5940_v9 = vpop.permute.xlu1 %5939  ;;  %v5929_v37 = vpop.permute.xlu0 %5928 }
 0x745   :  { %v5941_v5 = vrot.slane %v5940_v9, 7  ;;  %v5930_v33 = vrot.slane %v5929_v37, 7 }
 0x746   :  { %v5922_v2 = vadd.f32 %v5920_v63, %v5910_v38 }
 0x747   :  { %v5931_v59 = vsel %vm1275_vm9, %v5930_v33, %v5929_v37  ;;  %v5942_v27 = vsel %vm1110_vm10, %v5941_v5, %v5940_v9 }
 0x748   :  { %v5933_v8 = vadd.f32 %v5931_v59, %v5922_v2  ;;  %v5963_v26 = vpop.permute.xlu1 %5962  ;;  %v5951_v6 = vpop.permute.xlu0 %5950 }
 0x749   :  { %v5964_v46 = vrot.slane %v5963_v26, 1  ;;  %v5952_v13 = vrot.slane %v5951_v6, 1 }
 0x74a   :  { %v5944_v45 = vadd.f32 %v5942_v27, %v5933_v8 }
 0x74b   :  { %v5954_v11 = vsel %vm5953_vm15, %v5951_v6, %v5952_v13  ;;  %v5966_v60 = vsel %vm5965_vm0, %v5963_v26, %v5964_v46 }
 0x74c   :  { %v5956_v21 = vadd.f32 %v5954_v11, %v5944_v45  ;;  %v5975_v56 = vpop.permute.xlu0 %5974  ;;  %v5987_v17 = vpop.permute.xlu1 %5986 }
 0x74d   :  { %v5976_v1 = vrot.slane %v5975_v56, 1  ;;  %v5988_v3 = vrot.slane %v5987_v17, 1 }
 0x74e   :  { %v5968_v31 = vadd.f32 %v5966_v60, %v5956_v21 }
 0x74f   :  { %v5978_v32 = vsel %vm5977_vm1, %v5975_v56, %v5976_v1  ;;  %v5990_v42 = vsel %vm5989_vm3, %v5987_v17, %v5988_v3 }
 0x750   :  { %v5980_v4 = vadd.f32 %v5978_v32, %v5968_v31 }
 0x752   :  { %v5992_v22 = vadd.f32 %v5990_v42, %v5980_v4 }
 0x754   :  { %5994 = vrot.lane.b32.xlu0 %v5992_v22, %s6486_s1 }
 0x7c6   :  { %v5995_v28 = vpop.permute.xlu0 %5994 }
 0x7c7   :  { %v5996_v39 = vrot.slane %v5995_v28, 1 }
 0x7c9   :  { %v5997_v49 = vsel %vm2333_vm11, %v5995_v28, %v5996_v39 }
 0x7ca   :  { %6003 = vst.msk [vmem:[#allocation5] sm:$0x3f] %vm6001_vm4, %v5997_v49 }
 0x7cb   :  { %6469 = shalt.err (!%p6466_p4)
}
 0x7cc   :  { %6013 = dma.vmem_to_hbm [thread:$0]  %s6011_s28, 96, %s10041_s9, [#allocation6]  }
 0x7cd   :  { %6478 = dma.done.wait [#allocation6], 96  }
 0x7ce   :  { %6479 = vsyncadd [#allocation6], 4294967200 }
 0x7cf   :  { %6017 = vsyncpa [#allocation6], 1 }

</bundles_post_ra>
